<compile_context>
chip_gen: v5e
topology: v5e:2x2
jax: 0.10.0
libtpu: 0.0.40
codegen_flags: <defaults>
</compile_context>

<pallas_src>
import functools

import jax
import jax.numpy as jnp
from jax import lax
from jax.experimental import pallas as pl
from jax.experimental.pallas import tpu as pltpu


# ---------------------------------------------------------------------------
# ConvBlock kernel: Conv2d(3x3, pad=1) + GroupNorm + optional FiLM +
# LeakyReLU(0.2), with an optional fused residual 1x1 conv + add.
# ---------------------------------------------------------------------------
def _convblock_kernel(*refs, H, W, cout, cpg, eps, use_film, use_res):
    it = iter(refs)
    xc_ref = next(it)        # (1, H+2, W, 3*cin)  bf16  (dx-stacked, padded)
    w_ref = next(it)         # (3, 3*cin, cout)    bf16
    b_ref = next(it)         # (1, cout)           f32
    g_ref = next(it)         # (1, cout)           f32  (GN gamma)
    beta_ref = next(it)      # (1, cout)           f32  (GN beta)
    gm_ref = next(it)        # (cout, G)           f32  one-hot group map
    gmt_ref = next(it)       # (G, cout)           f32
    fs_ref = fsh_ref = None
    if use_film:
        fs_ref = next(it)    # (1, 1, cout) FiLM scale
        fsh_ref = next(it)   # (1, 1, cout) FiLM shift
    xr_ref = wr_ref = br_ref = None
    if use_res:
        xr_ref = next(it)    # (1, H, W, cin_res)  bf16 (ResBlock input)
        wr_ref = next(it)    # (cin_res, cout)     bf16 (1x1 residual conv)
        br_ref = next(it)    # (1, cout)           f32
    o_ref = next(it)         # (1, H, W, cout)     f32

    k3 = w_ref.shape[1]      # 3 * cin

    # --- 3x3 conv: dx folded into K; 3 matmuls (one per dy), f32 accumulate --
    acc = jnp.zeros((H * W, cout), jnp.float32)
    for dy in range(3):
        xs = xc_ref[0, dy:dy + H, :, :].reshape(H * W, k3)      # bf16, aligned
        acc = acc + jnp.dot(xs, w_ref[dy], preferred_element_type=jnp.float32)
    y = acc + b_ref[...]                                        # (H*W, cout)

    # --- GroupNorm: two-pass (centered) variance, eps = torch default -------
    # Group stats via matmuls against a one-hot (cout, G) map -> no lane-dim
    # reshapes inside the kernel.
    n = float(H * W * cpg)
    s = jnp.sum(y, axis=0, keepdims=True)                       # (1, cout)
    mean_g = jnp.dot(s, gm_ref[...], preferred_element_type=jnp.float32) / n
    mean_c = jnp.dot(mean_g, gmt_ref[...], preferred_element_type=jnp.float32)
    yc = y - mean_c
    ss = jnp.sum(yc * yc, axis=0, keepdims=True)                # (1, cout)
    var_g = jnp.dot(ss, gm_ref[...], preferred_element_type=jnp.float32) / n
    inv_c = jnp.dot(lax.rsqrt(var_g + eps), gmt_ref[...],
                    preferred_element_type=jnp.float32)
    y = yc * inv_c * g_ref[...] + beta_ref[...]

    # --- FiLM modulation from the time embedding ----------------------------
    if use_film:
        y = fs_ref[0] * y + fsh_ref[0]                          # (1,cout) bcast

    # --- LeakyReLU(0.2) ------------------------------------------------------
    y = jnp.maximum(y, 0.2 * y)

    # --- fused residual: res_conv(x) + h -------------------------------------
    if use_res:
        cin_res = xr_ref.shape[-1]
        xr = xr_ref[...].reshape(H * W, cin_res)                # bf16
        y = y + jnp.dot(xr, wr_ref[...],
                        preferred_element_type=jnp.float32) + br_ref[...]

    o_ref[...] = y.reshape(1, H, W, cout)


# ---------------------------------------------------------------------------
# Wrapper glue: pad 1px halo and fold the 3 dx taps into channels (K dim).
# ---------------------------------------------------------------------------
def _dx_stack(x):
    """(B,H,W,C) f32 -> (B,H+2,W,3C) bf16 with xc[..., dx*C + c] = xp[..., w+dx, c]."""
    B, H, W, C = x.shape
    xp = jnp.pad(x, ((0, 0), (1, 1), (1, 1), (0, 0)))
    xc = jnp.concatenate(
        [xp[:, :, 0:W, :], xp[:, :, 1:W + 1, :], xp[:, :, 2:W + 2, :]], axis=-1)
    return xc.astype(jnp.bfloat16)


def conv_block(x, w9, b, gamma, beta, groups, film=None, residual=None, eps=1e-5):
    """x: (B,H,W,Cin) f32.  w9: (3, 3*Cin, Cout) bf16 (dy, dx*cin, cout).
    film: (scale, shift) each (B,1,Cout).  residual: (x_res, wr, br) for the
    fused 1x1 residual conv + add."""
    B, H, W, cin = x.shape
    cout = w9.shape[-1]
    cpg = cout // groups
    xc = _dx_stack(x)                                           # (B,H+2,W,3cin)

    gm = (jnp.arange(cout)[:, None] // cpg
          == jnp.arange(groups)[None, :]).astype(jnp.float32)   # (cout, G)
    gmt = jnp.transpose(gm)                                     # (G, cout)

    inputs = [xc, w9, b.reshape(1, cout), gamma.reshape(1, cout),
              beta.reshape(1, cout), gm, gmt]
    in_specs = [
        pl.BlockSpec((1, H + 2, W, 3 * cin), lambda bi: (bi, 0, 0, 0)),
        pl.BlockSpec((3, 3 * cin, cout), lambda bi: (0, 0, 0)),
        pl.BlockSpec((1, cout), lambda bi: (0, 0)),
        pl.BlockSpec((1, cout), lambda bi: (0, 0)),
        pl.BlockSpec((1, cout), lambda bi: (0, 0)),
        pl.BlockSpec((cout, groups), lambda bi: (0, 0)),
        pl.BlockSpec((groups, cout), lambda bi: (0, 0)),
    ]

    use_film = film is not None
    if use_film:
        fs, fsh = film
        inputs += [fs, fsh]
        in_specs += [pl.BlockSpec((1, 1, cout), lambda bi: (bi, 0, 0)),
                     pl.BlockSpec((1, 1, cout), lambda bi: (bi, 0, 0))]

    use_res = residual is not None
    cin_res = 0
    if use_res:
        xres, wr, br = residual
        cin_res = xres.shape[-1]
        inputs += [xres.astype(jnp.bfloat16), wr, br.reshape(1, cout)]
        in_specs += [pl.BlockSpec((1, H, W, cin_res), lambda bi: (bi, 0, 0, 0)),
                     pl.BlockSpec((cin_res, cout), lambda bi: (0, 0)),
                     pl.BlockSpec((1, cout), lambda bi: (0, 0))]

    # VMEM budget sized from the actual per-batch tile footprint
    # (double-buffered activations + weights + headroom), clamped to
    # [32 MiB, 64 MiB] so it is valid on v5e/v6e (128 MiB) and v7x (64 MiB).
    act_bytes = ((H + 2) * W * 3 * cin * 2      # bf16 stacked input tile
                 + H * W * cout * 4             # f32 output tile
                 + H * W * cin_res * 2)         # bf16 residual input tile
    w_bytes = 3 * 3 * cin * cout * 2 + cin_res * cout * 2
    vmem_limit = int(min(64 << 20, max(32 << 20, 4 * act_bytes + w_bytes + (1 << 20))))

    kernel = functools.partial(_convblock_kernel, H=H, W=W, cout=cout, cpg=cpg,
                               eps=eps, use_film=use_film, use_res=use_res)
    return pl.pallas_call(
        kernel,
        out_shape=jax.ShapeDtypeStruct((B, H, W, cout), jnp.float32),
        grid=(B,),
        in_specs=in_specs,
        out_specs=pl.BlockSpec((1, H, W, cout), lambda bi: (bi, 0, 0, 0)),
        compiler_params=pltpu.CompilerParams(
            dimension_semantics=("parallel",),
            vmem_limit_bytes=vmem_limit),
    )(*inputs)


# ---------------------------------------------------------------------------
# Up.forward : interpolate(x1, 2x nearest) -> cat([x2, x1], C) -> ResBlock
# ---------------------------------------------------------------------------
def up_forward(params, x1, x2, t=None):
    """x1, x2 in NCHW (PyTorch convention); returns NCHW float32."""
    # --- glue: NCHW -> NHWC, nearest 2x upsample, channel concat -------------
    x1 = jnp.transpose(x1, (0, 2, 3, 1))
    x2 = jnp.transpose(x2, (0, 2, 3, 1))
    B, H1, W1, C1 = x1.shape
    x1 = jnp.broadcast_to(x1[:, :, None, :, None, :],
                          (B, H1, 2, W1, 2, C1)).reshape(B, 2 * H1, 2 * W1, C1)
    x = jnp.concatenate([x2, x1], axis=-1)          # torch.cat([x2, x1], dim=1)
    B, H, W, cin = x.shape
    cout = params["out_ch"]
    groups = params["groups"]

    # --- time embedding: LeakyReLU(0.2) -> Linear (tiny GEMM, left to XLA) ---
    film = None
    if t is not None:
        emb = jnp.maximum(t, 0.2 * t) @ params["temb_w"] + params["temb_b"]
        film = (emb[:, :cout].reshape(B, 1, cout),              # scale
                emb[:, cout:].reshape(B, 1, cout))              # shift

    # --- ResBlock: block1 -> block2 (with fused res_conv(x) + h) -------------
    h = conv_block(x, params["w1"], params["b1"], params["g1"], params["bt1"],
                   groups, film=film)
    out = conv_block(h, params["w2"], params["b2"], params["g2"], params["bt2"],
                     groups, film=film,
                     residual=(x, params["wr"], params["br"]))
    # Dropout(rate=0) -> identity.
    return jnp.transpose(out, (0, 3, 1, 2))                     # back to NCHW


# ---------------------------------------------------------------------------
# Parameters (stored directly in kernel-friendly layouts, bf16 matmul weights)
# ---------------------------------------------------------------------------
def init_params(key, in_ch, out_ch, time_emb_dim, groups=8):
    ks = jax.random.split(key, 10)

    def conv3(k, ci, co):
        w = jax.random.normal(k, (3, 3, ci, co), jnp.float32) / jnp.sqrt(9.0 * ci)
        # (dy, dx, cin, cout) -> (dy, dx*cin, cout): matches dx-stacked activations.
        return w.reshape(3, 3 * ci, co).astype(jnp.bfloat16)

    return {
        "out_ch": out_ch, "groups": groups,
        "w1": conv3(ks[0], in_ch, out_ch),
        "b1": 0.1 * jax.random.normal(ks[1], (out_ch,), jnp.float32),
        "g1": jnp.ones((out_ch,), jnp.float32),
        "bt1": 0.1 * jax.random.normal(ks[2], (out_ch,), jnp.float32),
        "w2": conv3(ks[3], out_ch, out_ch),
        "b2": 0.1 * jax.random.normal(ks[4], (out_ch,), jnp.float32),
        "g2": jnp.ones((out_ch,), jnp.float32),
        "bt2": 0.1 * jax.random.normal(ks[5], (out_ch,), jnp.float32),
        "wr": (jax.random.normal(ks[6], (in_ch, out_ch), jnp.float32)
               / jnp.sqrt(float(in_ch))).astype(jnp.bfloat16),
        "br": 0.1 * jax.random.normal(ks[7], (out_ch,), jnp.float32),
        "temb_w": (jax.random.normal(ks[8], (time_emb_dim, 2 * out_ch), jnp.float32)
                   / jnp.sqrt(float(time_emb_dim))),
        "temb_b": 0.1 * jax.random.normal(ks[9], (2 * out_ch,), jnp.float32),
    }


# ---------------------------------------------------------------------------
if __name__ == "__main__":
    B, c1, h1, w1 = 2, 8, 8, 8           # x1 (low-res branch, pre-upsample)
    c2 = 8                               # skip-connection channels
    in_ch = c1 + c2                      # channels after concat = 16
    out_ch, groups, time_emb_dim = 16, 8, 32

    key = jax.random.PRNGKey(0)
    kp, k1, k2, kt = jax.random.split(key, 4)
    params = init_params(kp, in_ch, out_ch, time_emb_dim, groups)
    x1 = jax.random.normal(k1, (B, c1, h1, w1), jnp.float32)
    x2 = jax.random.normal(k2, (B, c2, 2 * h1, 2 * w1), jnp.float32)
    t = jax.random.normal(kt, (B, time_emb_dim), jnp.float32)

    fwd = jax.jit(functools.partial(up_forward, params))
    out = jax.block_until_ready(fwd(x1, x2, t))

    assert out.shape == (B, out_ch, 2 * h1, 2 * w1)
    assert bool(jnp.all(jnp.isfinite(out)))
    print("KERNEL_OK")
</pallas_src>

<mosaic_0001>
module attributes {stable_mosaic.version = 11 : i64} {
  func.func @_convblock_kernel(%arg0: i32, %arg1: memref<1x18x16x48xbf16, #tpu.memory_space<vmem>>, %arg2: memref<3x48x16xbf16, #tpu.memory_space<vmem>>, %arg3: memref<1x16xf32, #tpu.memory_space<vmem>>, %arg4: memref<1x16xf32, #tpu.memory_space<vmem>>, %arg5: memref<1x16xf32, #tpu.memory_space<vmem>>, %arg6: memref<16x8xf32, #tpu.memory_space<vmem>>, %arg7: memref<8x16xf32, #tpu.memory_space<vmem>>, %arg8: memref<1x1x16xf32, #tpu.memory_space<vmem>>, %arg9: memref<1x1x16xf32, #tpu.memory_space<vmem>>, %arg10: memref<1x16x16x16xf32, #tpu.memory_space<vmem>>) attributes {dimension_semantics = [#tpu.dimension_semantics<parallel>], iteration_bounds = array<i64: 2>, scalar_prefetch = 0 : i64, scratch_operands = 0 : i64, tpu.core_type = #tpu.core_type<tc>, window_params = [{transform_indices = @transform_0, window_bounds = array<i64: 1, 18, 16, 48>}, {pipeline_mode = #tpu.pipeline_mode<synchronous>, transform_indices = @transform_1, window_bounds = array<i64: 3, 48, 16>}, {pipeline_mode = #tpu.pipeline_mode<synchronous>, transform_indices = @transform_2, window_bounds = array<i64: 1, 16>}, {pipeline_mode = #tpu.pipeline_mode<synchronous>, transform_indices = @transform_3, window_bounds = array<i64: 1, 16>}, {pipeline_mode = #tpu.pipeline_mode<synchronous>, transform_indices = @transform_4, window_bounds = array<i64: 1, 16>}, {pipeline_mode = #tpu.pipeline_mode<synchronous>, transform_indices = @transform_5, window_bounds = array<i64: 16, 8>}, {pipeline_mode = #tpu.pipeline_mode<synchronous>, transform_indices = @transform_6, window_bounds = array<i64: 8, 16>}, {transform_indices = @transform_7, window_bounds = array<i64: 1, 1, 16>}, {transform_indices = @transform_8, window_bounds = array<i64: 1, 1, 16>}, {transform_indices = @transform_9, window_bounds = array<i64: 1, 16, 16, 16>}]} {
    %cst = arith.constant 0.000000e+00 : f32
    %0 = vector.broadcast %cst : f32 to vector<256x16xf32>
    %c0 = arith.constant 0 : index
    %c0_0 = arith.constant 0 : index
    %c0_1 = arith.constant 0 : index
    %c0_2 = arith.constant 0 : index
    %1 = vector.load %arg1[%c0, %c0_0, %c0_1, %c0_2] : memref<1x18x16x48xbf16, #tpu.memory_space<vmem>>, vector<1x16x16x48xbf16>
    %2 = vector.shape_cast %1 : vector<1x16x16x48xbf16> to vector<16x16x48xbf16>
    %3 = vector.shape_cast %2 : vector<16x16x48xbf16> to vector<256x48xbf16>
    %c0_3 = arith.constant 0 : index
    %c0_4 = arith.constant 0 : index
    %c0_5 = arith.constant 0 : index
    %4 = vector.load %arg2[%c0_3, %c0_4, %c0_5] : memref<3x48x16xbf16, #tpu.memory_space<vmem>>, vector<1x48x16xbf16>
    %5 = vector.shape_cast %4 : vector<1x48x16xbf16> to vector<48x16xbf16>
    %cst_6 = arith.constant dense<0.000000e+00> : vector<256x16xf32>
    %6 = tpu.matmul %3, %5, %cst_6 {dimension_numbers = #tpu.dot_dimension_numbers<[1], [0], [0], [1], [0, 0, 1, 1], [], []>} : vector<256x48xbf16>, vector<48x16xbf16>, vector<256x16xf32> -> vector<256x16xf32>
    %7 = arith.addf %0, %6 : vector<256x16xf32>
    %c0_7 = arith.constant 0 : index
    %c1 = arith.constant 1 : index
    %c0_8 = arith.constant 0 : index
    %c0_9 = arith.constant 0 : index
    %8 = vector.load %arg1[%c0_7, %c1, %c0_8, %c0_9] : memref<1x18x16x48xbf16, #tpu.memory_space<vmem>>, vector<1x16x16x48xbf16>
    %9 = vector.shape_cast %8 : vector<1x16x16x48xbf16> to vector<16x16x48xbf16>
    %10 = vector.shape_cast %9 : vector<16x16x48xbf16> to vector<256x48xbf16>
    %c1_10 = arith.constant 1 : index
    %c0_11 = arith.constant 0 : index
    %c0_12 = arith.constant 0 : index
    %11 = vector.load %arg2[%c1_10, %c0_11, %c0_12] : memref<3x48x16xbf16, #tpu.memory_space<vmem>>, vector<1x48x16xbf16>
    %12 = vector.shape_cast %11 : vector<1x48x16xbf16> to vector<48x16xbf16>
    %cst_13 = arith.constant dense<0.000000e+00> : vector<256x16xf32>
    %13 = tpu.matmul %10, %12, %cst_13 {dimension_numbers = #tpu.dot_dimension_numbers<[1], [0], [0], [1], [0, 0, 1, 1], [], []>} : vector<256x48xbf16>, vector<48x16xbf16>, vector<256x16xf32> -> vector<256x16xf32>
    %14 = arith.addf %7, %13 : vector<256x16xf32>
    %c0_14 = arith.constant 0 : index
    %c2 = arith.constant 2 : index
    %c0_15 = arith.constant 0 : index
    %c0_16 = arith.constant 0 : index
    %15 = vector.load %arg1[%c0_14, %c2, %c0_15, %c0_16] : memref<1x18x16x48xbf16, #tpu.memory_space<vmem>>, vector<1x16x16x48xbf16>
    %16 = vector.shape_cast %15 : vector<1x16x16x48xbf16> to vector<16x16x48xbf16>
    %17 = vector.shape_cast %16 : vector<16x16x48xbf16> to vector<256x48xbf16>
    %c2_17 = arith.constant 2 : index
    %c0_18 = arith.constant 0 : index
    %c0_19 = arith.constant 0 : index
    %18 = vector.load %arg2[%c2_17, %c0_18, %c0_19] : memref<3x48x16xbf16, #tpu.memory_space<vmem>>, vector<1x48x16xbf16>
    %19 = vector.shape_cast %18 : vector<1x48x16xbf16> to vector<48x16xbf16>
    %cst_20 = arith.constant dense<0.000000e+00> : vector<256x16xf32>
    %20 = tpu.matmul %17, %19, %cst_20 {dimension_numbers = #tpu.dot_dimension_numbers<[1], [0], [0], [1], [0, 0, 1, 1], [], []>} : vector<256x48xbf16>, vector<48x16xbf16>, vector<256x16xf32> -> vector<256x16xf32>
    %21 = arith.addf %14, %20 : vector<256x16xf32>
    %c0_21 = arith.constant 0 : index
    %c0_22 = arith.constant 0 : index
    %22 = vector.load %arg3[%c0_21, %c0_22] : memref<1x16xf32, #tpu.memory_space<vmem>>, vector<1x16xf32>
    %23 = vector.broadcast %22 : vector<1x16xf32> to vector<256x16xf32>
    %24 = arith.addf %21, %23 : vector<256x16xf32>
    %cst_23 = arith.constant dense<0.000000e+00> : vector<16xf32>
    %25 = vector.multi_reduction <add>, %24, %cst_23 [0] : vector<256x16xf32> to vector<16xf32>
    %26 = vector.shape_cast %25 : vector<16xf32> to vector<1x16xf32>
    %c0_24 = arith.constant 0 : index
    %c0_25 = arith.constant 0 : index
    %27 = vector.load %arg6[%c0_24, %c0_25] : memref<16x8xf32, #tpu.memory_space<vmem>>, vector<16x8xf32>
    %cst_26 = arith.constant dense<0.000000e+00> : vector<1x8xf32>
    %28 = tpu.matmul %26, %27, %cst_26 {dimension_numbers = #tpu.dot_dimension_numbers<[1], [0], [0], [1], [0, 0, 1, 1], [], []>} : vector<1x16xf32>, vector<16x8xf32>, vector<1x8xf32> -> vector<1x8xf32>
    %cst_27 = arith.constant 5.120000e+02 : f32
    %29 = vector.broadcast %cst_27 : f32 to vector<1x8xf32>
    %30 = arith.divf %28, %29 : vector<1x8xf32>
    %c0_28 = arith.constant 0 : index
    %c0_29 = arith.constant 0 : index
    %31 = vector.load %arg7[%c0_28, %c0_29] : memref<8x16xf32, #tpu.memory_space<vmem>>, vector<8x16xf32>
    %cst_30 = arith.constant dense<0.000000e+00> : vector<1x16xf32>
    %32 = tpu.matmul %30, %31, %cst_30 {dimension_numbers = #tpu.dot_dimension_numbers<[1], [0], [0], [1], [0, 0, 1, 1], [], []>} : vector<1x8xf32>, vector<8x16xf32>, vector<1x16xf32> -> vector<1x16xf32>
    %33 = vector.broadcast %32 : vector<1x16xf32> to vector<256x16xf32>
    %34 = arith.subf %24, %33 : vector<256x16xf32>
    %35 = arith.mulf %34, %34 : vector<256x16xf32>
    %cst_31 = arith.constant dense<0.000000e+00> : vector<16xf32>
    %36 = vector.multi_reduction <add>, %35, %cst_31 [0] : vector<256x16xf32> to vector<16xf32>
    %37 = vector.shape_cast %36 : vector<16xf32> to vector<1x16xf32>
    %c0_32 = arith.constant 0 : index
    %c0_33 = arith.constant 0 : index
    %38 = vector.load %arg6[%c0_32, %c0_33] : memref<16x8xf32, #tpu.memory_space<vmem>>, vector<16x8xf32>
    %cst_34 = arith.constant dense<0.000000e+00> : vector<1x8xf32>
    %39 = tpu.matmul %37, %38, %cst_34 {dimension_numbers = #tpu.dot_dimension_numbers<[1], [0], [0], [1], [0, 0, 1, 1], [], []>} : vector<1x16xf32>, vector<16x8xf32>, vector<1x8xf32> -> vector<1x8xf32>
    %cst_35 = arith.constant 5.120000e+02 : f32
    %40 = vector.broadcast %cst_35 : f32 to vector<1x8xf32>
    %41 = arith.divf %39, %40 : vector<1x8xf32>
    %cst_36 = arith.constant 9.99999974E-6 : f32
    %42 = vector.broadcast %cst_36 : f32 to vector<1x8xf32>
    %43 = arith.addf %41, %42 : vector<1x8xf32>
    %44 = math.rsqrt %43 : vector<1x8xf32>
    %c0_37 = arith.constant 0 : index
    %c0_38 = arith.constant 0 : index
    %45 = vector.load %arg7[%c0_37, %c0_38] : memref<8x16xf32, #tpu.memory_space<vmem>>, vector<8x16xf32>
    %cst_39 = arith.constant dense<0.000000e+00> : vector<1x16xf32>
    %46 = tpu.matmul %44, %45, %cst_39 {dimension_numbers = #tpu.dot_dimension_numbers<[1], [0], [0], [1], [0, 0, 1, 1], [], []>} : vector<1x8xf32>, vector<8x16xf32>, vector<1x16xf32> -> vector<1x16xf32>
    %47 = vector.broadcast %46 : vector<1x16xf32> to vector<256x16xf32>
    %48 = arith.mulf %34, %47 : vector<256x16xf32>
    %c0_40 = arith.constant 0 : index
    %c0_41 = arith.constant 0 : index
    %49 = vector.load %arg4[%c0_40, %c0_41] : memref<1x16xf32, #tpu.memory_space<vmem>>, vector<1x16xf32>
    %50 = vector.broadcast %49 : vector<1x16xf32> to vector<256x16xf32>
    %51 = arith.mulf %48, %50 : vector<256x16xf32>
    %c0_42 = arith.constant 0 : index
    %c0_43 = arith.constant 0 : index
    %52 = vector.load %arg5[%c0_42, %c0_43] : memref<1x16xf32, #tpu.memory_space<vmem>>, vector<1x16xf32>
    %53 = vector.broadcast %52 : vector<1x16xf32> to vector<256x16xf32>
    %54 = arith.addf %51, %53 : vector<256x16xf32>
    %c0_44 = arith.constant 0 : index
    %c0_45 = arith.constant 0 : index
    %c0_46 = arith.constant 0 : index
    %55 = vector.load %arg8[%c0_44, %c0_45, %c0_46] : memref<1x1x16xf32, #tpu.memory_space<vmem>>, vector<1x1x16xf32>
    %56 = vector.shape_cast %55 : vector<1x1x16xf32> to vector<1x16xf32>
    %57 = vector.broadcast %56 : vector<1x16xf32> to vector<256x16xf32>
    %58 = arith.mulf %57, %54 : vector<256x16xf32>
    %c0_47 = arith.constant 0 : index
    %c0_48 = arith.constant 0 : index
    %c0_49 = arith.constant 0 : index
    %59 = vector.load %arg9[%c0_47, %c0_48, %c0_49] : memref<1x1x16xf32, #tpu.memory_space<vmem>>, vector<1x1x16xf32>
    %60 = vector.shape_cast %59 : vector<1x1x16xf32> to vector<1x16xf32>
    %61 = vector.broadcast %60 : vector<1x16xf32> to vector<256x16xf32>
    %62 = arith.addf %58, %61 : vector<256x16xf32>
    %cst_50 = arith.constant 2.000000e-01 : f32
    %63 = vector.broadcast %cst_50 : f32 to vector<256x16xf32>
    %64 = arith.mulf %63, %62 : vector<256x16xf32>
    %65 = arith.maximumf %62, %64 : vector<256x16xf32>
    %66 = vector.shape_cast %65 : vector<256x16xf32> to vector<1x16x16x16xf32>
    %c0_51 = arith.constant 0 : index
    %c0_52 = arith.constant 0 : index
    %c0_53 = arith.constant 0 : index
    %c0_54 = arith.constant 0 : index
    %67 = vector.load %arg10[%c0_51, %c0_52, %c0_53, %c0_54] : memref<1x16x16x16xf32, #tpu.memory_space<vmem>>, vector<1x16x16x16xf32>
    tpu.vector_store %arg10[%c0_51, %c0_52, %c0_53, %c0_54], %66 {strides = array<i32>} : memref<1x16x16x16xf32, #tpu.memory_space<vmem>>, vector<1x16x16x16xf32>,
    return
  }
  func.func @transform_0(%arg0: i32) -> (i32, i32, i32, i32) {
    %c0_i32 = arith.constant 0 : i32
    %c0_i32_0 = arith.constant 0 : i32
    %c0_i32_1 = arith.constant 0 : i32
    %c0_i32_2 = arith.constant 0 : i32
    return %arg0, %c0_i32, %c0_i32_0, %c0_i32_1 : i32, i32, i32, i32
  }
  func.func @transform_1(%arg0: i32) -> (i32, i32, i32) {
    %c0_i32 = arith.constant 0 : i32
    %c0_i32_0 = arith.constant 0 : i32
    %c0_i32_1 = arith.constant 0 : i32
    %c0_i32_2 = arith.constant 0 : i32
    return %c0_i32, %c0_i32_0, %c0_i32_1 : i32, i32, i32
  }
  func.func @transform_2(%arg0: i32) -> (i32, i32) {
    %c0_i32 = arith.constant 0 : i32
    %c0_i32_0 = arith.constant 0 : i32
    %c0_i32_1 = arith.constant 0 : i32
    return %c0_i32, %c0_i32_0 : i32, i32
  }
  func.func @transform_3(%arg0: i32) -> (i32, i32) {
    %c0_i32 = arith.constant 0 : i32
    %c0_i32_0 = arith.constant 0 : i32
    %c0_i32_1 = arith.constant 0 : i32
    return %c0_i32, %c0_i32_0 : i32, i32
  }
  func.func @transform_4(%arg0: i32) -> (i32, i32) {
    %c0_i32 = arith.constant 0 : i32
    %c0_i32_0 = arith.constant 0 : i32
    %c0_i32_1 = arith.constant 0 : i32
    return %c0_i32, %c0_i32_0 : i32, i32
  }
  func.func @transform_5(%arg0: i32) -> (i32, i32) {
    %c0_i32 = arith.constant 0 : i32
    %c0_i32_0 = arith.constant 0 : i32
    %c0_i32_1 = arith.constant 0 : i32
    return %c0_i32, %c0_i32_0 : i32, i32
  }
  func.func @transform_6(%arg0: i32) -> (i32, i32) {
    %c0_i32 = arith.constant 0 : i32
    %c0_i32_0 = arith.constant 0 : i32
    %c0_i32_1 = arith.constant 0 : i32
    return %c0_i32, %c0_i32_0 : i32, i32
  }
  func.func @transform_7(%arg0: i32) -> (i32, i32, i32) {
    %c0_i32 = arith.constant 0 : i32
    %c0_i32_0 = arith.constant 0 : i32
    %c0_i32_1 = arith.constant 0 : i32
    return %arg0, %c0_i32, %c0_i32_0 : i32, i32, i32
  }
  func.func @transform_8(%arg0: i32) -> (i32, i32, i32) {
    %c0_i32 = arith.constant 0 : i32
    %c0_i32_0 = arith.constant 0 : i32
    %c0_i32_1 = arith.constant 0 : i32
    return %arg0, %c0_i32, %c0_i32_0 : i32, i32, i32
  }
  func.func @transform_9(%arg0: i32) -> (i32, i32, i32, i32) {
    %c0_i32 = arith.constant 0 : i32
    %c0_i32_0 = arith.constant 0 : i32
    %c0_i32_1 = arith.constant 0 : i32
    %c0_i32_2 = arith.constant 0 : i32
    return %arg0, %c0_i32, %c0_i32_0, %c0_i32_1 : i32, i32, i32, i32
  }
}

module attributes {stable_mosaic.version = 11 : i64} {
  func.func @_convblock_kernel(%arg0: i32, %arg1: memref<1x18x16x48xbf16, #tpu.memory_space<vmem>>, %arg2: memref<3x48x16xbf16, #tpu.memory_space<vmem>>, %arg3: memref<1x16xf32, #tpu.memory_space<vmem>>, %arg4: memref<1x16xf32, #tpu.memory_space<vmem>>, %arg5: memref<1x16xf32, #tpu.memory_space<vmem>>, %arg6: memref<16x8xf32, #tpu.memory_space<vmem>>, %arg7: memref<8x16xf32, #tpu.memory_space<vmem>>, %arg8: memref<1x1x16xf32, #tpu.memory_space<vmem>>, %arg9: memref<1x1x16xf32, #tpu.memory_space<vmem>>, %arg10: memref<1x16x16x16xbf16, #tpu.memory_space<vmem>>, %arg11: memref<16x16xbf16, #tpu.memory_space<vmem>>, %arg12: memref<1x16xf32, #tpu.memory_space<vmem>>, %arg13: memref<1x16x16x16xf32, #tpu.memory_space<vmem>>) attributes {dimension_semantics = [#tpu.dimension_semantics<parallel>], iteration_bounds = array<i64: 2>, scalar_prefetch = 0 : i64, scratch_operands = 0 : i64, tpu.core_type = #tpu.core_type<tc>, window_params = [{transform_indices = @transform_0, window_bounds = array<i64: 1, 18, 16, 48>}, {pipeline_mode = #tpu.pipeline_mode<synchronous>, transform_indices = @transform_1, window_bounds = array<i64: 3, 48, 16>}, {pipeline_mode = #tpu.pipeline_mode<synchronous>, transform_indices = @transform_2, window_bounds = array<i64: 1, 16>}, {pipeline_mode = #tpu.pipeline_mode<synchronous>, transform_indices = @transform_3, window_bounds = array<i64: 1, 16>}, {pipeline_mode = #tpu.pipeline_mode<synchronous>, transform_indices = @transform_4, window_bounds = array<i64: 1, 16>}, {pipeline_mode = #tpu.pipeline_mode<synchronous>, transform_indices = @transform_5, window_bounds = array<i64: 16, 8>}, {pipeline_mode = #tpu.pipeline_mode<synchronous>, transform_indices = @transform_6, window_bounds = array<i64: 8, 16>}, {transform_indices = @transform_7, window_bounds = array<i64: 1, 1, 16>}, {transform_indices = @transform_8, window_bounds = array<i64: 1, 1, 16>}, {transform_indices = @transform_9, window_bounds = array<i64: 1, 16, 16, 16>}, {pipeline_mode = #tpu.pipeline_mode<synchronous>, transform_indices = @transform_10, window_bounds = array<i64: 16, 16>}, {pipeline_mode = #tpu.pipeline_mode<synchronous>, transform_indices = @transform_11, window_bounds = array<i64: 1, 16>}, {transform_indices = @transform_12, window_bounds = array<i64: 1, 16, 16, 16>}]} {
    %cst = arith.constant 0.000000e+00 : f32
    %0 = vector.broadcast %cst : f32 to vector<256x16xf32>
    %c0 = arith.constant 0 : index
    %c0_0 = arith.constant 0 : index
    %c0_1 = arith.constant 0 : index
    %c0_2 = arith.constant 0 : index
    %1 = vector.load %arg1[%c0, %c0_0, %c0_1, %c0_2] : memref<1x18x16x48xbf16, #tpu.memory_space<vmem>>, vector<1x16x16x48xbf16>
    %2 = vector.shape_cast %1 : vector<1x16x16x48xbf16> to vector<16x16x48xbf16>
    %3 = vector.shape_cast %2 : vector<16x16x48xbf16> to vector<256x48xbf16>
    %c0_3 = arith.constant 0 : index
    %c0_4 = arith.constant 0 : index
    %c0_5 = arith.constant 0 : index
    %4 = vector.load %arg2[%c0_3, %c0_4, %c0_5] : memref<3x48x16xbf16, #tpu.memory_space<vmem>>, vector<1x48x16xbf16>
    %5 = vector.shape_cast %4 : vector<1x48x16xbf16> to vector<48x16xbf16>
    %cst_6 = arith.constant dense<0.000000e+00> : vector<256x16xf32>
    %6 = tpu.matmul %3, %5, %cst_6 {dimension_numbers = #tpu.dot_dimension_numbers<[1], [0], [0], [1], [0, 0, 1, 1], [], []>} : vector<256x48xbf16>, vector<48x16xbf16>, vector<256x16xf32> -> vector<256x16xf32>
    %7 = arith.addf %0, %6 : vector<256x16xf32>
    %c0_7 = arith.constant 0 : index
    %c1 = arith.constant 1 : index
    %c0_8 = arith.constant 0 : index
    %c0_9 = arith.constant 0 : index
    %8 = vector.load %arg1[%c0_7, %c1, %c0_8, %c0_9] : memref<1x18x16x48xbf16, #tpu.memory_space<vmem>>, vector<1x16x16x48xbf16>
    %9 = vector.shape_cast %8 : vector<1x16x16x48xbf16> to vector<16x16x48xbf16>
    %10 = vector.shape_cast %9 : vector<16x16x48xbf16> to vector<256x48xbf16>
    %c1_10 = arith.constant 1 : index
    %c0_11 = arith.constant 0 : index
    %c0_12 = arith.constant 0 : index
    %11 = vector.load %arg2[%c1_10, %c0_11, %c0_12] : memref<3x48x16xbf16, #tpu.memory_space<vmem>>, vector<1x48x16xbf16>
    %12 = vector.shape_cast %11 : vector<1x48x16xbf16> to vector<48x16xbf16>
    %cst_13 = arith.constant dense<0.000000e+00> : vector<256x16xf32>
    %13 = tpu.matmul %10, %12, %cst_13 {dimension_numbers = #tpu.dot_dimension_numbers<[1], [0], [0], [1], [0, 0, 1, 1], [], []>} : vector<256x48xbf16>, vector<48x16xbf16>, vector<256x16xf32> -> vector<256x16xf32>
    %14 = arith.addf %7, %13 : vector<256x16xf32>
    %c0_14 = arith.constant 0 : index
    %c2 = arith.constant 2 : index
    %c0_15 = arith.constant 0 : index
    %c0_16 = arith.constant 0 : index
    %15 = vector.load %arg1[%c0_14, %c2, %c0_15, %c0_16] : memref<1x18x16x48xbf16, #tpu.memory_space<vmem>>, vector<1x16x16x48xbf16>
    %16 = vector.shape_cast %15 : vector<1x16x16x48xbf16> to vector<16x16x48xbf16>
    %17 = vector.shape_cast %16 : vector<16x16x48xbf16> to vector<256x48xbf16>
    %c2_17 = arith.constant 2 : index
    %c0_18 = arith.constant 0 : index
    %c0_19 = arith.constant 0 : index
    %18 = vector.load %arg2[%c2_17, %c0_18, %c0_19] : memref<3x48x16xbf16, #tpu.memory_space<vmem>>, vector<1x48x16xbf16>
    %19 = vector.shape_cast %18 : vector<1x48x16xbf16> to vector<48x16xbf16>
    %cst_20 = arith.constant dense<0.000000e+00> : vector<256x16xf32>
    %20 = tpu.matmul %17, %19, %cst_20 {dimension_numbers = #tpu.dot_dimension_numbers<[1], [0], [0], [1], [0, 0, 1, 1], [], []>} : vector<256x48xbf16>, vector<48x16xbf16>, vector<256x16xf32> -> vector<256x16xf32>
    %21 = arith.addf %14, %20 : vector<256x16xf32>
    %c0_21 = arith.constant 0 : index
    %c0_22 = arith.constant 0 : index
    %22 = vector.load %arg3[%c0_21, %c0_22] : memref<1x16xf32, #tpu.memory_space<vmem>>, vector<1x16xf32>
    %23 = vector.broadcast %22 : vector<1x16xf32> to vector<256x16xf32>
    %24 = arith.addf %21, %23 : vector<256x16xf32>
    %cst_23 = arith.constant dense<0.000000e+00> : vector<16xf32>
    %25 = vector.multi_reduction <add>, %24, %cst_23 [0] : vector<256x16xf32> to vector<16xf32>
    %26 = vector.shape_cast %25 : vector<16xf32> to vector<1x16xf32>
    %c0_24 = arith.constant 0 : index
    %c0_25 = arith.constant 0 : index
    %27 = vector.load %arg6[%c0_24, %c0_25] : memref<16x8xf32, #tpu.memory_space<vmem>>, vector<16x8xf32>
    %cst_26 = arith.constant dense<0.000000e+00> : vector<1x8xf32>
    %28 = tpu.matmul %26, %27, %cst_26 {dimension_numbers = #tpu.dot_dimension_numbers<[1], [0], [0], [1], [0, 0, 1, 1], [], []>} : vector<1x16xf32>, vector<16x8xf32>, vector<1x8xf32> -> vector<1x8xf32>
    %cst_27 = arith.constant 5.120000e+02 : f32
    %29 = vector.broadcast %cst_27 : f32 to vector<1x8xf32>
    %30 = arith.divf %28, %29 : vector<1x8xf32>
    %c0_28 = arith.constant 0 : index
    %c0_29 = arith.constant 0 : index
    %31 = vector.load %arg7[%c0_28, %c0_29] : memref<8x16xf32, #tpu.memory_space<vmem>>, vector<8x16xf32>
    %cst_30 = arith.constant dense<0.000000e+00> : vector<1x16xf32>
    %32 = tpu.matmul %30, %31, %cst_30 {dimension_numbers = #tpu.dot_dimension_numbers<[1], [0], [0], [1], [0, 0, 1, 1], [], []>} : vector<1x8xf32>, vector<8x16xf32>, vector<1x16xf32> -> vector<1x16xf32>
    %33 = vector.broadcast %32 : vector<1x16xf32> to vector<256x16xf32>
    %34 = arith.subf %24, %33 : vector<256x16xf32>
    %35 = arith.mulf %34, %34 : vector<256x16xf32>
    %cst_31 = arith.constant dense<0.000000e+00> : vector<16xf32>
    %36 = vector.multi_reduction <add>, %35, %cst_31 [0] : vector<256x16xf32> to vector<16xf32>
    %37 = vector.shape_cast %36 : vector<16xf32> to vector<1x16xf32>
    %c0_32 = arith.constant 0 : index
    %c0_33 = arith.constant 0 : index
    %38 = vector.load %arg6[%c0_32, %c0_33] : memref<16x8xf32, #tpu.memory_space<vmem>>, vector<16x8xf32>
    %cst_34 = arith.constant dense<0.000000e+00> : vector<1x8xf32>
    %39 = tpu.matmul %37, %38, %cst_34 {dimension_numbers = #tpu.dot_dimension_numbers<[1], [0], [0], [1], [0, 0, 1, 1], [], []>} : vector<1x16xf32>, vector<16x8xf32>, vector<1x8xf32> -> vector<1x8xf32>
    %cst_35 = arith.constant 5.120000e+02 : f32
    %40 = vector.broadcast %cst_35 : f32 to vector<1x8xf32>
    %41 = arith.divf %39, %40 : vector<1x8xf32>
    %cst_36 = arith.constant 9.99999974E-6 : f32
    %42 = vector.broadcast %cst_36 : f32 to vector<1x8xf32>
    %43 = arith.addf %41, %42 : vector<1x8xf32>
    %44 = math.rsqrt %43 : vector<1x8xf32>
    %c0_37 = arith.constant 0 : index
    %c0_38 = arith.constant 0 : index
    %45 = vector.load %arg7[%c0_37, %c0_38] : memref<8x16xf32, #tpu.memory_space<vmem>>, vector<8x16xf32>
    %cst_39 = arith.constant dense<0.000000e+00> : vector<1x16xf32>
    %46 = tpu.matmul %44, %45, %cst_39 {dimension_numbers = #tpu.dot_dimension_numbers<[1], [0], [0], [1], [0, 0, 1, 1], [], []>} : vector<1x8xf32>, vector<8x16xf32>, vector<1x16xf32> -> vector<1x16xf32>
    %47 = vector.broadcast %46 : vector<1x16xf32> to vector<256x16xf32>
    %48 = arith.mulf %34, %47 : vector<256x16xf32>
    %c0_40 = arith.constant 0 : index
    %c0_41 = arith.constant 0 : index
    %49 = vector.load %arg4[%c0_40, %c0_41] : memref<1x16xf32, #tpu.memory_space<vmem>>, vector<1x16xf32>
    %50 = vector.broadcast %49 : vector<1x16xf32> to vector<256x16xf32>
    %51 = arith.mulf %48, %50 : vector<256x16xf32>
    %c0_42 = arith.constant 0 : index
    %c0_43 = arith.constant 0 : index
    %52 = vector.load %arg5[%c0_42, %c0_43] : memref<1x16xf32, #tpu.memory_space<vmem>>, vector<1x16xf32>
    %53 = vector.broadcast %52 : vector<1x16xf32> to vector<256x16xf32>
    %54 = arith.addf %51, %53 : vector<256x16xf32>
    %c0_44 = arith.constant 0 : index
    %c0_45 = arith.constant 0 : index
    %c0_46 = arith.constant 0 : index
    %55 = vector.load %arg8[%c0_44, %c0_45, %c0_46] : memref<1x1x16xf32, #tpu.memory_space<vmem>>, vector<1x1x16xf32>
    %56 = vector.shape_cast %55 : vector<1x1x16xf32> to vector<1x16xf32>
    %57 = vector.broadcast %56 : vector<1x16xf32> to vector<256x16xf32>
    %58 = arith.mulf %57, %54 : vector<256x16xf32>
    %c0_47 = arith.constant 0 : index
    %c0_48 = arith.constant 0 : index
    %c0_49 = arith.constant 0 : index
    %59 = vector.load %arg9[%c0_47, %c0_48, %c0_49] : memref<1x1x16xf32, #tpu.memory_space<vmem>>, vector<1x1x16xf32>
    %60 = vector.shape_cast %59 : vector<1x1x16xf32> to vector<1x16xf32>
    %61 = vector.broadcast %60 : vector<1x16xf32> to vector<256x16xf32>
    %62 = arith.addf %58, %61 : vector<256x16xf32>
    %cst_50 = arith.constant 2.000000e-01 : f32
    %63 = vector.broadcast %cst_50 : f32 to vector<256x16xf32>
    %64 = arith.mulf %63, %62 : vector<256x16xf32>
    %65 = arith.maximumf %62, %64 : vector<256x16xf32>
    %c0_51 = arith.constant 0 : index
    %c0_52 = arith.constant 0 : index
    %c0_53 = arith.constant 0 : index
    %c0_54 = arith.constant 0 : index
    %66 = vector.load %arg10[%c0_51, %c0_52, %c0_53, %c0_54] : memref<1x16x16x16xbf16, #tpu.memory_space<vmem>>, vector<1x16x16x16xbf16>
    %67 = vector.shape_cast %66 : vector<1x16x16x16xbf16> to vector<256x16xbf16>
    %c0_55 = arith.constant 0 : index
    %c0_56 = arith.constant 0 : index
    %68 = vector.load %arg11[%c0_55, %c0_56] : memref<16x16xbf16, #tpu.memory_space<vmem>>, vector<16x16xbf16>
    %cst_57 = arith.constant dense<0.000000e+00> : vector<256x16xf32>
    %69 = tpu.matmul %67, %68, %cst_57 {dimension_numbers = #tpu.dot_dimension_numbers<[1], [0], [0], [1], [0, 0, 1, 1], [], []>} : vector<256x16xbf16>, vector<16x16xbf16>, vector<256x16xf32> -> vector<256x16xf32>
    %70 = arith.addf %65, %69 : vector<256x16xf32>
    %c0_58 = arith.constant 0 : index
    %c0_59 = arith.constant 0 : index
    %71 = vector.load %arg12[%c0_58, %c0_59] : memref<1x16xf32, #tpu.memory_space<vmem>>, vector<1x16xf32>
    %72 = vector.broadcast %71 : vector<1x16xf32> to vector<256x16xf32>
    %73 = arith.addf %70, %72 : vector<256x16xf32>
    %74 = vector.shape_cast %73 : vector<256x16xf32> to vector<1x16x16x16xf32>
    %c0_60 = arith.constant 0 : index
    %c0_61 = arith.constant 0 : index
    %c0_62 = arith.constant 0 : index
    %c0_63 = arith.constant 0 : index
    %75 = vector.load %arg13[%c0_60, %c0_61, %c0_62, %c0_63] : memref<1x16x16x16xf32, #tpu.memory_space<vmem>>, vector<1x16x16x16xf32>
    tpu.vector_store %arg13[%c0_60, %c0_61, %c0_62, %c0_63], %74 {strides = array<i32>} : memref<1x16x16x16xf32, #tpu.memory_space<vmem>>, vector<1x16x16x16xf32>,
    return
  }
  func.func @transform_0(%arg0: i32) -> (i32, i32, i32, i32) {
    %c0_i32 = arith.constant 0 : i32
    %c0_i32_0 = arith.constant 0 : i32
    %c0_i32_1 = arith.constant 0 : i32
    %c0_i32_2 = arith.constant 0 : i32
    return %arg0, %c0_i32, %c0_i32_0, %c0_i32_1 : i32, i32, i32, i32
  }
  func.func @transform_1(%arg0: i32) -> (i32, i32, i32) {
    %c0_i32 = arith.constant 0 : i32
    %c0_i32_0 = arith.constant 0 : i32
    %c0_i32_1 = arith.constant 0 : i32
    %c0_i32_2 = arith.constant 0 : i32
    return %c0_i32, %c0_i32_0, %c0_i32_1 : i32, i32, i32
  }
  func.func @transform_2(%arg0: i32) -> (i32, i32) {
    %c0_i32 = arith.constant 0 : i32
    %c0_i32_0 = arith.constant 0 : i32
    %c0_i32_1 = arith.constant 0 : i32
    return %c0_i32, %c0_i32_0 : i32, i32
  }
  func.func @transform_3(%arg0: i32) -> (i32, i32) {
    %c0_i32 = arith.constant 0 : i32
    %c0_i32_0 = arith.constant 0 : i32
    %c0_i32_1 = arith.constant 0 : i32
    return %c0_i32, %c0_i32_0 : i32, i32
  }
  func.func @transform_4(%arg0: i32) -> (i32, i32) {
    %c0_i32 = arith.constant 0 : i32
    %c0_i32_0 = arith.constant 0 : i32
    %c0_i32_1 = arith.constant 0 : i32
    return %c0_i32, %c0_i32_0 : i32, i32
  }
  func.func @transform_5(%arg0: i32) -> (i32, i32) {
    %c0_i32 = arith.constant 0 : i32
    %c0_i32_0 = arith.constant 0 : i32
    %c0_i32_1 = arith.constant 0 : i32
    return %c0_i32, %c0_i32_0 : i32, i32
  }
  func.func @transform_6(%arg0: i32) -> (i32, i32) {
    %c0_i32 = arith.constant 0 : i32
    %c0_i32_0 = arith.constant 0 : i32
    %c0_i32_1 = arith.constant 0 : i32
    return %c0_i32, %c0_i32_0 : i32, i32
  }
  func.func @transform_7(%arg0: i32) -> (i32, i32, i32) {
    %c0_i32 = arith.constant 0 : i32
    %c0_i32_0 = arith.constant 0 : i32
    %c0_i32_1 = arith.constant 0 : i32
    return %arg0, %c0_i32, %c0_i32_0 : i32, i32, i32
  }
  func.func @transform_8(%arg0: i32) -> (i32, i32, i32) {
    %c0_i32 = arith.constant 0 : i32
    %c0_i32_0 = arith.constant 0 : i32
    %c0_i32_1 = arith.constant 0 : i32
    return %arg0, %c0_i32, %c0_i32_0 : i32, i32, i32
  }
  func.func @transform_9(%arg0: i32) -> (i32, i32, i32, i32) {
    %c0_i32 = arith.constant 0 : i32
    %c0_i32_0 = arith.constant 0 : i32
    %c0_i32_1 = arith.constant 0 : i32
    %c0_i32_2 = arith.constant 0 : i32
    return %arg0, %c0_i32, %c0_i32_0, %c0_i32_1 : i32, i32, i32, i32
  }
  func.func @transform_10(%arg0: i32) -> (i32, i32) {
    %c0_i32 = arith.constant 0 : i32
    %c0_i32_0 = arith.constant 0 : i32
    %c0_i32_1 = arith.constant 0 : i32
    return %c0_i32, %c0_i32_0 : i32, i32
  }
  func.func @transform_11(%arg0: i32) -> (i32, i32) {
    %c0_i32 = arith.constant 0 : i32
    %c0_i32_0 = arith.constant 0 : i32
    %c0_i32_1 = arith.constant 0 : i32
    return %c0_i32, %c0_i32_0 : i32, i32
  }
  func.func @transform_12(%arg0: i32) -> (i32, i32, i32, i32) {
    %c0_i32 = arith.constant 0 : i32
    %c0_i32_0 = arith.constant 0 : i32
    %c0_i32_1 = arith.constant 0 : i32
    %c0_i32_2 = arith.constant 0 : i32
    return %arg0, %c0_i32, %c0_i32_0, %c0_i32_1 : i32, i32, i32, i32
  }
}

</mosaic_0001>

<bundles_post_ra>
// kernel: up_forward.2
= control target key start
LH: loop header
LB: loop body
LE: loop exit
PB: predicated region body
PF: predicated region fallthrough
CT: control target
= control target key end

     0   :  { %s2431_s30 = smov 0   ;;  %s3403_s0 = inlined_call_operand.vmem [shape: bf16[2,18,16,48], index: 0, kind: input, shape index: {}]   ;;  %s3404_s1 = inlined_call_operand.vmem [shape: bf16[3,48,16], index: 1, kind: input, shape index: {}]   ;;  %s3405_s2 = inlined_call_operand.vmem [shape: f32[1,16], index: 2, kind: input, shape index: {}]   ;;  %s3406_s3 = inlined_call_operand.vmem [shape: f32[1,16], index: 3, kind: input, shape index: {}]   ;;  %s3407_s4 = inlined_call_operand.vmem [shape: f32[1,16], index: 4, kind: input, shape index: {}]   ;;  %s3408_s5 = inlined_call_operand.vmem [shape: f32[16,8], index: 5, kind: input, shape index: {}]   ;;  %s3409_s6 = inlined_call_operand.vmem [shape: f32[8,16], index: 6, kind: input, shape index: {}]   ;;  %s3410_s7 = inlined_call_operand.vmem [shape: f32[2,1,16], index: 7, kind: input, shape index: {}]   ;;  %s3411_s8 = inlined_call_operand.vmem [shape: f32[2,1,16], index: 8, kind: input, shape index: {}]   ;;  %s3412_s9 = inlined_call_operand.vmem [shape: f32[2,16,16,16], index: 9, kind: output, shape index: {}]  }
   0x1 LB: > { %s1920_s10 = sadd.s32 4294967295, %s2378_s30   ;;  %p1924_p0 = scmp.ge.s32.totalorder %s2378_s30, 1  ;;  %s2378_s30 = sphi %s2431_s30, %s19_s30  }
   0x2   : > { %p303_p1 = scmp.lt.s32.totalorder %s2378_s30, 3 }
   0x4   : > { %p304_p2 = pnand %p1924_p0, %p303_p1 }
   0x6   : > { %307 = sbr.rel (%p304_p2) target bundleno = 1087 (0x43f), region = 56 }
   0xb   : > { %v2324_v0 = vld [vmem:[%s3404_s1 + $0x28] sm:$0xff]  ;;  %v2305_v1 = vld [vmem:[%s3404_s1 + $0x10] sm:$0xff]  ;;  %v2343_v2 = vld [vmem:[%s3404_s1 + $0x40] sm:$0xff]  ;;  %p345_p3 = scmp.lt.s32.totalorder %s1920_s10, 1  ;;  %vm538_vm0 = vcmask 392192   ;;  %vm1254_vm1 = vcmask 130048  }
   0xc   : > { %592 = vmatpush.bf16.msra.mxu0 %v2324_v0  ;;  %2344 = vmatpush.bf16.msra.mxu3 %v2324_v0  ;;  %v2323_v3 = vld [vmem:[%s3404_s1 + $0x20] sm:$0xff]  ;;  %v2304_v4 = vld [vmem:[%s3404_s1 + $0x8] sm:$0xff]  ;;  %v2342_v5 = vld [vmem:[%s3404_s1 + $0x38] sm:$0xff]  ;;  %vm1358_vm3 = vcmask 64512  }
   0xd   : > { %s3417_s10 = smov (!%p345_p3, %s1920_s10), 1  ;;  %827 = vmatpush.bf16.msra.mxu1 %v2305_v1  ;;  %1102 = vmatpush.bf16.msra.mxu2 %v2343_v2  ;;  %v2322_v6 = vld [vmem:[%s3404_s1 + $0x18] sm:$0xff]  ;;  %v2303_v7 = vld [vmem:[%s3404_s1] sm:$0xff]  ;;  %v2341_v8 = vld [vmem:[%s3404_s1 + $0x30] sm:$0xff] }
   0xe   : > { %s2353_s23 = smul.u32 144, %s3417_s10  ;;  %s352_s24 = scalar_lea.vmem %s3410_s7, %s3417_s10 }
   0xf   : > { %s355_s27 = scalar_lea.vmem %s3411_s8, %s3417_s10  ;;  %s2286_s17 = sshll.u32 %s3417_s10, 8 }
  0x10   : > { %593 = vmatpush.bf16.msra.mxu0 %v2323_v3  ;;  %2345 = vmatpush.bf16.msra.mxu3 %v2323_v3  ;;  %s2466_s28 = scalar_lea.vmem %s3403_s0, %s2353_s23  ;;  %s3254_s19 = scalar_lea.vmem %s3412_s9, %s2286_s17 }
  0x11   : > { %828 = vmatpush.bf16.msra.mxu1 %v2304_v4  ;;  %1103 = vmatpush.bf16.msra.mxu2 %v2342_v5  ;;  %v2306_v9 = vld [vmem:[%s2466_s28 + $0x8] sm:$0xff]  ;;  %v2319_v10 = vld [vmem:[%s2466_s28 + $0x70] sm:$0xff]  ;;  %v2287_v11 = vld [vmem:[%s2466_s28] sm:$0xff] }
  0x12   : > { %v2325_v12 = vld [vmem:[%s2466_s28 + $0x10] sm:$0xff]  ;;  %v2320_v14 = vld [vmem:[%s2466_s28 + $0x78] sm:$0xff]  ;;  %v2288_v15 = vld [vmem:[%s2466_s28 + $0x8] sm:$0xff] }
  0x13   : > { %v2307_v13 = vld [vmem:[%s2466_s28 + $0x10] sm:$0xff]  ;;  %v2326_v16 = vld [vmem:[%s2466_s28 + $0x18] sm:$0xff]  ;;  %v2321_v18 = vld [vmem:[%s2466_s28 + $0x80] sm:$0xff] }
  0x14   : > { %594 = vmatpush.bf16.msra.mxu0 %v2322_v6  ;;  %2346 = vmatpush.bf16.msra.mxu3 %v2322_v6  ;;  %v2308_v17 = vld [vmem:[%s2466_s28 + $0x18] sm:$0xff]  ;;  %v2289_v19 = vld [vmem:[%s2466_s28 + $0x10] sm:$0xff]  ;;  %v2327_v20 = vld [vmem:[%s2466_s28 + $0x20] sm:$0xff] }
  0x15   : > { %829 = vmatpush.bf16.msra.mxu1 %v2303_v7  ;;  %1104 = vmatpush.bf16.msra.mxu2 %v2341_v8  ;;  %v2309_v21 = vld [vmem:[%s2466_s28 + $0x20] sm:$0xff]  ;;  %v2300_v22 = vld [vmem:[%s2466_s28 + $0x68] sm:$0xff]  ;;  %v2290_v23 = vld [vmem:[%s2466_s28 + $0x18] sm:$0xff] }
  0x16   : > { %v2328_v24 = vld [vmem:[%s2466_s28 + $0x28] sm:$0xff]  ;;  %v2301_v26 = vld [vmem:[%s2466_s28 + $0x70] sm:$0xff]  ;;  %v2291_v27 = vld [vmem:[%s2466_s28 + $0x20] sm:$0xff] }
  0x17   : > { %2042 = vmatmul.msk.bf16.vlgmr.msra.gmra.mxu0 %vm538_vm0, %v2306_v9  ;;  %2055 = vmatmul.msk.bf16.vlgmr.msra.gmra.mxu3 %vm538_vm0, %v2319_v10  ;;  %v2310_v25 = vld [vmem:[%s2466_s28 + $0x28] sm:$0xff]  ;;  %v2329_v28 = vld [vmem:[%s2466_s28 + $0x30] sm:$0xff]  ;;  %v2302_v30 = vld [vmem:[%s2466_s28 + $0x78] sm:$0xff] }
  0x18   : > { %2347 = vmatpush.bf16.msrb.mxu3 %v2305_v1  ;;  %2134 = vmatmul.msk.bf16.vlgmr.msra.gmra.mxu1 %vm538_vm0, %v2287_v11  ;;  %v2311_v29 = vld [vmem:[%s2466_s28 + $0x30] sm:$0xff]  ;;  %v2292_v31 = vld [vmem:[%s2466_s28 + $0x28] sm:$0xff]  ;;  %v2330_v32 = vld [vmem:[%s2466_s28 + $0x38] sm:$0xff] }
  0x19   : > { %2264 = vmatmul.msk.bf16.vlgmr.msra.gmra.mxu2 %vm538_vm0, %v2325_v12  ;;  %v2312_v33 = vld [vmem:[%s2466_s28 + $0x38] sm:$0xff]  ;;  %v2293_v35 = vld [vmem:[%s2466_s28 + $0x30] sm:$0xff]  ;;  %v2331_v36 = vld [vmem:[%s2466_s28 + $0x40] sm:$0xff] }
  0x1a   : > { %v2338_v34 = vld [vmem:[%s2466_s28 + $0x78] sm:$0xff]  ;;  %v2313_v37 = vld [vmem:[%s2466_s28 + $0x40] sm:$0xff]  ;;  %v2332_v40 = vld [vmem:[%s2466_s28 + $0x48] sm:$0xff] }
  0x1b   : > { %v2339_v38 = vld [vmem:[%s2466_s28 + $0x80] sm:$0xff]  ;;  %v2294_v39 = vld [vmem:[%s2466_s28 + $0x38] sm:$0xff]  ;;  %v2314_v41 = vld [vmem:[%s2466_s28 + $0x48] sm:$0xff] }
  0x1c   : > { %2348 = vmatpush.bf16.msrb.mxu3 %v2304_v4  ;;  %v2340_v42 = vld [vmem:[%s2466_s28 + $0x88] sm:$0xff]  ;;  %v2295_v44 = vld [vmem:[%s2466_s28 + $0x40] sm:$0xff]  ;;  %v2333_v45 = vld [vmem:[%s2466_s28 + $0x50] sm:$0xff] }
  0x1d   : > { %v2315_v56 = vld [vmem:[%s2466_s28 + $0x50] sm:$0xff]  ;;  %v2296_v59 = vld [vmem:[%s2466_s28 + $0x48] sm:$0xff]  ;;  %v2334_v60 = vld [vmem:[%s2466_s28 + $0x58] sm:$0xff] }
  0x1e   : > { %v2297_v10 = vld [vmem:[%s2466_s28 + $0x50] sm:$0xff]  ;;  %v2335_v11 = vld [vmem:[%s2466_s28 + $0x60] sm:$0xff] }
  0x20   : > { %2349 = vmatpush.bf16.msrb.mxu3 %v2303_v7  ;;  %v2316_v7 = vld [vmem:[%s2466_s28 + $0x58] sm:$0xff] }
  0x24   : > { %2350 = vmatpush.bf16.msra.mxu3 %v2343_v2 }
  0x27   : > { %2043 = vmatmul.msk.bf16.gmra.mxu0 %vm538_vm0, %v2307_v13  ;;  %2056 = vmatmul.msk.bf16.gmra.mxu3 %vm538_vm0, %v2320_v14 }
  0x28   : > { %2351 = vmatpush.bf16.msra.mxu3 %v2342_v5  ;;  %2135 = vmatmul.msk.bf16.gmra.mxu1 %vm538_vm0, %v2288_v15 }
  0x29   : > { %2265 = vmatmul.msk.bf16.gmra.mxu2 %vm538_vm0, %v2326_v16 }
  0x2c   : > { %2352 = vmatpush.bf16.msra.mxu3 %v2341_v8 }
  0x37   : > { %2044 = vmatmul.msk.bf16.gmra.mxu0 %vm538_vm0, %v2308_v17  ;;  %2057 = vmatmul.msk.bf16.gmra.mxu3 %vm538_vm0, %v2321_v18 }
  0x38   : > { %2136 = vmatmul.msk.bf16.gmra.mxu1 %vm538_vm0, %v2289_v19 }
  0x39   : > { %2266 = vmatmul.msk.bf16.gmra.mxu2 %vm538_vm0, %v2327_v20 }
  0x47   : > { %2045 = vmatmul.msk.bf16.gmra.mxu0 %vm538_vm0, %v2309_v21  ;;  %2147 = vmatmul.msk.bf16.vlgmr.msrb.gmra.mxu3 %vm538_vm0, %v2300_v22  ;;  %v2317_v22 = vld [vmem:[%s2466_s28 + $0x60] sm:$0xff] }
  0x48   : > { %2137 = vmatmul.msk.bf16.gmra.mxu1 %vm538_vm0, %v2290_v23 }
  0x49   : > { %2267 = vmatmul.msk.bf16.gmra.mxu2 %vm538_vm0, %v2328_v24 }
  0x57   : > { %2046 = vmatmul.msk.bf16.gmra.mxu0 %vm538_vm0, %v2310_v25  ;;  %2148 = vmatmul.msk.bf16.gmra.mxu3 %vm538_vm0, %v2301_v26  ;;  %v2298_v25 = vld [vmem:[%s2466_s28 + $0x58] sm:$0xff]  ;;  %v2336_v26 = vld [vmem:[%s2466_s28 + $0x68] sm:$0xff] }
  0x58   : > { %2138 = vmatmul.msk.bf16.gmra.mxu1 %vm538_vm0, %v2291_v27 }
  0x59   : > { %2268 = vmatmul.msk.bf16.gmra.mxu2 %vm538_vm0, %v2329_v28 }
  0x67   : > { %2047 = vmatmul.msk.bf16.gmra.mxu0 %vm538_vm0, %v2311_v29  ;;  %2149 = vmatmul.msk.bf16.gmra.mxu3 %vm538_vm0, %v2302_v30 }
  0x68   : > { %2139 = vmatmul.msk.bf16.gmra.mxu1 %vm538_vm0, %v2292_v31 }
  0x69   : > { %2269 = vmatmul.msk.bf16.gmra.mxu2 %vm538_vm0, %v2330_v32 }
  0x77   : > { %2048 = vmatmul.msk.bf16.gmra.mxu0 %vm538_vm0, %v2312_v33  ;;  %2277 = vmatmul.msk.bf16.vlgmr.msra.gmra.mxu3 %vm538_vm0, %v2338_v34 }
  0x78   : > { %2140 = vmatmul.msk.bf16.gmra.mxu1 %vm538_vm0, %v2293_v35 }
  0x79   : > { %2270 = vmatmul.msk.bf16.gmra.mxu2 %vm538_vm0, %v2331_v36 }
  0x87   : > { %2049 = vmatmul.msk.bf16.gmra.mxu0 %vm538_vm0, %v2313_v37  ;;  %2278 = vmatmul.msk.bf16.gmra.mxu3 %vm538_vm0, %v2339_v38 }
  0x88   : > { %2141 = vmatmul.msk.bf16.gmra.mxu1 %vm538_vm0, %v2294_v39  ;;  %v2318_v39 = vld [vmem:[%s2466_s28 + $0x68] sm:$0xff] }
  0x89   : > { %2271 = vmatmul.msk.bf16.gmra.mxu2 %vm538_vm0, %v2332_v40 }
  0x94   : > { %v596_v43 = vpop.f32.mrf.mxu0 }
  0x95   : > { %v831_v46 = vpop.f32.mrf.mxu1 }
  0x96   : > { %v832_v47 = vadd.f32 %v831_v46, %v596_v43  ;;  %v2337_v43 = vld [vmem:[%s2466_s28 + $0x70] sm:$0xff] }
  0x97   : > { %2050 = vmatmul.msk.bf16.gmra.mxu0 %vm538_vm0, %v2314_v41  ;;  %2279 = vmatmul.msk.bf16.gmra.mxu3 %vm538_vm0, %v2340_v42  ;;  %v2299_v42 = vld [vmem:[%s2466_s28 + $0x60] sm:$0xff] }
  0x98   : > { %2142 = vmatmul.msk.bf16.gmra.mxu1 %vm538_vm0, %v2295_v44 }
  0x99   : > { %2272 = vmatmul.msk.bf16.gmra.mxu2 %vm538_vm0, %v2333_v45 }
  0x9a   : > { %v661_v48 = vpop.f32.mrf.mxu3 }
  0x9c   : > { %v1106_v49 = vpop.f32.mrf.mxu2  ;;  %v598_v51 = vpop.f32.mrf.mxu0 }
  0x9d   : > { %v2546_v50 = vadd.f32 %v1106_v49, %v832_v47  ;;  %v833_v52 = vpop.f32.mrf.mxu1 }
  0x9e   : > { %v834_v53 = vadd.f32 %v833_v52, %v598_v51 }
  0xa2   : > { %v663_v54 = vpop.f32.mrf.mxu3 }
  0xa4   : > { %v1108_v55 = vpop.f32.mrf.mxu2  ;;  %v601_v58 = vpop.f32.mrf.mxu0 }
  0xa5   : > { %v2549_v57 = vadd.f32 %v1108_v55, %v834_v53  ;;  %v836_v61 = vpop.f32.mrf.mxu1 }
  0xa6   : > { %v837_v62 = vadd.f32 %v836_v61, %v601_v58 }
  0xa7   : > { %2051 = vmatmul.msk.bf16.gmra.mxu0 %vm538_vm0, %v2315_v56 }
  0xa8   : > { %2143 = vmatmul.msk.bf16.gmra.mxu1 %vm538_vm0, %v2296_v59 }
  0xa9   : > { %2273 = vmatmul.msk.bf16.gmra.mxu2 %vm538_vm0, %v2334_v60 }
  0xaa   : > { %v666_v63 = vpop.f32.mrf.mxu3 }
  0xac   : > { %v1111_v0 = vpop.f32.mrf.mxu2  ;;  %v603_v2 = vpop.f32.mrf.mxu0 }
  0xad   : > { %v2556_v1 = vadd.f32 %v1111_v0, %v837_v62  ;;  %v838_v3 = vpop.f32.mrf.mxu1 }
  0xae   : > { %v839_v4 = vadd.f32 %v838_v3, %v603_v2 }
  0xb2   : > { %v2558_v5 = vpop.f32.mrf.mxu3 }
  0xb4   : > { %v1113_v6 = vpop.f32.mrf.mxu2  ;;  %v606_v9 = vpop.f32.mrf.mxu0 }
  0xb5   : > { %v2561_v8 = vadd.f32 %v1113_v6, %v839_v4  ;;  %v841_v12 = vpop.f32.mrf.mxu1 }
  0xb6   : > { %v842_v13 = vadd.f32 %v841_v12, %v606_v9 }
  0xb7   : > { %2052 = vmatmul.msk.bf16.gmra.mxu0 %vm538_vm0, %v2316_v7 }
  0xb8   : > { %2144 = vmatmul.msk.bf16.gmra.mxu1 %vm538_vm0, %v2297_v10 }
  0xb9   : > { %2274 = vmatmul.msk.bf16.gmra.mxu2 %vm538_vm0, %v2335_v11 }
  0xba   : > { %v2568_v14 = vpop.f32.mrf.mxu3 }
  0xbc   : > { %v1116_v15 = vpop.f32.mrf.mxu2  ;;  %v608_v17 = vpop.f32.mrf.mxu0 }
  0xbd   : > { %v2570_v16 = vadd.f32 %v1116_v15, %v842_v13  ;;  %v843_v18 = vpop.f32.mrf.mxu1 }
  0xbe   : > { %v844_v19 = vadd.f32 %v843_v18, %v608_v17 }
  0xc2   : > { %v2572_v20 = vpop.f32.mrf.mxu3 }
  0xc4   : > { %v1118_v21 = vpop.f32.mrf.mxu2  ;;  %v611_v24 = vpop.f32.mrf.mxu0 }
  0xc5   : > { %v2575_v23 = vadd.f32 %v1118_v21, %v844_v19  ;;  %v846_v27 = vpop.f32.mrf.mxu1 }
  0xc6   : > { %v847_v28 = vadd.f32 %v846_v27, %v611_v24 }
  0xc7   : > { %2053 = vmatmul.msk.bf16.gmra.mxu0 %vm538_vm0, %v2317_v22 }
  0xc8   : > { %2145 = vmatmul.msk.bf16.gmra.mxu1 %vm538_vm0, %v2298_v25 }
  0xc9   : > { %2275 = vmatmul.msk.bf16.gmra.mxu2 %vm538_vm0, %v2336_v26 }
  0xca   : > { %v896_v29 = vpop.f32.mrf.mxu3 }
  0xcb   : > { %v2582_v30 = vadd.f32 %v896_v29, %v661_v48 }
  0xcc   : > { %v1121_v31 = vpop.f32.mrf.mxu2  ;;  %v613_v33 = vpop.f32.mrf.mxu0 }
  0xcd   : > { %v2584_v32 = vadd.f32 %v1121_v31, %v847_v28  ;;  %v848_v34 = vpop.f32.mrf.mxu1 }
  0xce   : > { %v849_v35 = vadd.f32 %v848_v34, %v613_v33 }
  0xd2   : > { %v898_v36 = vpop.f32.mrf.mxu3 }
  0xd3   : > { %v2586_v37 = vadd.f32 %v898_v36, %v663_v54 }
  0xd4   : > { %v1123_v38 = vpop.f32.mrf.mxu2  ;;  %v616_v41 = vpop.f32.mrf.mxu0 }
  0xd5   : > { %v2589_v40 = vadd.f32 %v1123_v38, %v849_v35  ;;  %v851_v44 = vpop.f32.mrf.mxu1 }
  0xd6   : > { %v852_v45 = vadd.f32 %v851_v44, %v616_v41 }
  0xd7   : > { %2054 = vmatmul.msk.bf16.gmra.mxu0 %vm538_vm0, %v2318_v39 }
  0xd8   : > { %2146 = vmatmul.msk.bf16.gmra.mxu1 %vm538_vm0, %v2299_v42 }
  0xd9   : > { %2276 = vmatmul.msk.bf16.gmra.mxu2 %vm538_vm0, %v2337_v43 }
  0xda   : > { %v901_v46 = vpop.f32.mrf.mxu3 }
  0xdb   : > { %v2596_v47 = vadd.f32 %v901_v46, %v666_v63  ;;  %v2641_v46 = vld [vmem:[%s3405_s2] ss:$0 sm:$0xff] }
  0xdc   : > { %v1126_v48 = vpop.f32.mrf.mxu2  ;;  %v618_v51 = vpop.f32.mrf.mxu0 }
  0xdd   : > { %v2598_v49 = vadd.f32 %v1126_v48, %v852_v45  ;;  %v853_v52 = vpop.f32.mrf.mxu1  ;;  %v2645_v48 = vadd.f32 %v2641_v46, %v2549_v57  ;;  %v2665_v57 = vadd.f32 %v2641_v46, %v2561_v8 }
  0xde   : > { %v854_v53 = vadd.f32 %v853_v52, %v618_v51  ;;  %v2651_v52 = vadd.f32 %v2641_v46, %v2546_v50 }
  0xdf   : > { %v1260_v8 = vsel %vm1254_vm1, %v2665_v57, 0.0 }
  0xe0   : > { %v1255_v50 = vsel %vm1254_vm1, %v2651_v52, 0.0 }
  0xe2   : > { %v2618_v31 = vpop.f32.mrf.mxu3 }
  0xe4   : > { %v1128_v54 = vpop.f32.mrf.mxu2  ;;  %v621_v56 = vpop.f32.mrf.mxu0 }
  0xe5   : > { %v2600_v55 = vadd.f32 %v1128_v54, %v854_v53  ;;  %v856_v58 = vpop.f32.mrf.mxu1  ;;  %v2655_v53 = vadd.f32 %v2641_v46, %v2556_v1 }
  0xe6   : > { %v857_v59 = vadd.f32 %v856_v58, %v621_v56  ;;  %v1256_v58 = vsel %vm1254_vm1, %v2645_v48, 0.0 }
  0xe7   : > { %v1258_v1 = vsel %vm1254_vm1, %v2655_v53, 0.0 }
  0xea   : > { %v2626_v36 = vpop.f32.mrf.mxu3 }
  0xec   : > { %v1131_v60 = vpop.f32.mrf.mxu2  ;;  %v623_v62 = vpop.f32.mrf.mxu0 }
  0xed   : > { %v2602_v61 = vadd.f32 %v1131_v60, %v857_v59  ;;  %v858_v0 = vpop.f32.mrf.mxu1  ;;  %v2675_v60 = vadd.f32 %v2641_v46, %v2570_v16 }
  0xee   : > { %v859_v2 = vadd.f32 %v858_v0, %v623_v62  ;;  %v1257_v62 = vadd.f32 %v1256_v58, %v1255_v50  ;;  %v2680_v0 = vld [vmem:[%s3408_s5 + $0x8] sm:$0xff] }
  0xef   : > { %1343 = vmatpush.msrb.mxu3 %v2680_v0  ;;  %v1262_v16 = vsel %vm1254_vm1, %v2675_v60, 0.0 }
  0xf2   : > { %v2632_v43 = vpop.f32.mrf.mxu3 }
  0xf4   : > { %v1133_v63 = vpop.f32.mrf.mxu2  ;;  %v626_v4 = vpop.f32.mrf.mxu0 }
  0xf5   : > { %v2604_v3 = vadd.f32 %v1133_v63, %v859_v2  ;;  %v861_v6 = vpop.f32.mrf.mxu1  ;;  %v2686_v2 = vadd.f32 %v2641_v46, %v2575_v23  ;;  %v1259_v63 = vadd.f32 %v1258_v1, %v1257_v62  ;;  %v2699_v23 = vadd.f32 %v2641_v46, %v2589_v40 }
  0xf6   : > { %v862_v7 = vadd.f32 %v861_v6, %v626_v4  ;;  %v2693_v6 = vadd.f32 %v2641_v46, %v2584_v32  ;;  %v2719_v1 = vadd.f32 %v2641_v46, %v2602_v61 }
  0xf8   : > { %3414 = vst [vmem:[#allocation2_spill] sm:$0xff] %v2719_v1 }
  0xfa   : > { %v2667_v59 = vpop.f32.mrf.mxu3 }
  0xfc   : > { %v1136_v9 = vpop.f32.mrf.mxu2  ;;  %v628_v11 = vpop.f32.mrf.mxu0 }
  0xfd   : > { %v2606_v10 = vadd.f32 %v1136_v9, %v862_v7  ;;  %v863_v12 = vpop.f32.mrf.mxu1  ;;  %v1261_v9 = vadd.f32 %v1260_v8, %v1259_v63 }
  0xfe   : > { %v864_v13 = vadd.f32 %v863_v12, %v628_v11  ;;  %v1264_v12 = vsel %vm1254_vm1, %v2686_v2, 0.0 }
 0x102   : > { %v2707_v32 = vpop.f32.mrf.mxu3 }
 0x104   : > { %v1138_v15 = vpop.f32.mrf.mxu2  ;;  %v631_v18 = vpop.f32.mrf.mxu0 }
 0x105   : > { %v2608_v17 = vadd.f32 %v1138_v15, %v864_v13  ;;  %v866_v19 = vpop.f32.mrf.mxu1  ;;  %v1263_v13 = vadd.f32 %v1262_v16, %v1261_v9  ;;  %v1266_v15 = vsel %vm1254_vm1, %v2693_v6, 0.0  ;;  %v2725_v16 = vadd.f32 %v2641_v46, %v2604_v3 }
 0x106   : > { %v867_v21 = vadd.f32 %v866_v19, %v631_v18  ;;  %v2705_v18 = vadd.f32 %v2641_v46, %v2598_v49  ;;  %v1274_v9 = vsel %vm1254_vm1, %v2719_v1, 0.0 }
 0x107   : > { %v1265_v19 = vadd.f32 %v1264_v12, %v1263_v13  ;;  %v2731_v12 = vadd.f32 %v2641_v46, %v2606_v10  ;;  %v2739_v3 = vadd.f32 %v2641_v46, %v2608_v17 }
 0x108   : > { %v1270_v50 = vsel %vm1254_vm1, %v2705_v18, 0.0 }
 0x109   : > { %v1267_v40 = vadd.f32 %v1266_v15, %v1265_v19  ;;  %v1276_v19 = vsel %vm1254_vm1, %v2725_v16, 0.0  ;;  %v1278_v1 = vsel %vm1254_vm1, %v2731_v12, 0.0 }
 0x10c   : > { %v1141_v22 = vpop.f32.mrf.mxu2  ;;  %v2612_v25 = vpop.f32.mrf.mxu0 }
 0x10d   : > { %v2610_v24 = vadd.f32 %v1141_v22, %v867_v21  ;;  %v2614_v26 = vpop.f32.mrf.mxu1  ;;  %v1268_v21 = vsel %vm1254_vm1, %v2699_v23, 0.0  ;;  %v2713_v22 = vadd.f32 %v2641_v46, %v2600_v55 }
 0x10e   : > { %v1269_v62 = vadd.f32 %v1268_v21, %v1267_v40  ;;  %v869_v61 = vadd.f32 %v2614_v26, %v2612_v25  ;;  %v2741_v21 = vpop.f32.mrf.mxu3 }
 0x10f   : > { %v1272_v63 = vsel %vm1254_vm1, %v2713_v22, 0.0  ;;  %v2748_v25 = vadd.f32 %v2641_v46, %v2610_v24 }
 0x110   : > { %v1271_v55 = vadd.f32 %v1270_v50, %v1269_v62 }
 0x112   : > { %v1273_v15 = vadd.f32 %v1272_v63, %v1271_v55 }
 0x114   : > { %v2616_v27 = vpop.f32.mrf.mxu2  ;;  %v636_v28 = vpop.f32.mrf.mxu0  ;;  %v1275_v50 = vadd.f32 %v1274_v9, %v1273_v15 }
 0x115   : > { %v871_v29 = vpop.f32.mrf.mxu1  ;;  %v1201_v40 = vadd.f32 %v2616_v27, %v869_v61  ;;  %v1280_v27 = vsel %vm1254_vm1, %v2739_v3, 0.0 }
 0x116   : > { %v872_v13 = vadd.f32 %v871_v29, %v636_v28  ;;  %v1277_v29 = vadd.f32 %v1276_v19, %v1275_v50 }
 0x118   : > { %v1279_v55 = vadd.f32 %v1278_v1, %v1277_v29 }
 0x11a   : > { %v1281_v61 = vadd.f32 %v1280_v27, %v1279_v55 }
 0x11c   : > { %v2620_v33 = vpop.f32.mrf.mxu2  ;;  %v2622_v34 = vpop.f32.mrf.mxu0 }
 0x11d   : > { %v2624_v35 = vpop.f32.mrf.mxu1  ;;  %v1202_v26 = vadd.f32 %v2620_v33, %v872_v13  ;;  %v1282_v33 = vsel %vm1254_vm1, %v2748_v25, 0.0 }
 0x11e   : > { %v874_v17 = vadd.f32 %v2624_v35, %v2622_v34  ;;  %v1283_v1 = vadd.f32 %v1282_v33, %v1281_v61 }
 0x11f   : > { %v2763_v9 = vadd.f32 %v2641_v46, %v1202_v26 }
 0x124   : > { %v2628_v38 = vpop.f32.mrf.mxu2  ;;  %v641_v39 = vpop.f32.mrf.mxu0 }
 0x125   : > { %v876_v41 = vpop.f32.mrf.mxu1 }
 0x126   : > { %v877_v62 = vadd.f32 %v876_v41, %v641_v39  ;;  %v2756_v39 = vadd.f32 %v2641_v46, %v1201_v40  ;;  %v1203_v41 = vadd.f32 %v2628_v38, %v874_v17  ;;  %v1178_v40 = vpop.f32.mrf.mxu3  ;;  %v2783_v17 = vld [vmem:[%s3408_s5] sm:$0xff] }
 0x127   : > { %1344 = vmatpush.msrb.mxu3 %v2783_v17 }
 0x128   : > { %v1284_v13 = vsel %vm1254_vm1, %v2756_v39, 0.0  ;;  %v2772_v38 = vadd.f32 %v2641_v46, %v1203_v41 }
 0x129   : > { %v1285_v50 = vadd.f32 %v1284_v13, %v1283_v1 }
 0x12c   : > { %v2630_v42 = vpop.f32.mrf.mxu2  ;;  %v2634_v44 = vpop.f32.mrf.mxu0 }
 0x12d   : > { %v2636_v45 = vpop.f32.mrf.mxu1  ;;  %v1204_v24 = vadd.f32 %v2630_v42, %v877_v62 }
 0x12e   : > { %v879_v34 = vadd.f32 %v2636_v45, %v2634_v44  ;;  %v1286_v44 = vsel %vm1254_vm1, %v2763_v9, 0.0 }
 0x12f   : > { %v2776_v15 = vadd.f32 %v2641_v46, %v1204_v24 }
 0x134   : > { %v2647_v51 = vpop.f32.mrf.mxu2  ;;  %v2657_v54 = vpop.f32.mrf.mxu0 }
 0x135   : > { %v2659_v56 = vpop.f32.mrf.mxu1  ;;  %v1205_v42 = vadd.f32 %v2647_v51, %v879_v34  ;;  %v1288_v51 = vsel %vm1254_vm1, %v2772_v38, 0.0 }
 0x136   : > { %v882_v35 = vadd.f32 %v2659_v56, %v2657_v54 }
 0x137   : > { %v2788_v29 = vadd.f32 %v2641_v46, %v1205_v42 }
 0x139   : > { %v1292_v24 = vsel %vm1254_vm1, %v2788_v29, 0.0 }
 0x13c   : > { %v1156_v4 = vpop.f32.mrf.mxu2  ;;  %v648_v7 = vpop.f32.mrf.mxu0 }
 0x13d   : > { %v883_v11 = vpop.f32.mrf.mxu1  ;;  %v1206_v45 = vadd.f32 %v1156_v4, %v882_v35  ;;  %v1287_v4 = vadd.f32 %v1286_v44, %v1285_v50 }
 0x13e   : > { %v884_v54 = vadd.f32 %v883_v11, %v648_v7  ;;  %v1290_v7 = vsel %vm1254_vm1, %v2776_v15, 0.0 }
 0x13f   : > { %v2794_v11 = vadd.f32 %v2641_v46, %v1206_v45  ;;  %v1289_v55 = vadd.f32 %v1288_v51, %v1287_v4 }
 0x141   : > { %v1291_v34 = vadd.f32 %v1290_v7, %v1289_v55  ;;  %v1294_v61 = vsel %vm1254_vm1, %v2794_v11, 0.0  ;;  %v1357_v7 = vld [vmem:[%s3409_s6] sm:$0xff] }
 0x142   : > { %1377 = vmatpush.msra.mxu3 %v1357_v7 }
 0x144   : > { %v1158_v58 = vpop.f32.mrf.mxu2  ;;  %v651_v49 = vpop.f32.mrf.mxu0 }
 0x145   : > { %v886_v8 = vpop.f32.mrf.mxu1  ;;  %v1207_v27 = vadd.f32 %v1158_v58, %v884_v54 }
 0x146   : > { %v887_v56 = vadd.f32 %v886_v8, %v651_v49 }
 0x147   : > { %v2799_v33 = vadd.f32 %v2641_v46, %v1207_v27 }
 0x14c   : > { %v1161_v10 = vpop.f32.mrf.mxu2  ;;  %v653_v28 = vpop.f32.mrf.mxu0 }
 0x14d   : > { %v888_v63 = vpop.f32.mrf.mxu1  ;;  %v1208_v49 = vadd.f32 %v1161_v10, %v887_v56  ;;  %v1293_v10 = vadd.f32 %v1292_v24, %v1291_v34  ;;  %v1214_v24 = vadd.f32 %v2741_v21, %v2596_v47 }
 0x14e   : > { %v889_v8 = vadd.f32 %v888_v63, %v653_v28  ;;  %v1181_v28 = vpop.f32.mrf.mxu3  ;;  %v1296_v63 = vsel %vm1254_vm1, %v2799_v33, 0.0 }
 0x14f   : > { %v2804_v13 = vadd.f32 %v2641_v46, %v1208_v49  ;;  %v1295_v44 = vadd.f32 %v1294_v61, %v1293_v10  ;;  %v1213_v49 = vadd.f32 %v2707_v32, %v2586_v37  ;;  %v907_v37 = vadd.f32 %v2626_v36, %v2568_v14 }
 0x150   : > { %v2849_v21 = vadd.f32 %v2641_v46, %v1214_v24 }
 0x151   : > { %v1298_v54 = vsel %vm1254_vm1, %v2804_v13, 0.0  ;;  %v1297_v50 = vadd.f32 %v1296_v63, %v1295_v44  ;;  %v2840_v32 = vadd.f32 %v2641_v46, %v1213_v49  ;;  %v1216_v10 = vadd.f32 %v1181_v28, %v907_v37 }
 0x153   : > { %v1299_v27 = vadd.f32 %v1298_v54, %v1297_v50  ;;  %v1308_v36 = vsel %vm1254_vm1, %v2840_v32, 0.0 }
 0x154   : > { %v1163_v19 = vpop.f32.mrf.mxu2  ;;  %v656_v62 = vpop.f32.mrf.mxu0 }
 0x155   : > { %v891_v26 = vpop.f32.mrf.mxu1  ;;  %v1209_v58 = vadd.f32 %v1163_v19, %v889_v8 }
 0x156   : > { %v892_v41 = vadd.f32 %v891_v26, %v656_v62  ;;  %v1212_v62 = vadd.f32 %v2667_v59, %v2582_v30  ;;  %v904_v30 = vadd.f32 %v2618_v31, %v2558_v5  ;;  %v1183_v31 = vpop.f32.mrf.mxu3 }
 0x157   : > { %v2809_v1 = vadd.f32 %v2641_v46, %v1209_v58 }
 0x158   : > { %v2830_v59 = vadd.f32 %v2641_v46, %v1212_v62 }
 0x159   : > { %v1300_v26 = vsel %vm1254_vm1, %v2809_v1, 0.0 }
 0x15a   : > { %v1301_v55 = vadd.f32 %v1300_v26, %v1299_v27  ;;  %v1306_v47 = vsel %vm1254_vm1, %v2830_v59, 0.0 }
 0x15c   : > { %v1166_v35 = vpop.f32.mrf.mxu2  ;;  %v658_v45 = vpop.f32.mrf.mxu0 }
 0x15d   : > { %v1210_v42 = vadd.f32 %v1166_v35, %v892_v41  ;;  %v893_v19 = vpop.f32.mrf.mxu1  ;;  %v1215_v35 = vadd.f32 %v1178_v40, %v904_v30 }
 0x15e   : > { %v894_v51 = vadd.f32 %v893_v19, %v658_v45  ;;  %v1310_v45 = vsel %vm1254_vm1, %v2849_v21, 0.0 }
 0x15f   : > { %v2814_v56 = vadd.f32 %v2641_v46, %v1210_v42  ;;  %v909_v42 = vadd.f32 %v2632_v43, %v2572_v20  ;;  %v2854_v40 = vadd.f32 %v2641_v46, %v1215_v35  ;;  %v2859_v20 = vadd.f32 %v2641_v46, %v1216_v10 }
 0x161   : > { %v1302_v8 = vsel %vm1254_vm1, %v2814_v56, 0.0  ;;  %v1217_v63 = vadd.f32 %v1183_v31, %v909_v42  ;;  %v1312_v19 = vsel %vm1254_vm1, %v2854_v40, 0.0  ;;  %v1314_v50 = vsel %vm1254_vm1, %v2859_v20, 0.0 }
 0x162   : > { %v1303_v34 = vadd.f32 %v1302_v8, %v1301_v55 }
 0x163   : > { %v2864_v28 = vadd.f32 %v2641_v46, %v1217_v63 }
 0x164   : > { %v1168_v4 = vpop.f32.mrf.mxu2 }
 0x165   : > { %v1211_v41 = vadd.f32 %v1168_v4, %v894_v51  ;;  %v1316_v26 = vsel %vm1254_vm1, %v2864_v28, 0.0 }
 0x167   : > { %v2835_v58 = vadd.f32 %v2641_v46, %v1211_v41  ;;  %v2380_v46 = vmov 512.0  }
 0x168   : > { %2368 = vrcp.f32 %v2380_v46 }
 0x169   : > { %v1304_v5 = vsel %vm1254_vm1, %v2835_v58, 0.0 }
 0x16a   : > { %v1305_v61 = vadd.f32 %v1304_v5, %v1303_v34 }
 0x16c   : > { %v1307_v14 = vadd.f32 %v1306_v47, %v1305_v61 }
 0x16e   : > { %v1309_v44 = vadd.f32 %v1308_v36, %v1307_v14  ;;  %v2369_v30 = vpop.eup %2368 }
 0x16f   : > { %v1350_v24 = vmul.f32 512.0, %v2369_v30  ;;  %vm1354_vm2 = vweird.f32 %v2369_v30 }
 0x170   : > { %v1311_v43 = vadd.f32 %v1310_v45, %v1309_v44 }
 0x171   : > { %v1351_v34 = vsub.f32 1.0, %v1350_v24 }
 0x172   : > { %v1313_v54 = vadd.f32 %v1312_v19, %v1311_v43 }
 0x173   : > { %v1352_v37 = vmul.f32 %v2369_v30, %v1351_v34 }
 0x174   : > { %v1315_v62 = vadd.f32 %v1314_v50, %v1313_v54 }
 0x175   : > { %v1353_v35 = vadd.f32 %v2369_v30, %v1352_v37 }
 0x176   : > { %v1317_v51 = vadd.f32 %v1316_v26, %v1315_v62 }
 0x177   : > { %v2873_v5 = vsel %vm1354_vm2, %v2369_v30, %v1353_v35 }
 0x178   : > { %v1318_v27 = vrot.slane %v1317_v51, 4 }
 0x17a   : > { %v1319_v4 = vadd.f32 %v1318_v27, %v1317_v51 }
 0x17c   : > { %v1320_v49 = vrot.slane %v1319_v4, 2 }
 0x17e   : > { %v1321_v8 = vadd.f32 %v1320_v49, %v1319_v4 }
 0x180   : > { %v1322_v41 = vrot.slane %v1321_v8, 1 }
 0x182   : > { %v1323_v55 = vadd.f32 %v1322_v41, %v1321_v8 }
 0x184   : > { %2280 = vmatmul.msk.f32.vlgmr.msrb.gmra.mxu3 %vm1254_vm1, %v1323_v55  ;;  %v3415_v55 = vld [vmem:[#allocation2_spill] sm:$0xff] }
 0x185   : > { %1533 = vmatpush.msrb.mxu3 %v2680_v0 }
 0x187   : > { %1534 = vmatpush.msrb.mxu3 %v2783_v17 }
 0x207   : > { %v1346_v31 = vpop.f32.mrf.mxu3 }
 0x208   : > { %v1356_v61 = vmul.f32 %v2873_v5, %v1346_v31 }
 0x20a   : > { %2281 = vmatmul.msk.f32.vlgmr.msra.gmra.mxu3 %vm1358_vm3, %v1356_v61 }
 0x20b   : > { %1569 = vmatpush.msra.mxu3 %v1357_v7 }
 0x28d   : > { %v1379_v0 = vpop.f32.mrf.mxu3 }
 0x28e   : > { %v2877_v42 = vperm.slane %v1379_v0, 0 }
 0x290   : > { %v2881_v17 = vsub.f32 %v2651_v52, %v2877_v42  ;;  %v2885_v47 = vsub.f32 %v2645_v48, %v2877_v42  ;;  %v2889_v10 = vsub.f32 %v2655_v53, %v2877_v42  ;;  %v2893_v14 = vsub.f32 %v2665_v57, %v2877_v42 }
 0x291   : > { %v2901_v52 = vsub.f32 %v2675_v60, %v2877_v42  ;;  %v2907_v53 = vsub.f32 %v2686_v2, %v2877_v42  ;;  %v2915_v43 = vsub.f32 %v2693_v6, %v2877_v42  ;;  %v2922_v2 = vsub.f32 %v2699_v23, %v2877_v42 }
 0x292   : > { %v1415_v7 = vmul.f32 %v2881_v17, %v2881_v17  ;;  %v1416_v36 = vmul.f32 %v2885_v47, %v2885_v47  ;;  %v1417_v48 = vmul.f32 %v2889_v10, %v2889_v10  ;;  %v1418_v57 = vmul.f32 %v2893_v14, %v2893_v14 }
 0x293   : > { %v1419_v60 = vmul.f32 %v2901_v52, %v2901_v52  ;;  %v1420_v50 = vmul.f32 %v2907_v53, %v2907_v53  ;;  %v2929_v6 = vsub.f32 %v2705_v18, %v2877_v42  ;;  %v1421_v51 = vmul.f32 %v2915_v43, %v2915_v43 }
 0x294   : > { %v1447_v63 = vsel %vm1254_vm1, %v1415_v7, 0.0  ;;  %v1448_v44 = vsel %vm1254_vm1, %v1416_v36, 0.0  ;;  %v1450_v19 = vsel %vm1254_vm1, %v1417_v48, 0.0  ;;  %v1452_v62 = vsel %vm1254_vm1, %v1418_v57, 0.0 }
 0x295   : > { %v1449_v45 = vadd.f32 %v1448_v44, %v1447_v63  ;;  %v1454_v27 = vsel %vm1254_vm1, %v1419_v60, 0.0  ;;  %v2936_v23 = vsub.f32 %v2713_v22, %v2877_v42  ;;  %v1422_v49 = vmul.f32 %v2922_v2, %v2922_v2 }
 0x296   : > { %v1456_v8 = vsel %vm1254_vm1, %v1420_v50, 0.0  ;;  %v2943_v18 = vsub.f32 %v3415_v55, %v2877_v42  ;;  %v1423_v46 = vmul.f32 %v2929_v6, %v2929_v6  ;;  %v1458_v30 = vsel %vm1254_vm1, %v1421_v51, 0.0 }
 0x297   : > { %v1451_v54 = vadd.f32 %v1450_v19, %v1449_v45  ;;  %v2950_v22 = vsub.f32 %v2725_v16, %v2877_v42  ;;  %v1424_v34 = vmul.f32 %v2936_v23, %v2936_v23  ;;  %v1460_v37 = vsel %vm1254_vm1, %v1422_v49, 0.0 }
 0x298   : > { %v2957_v31 = vsub.f32 %v2731_v12, %v2877_v42  ;;  %v1425_v61 = vmul.f32 %v2943_v18, %v2943_v18  ;;  %v1462_v0 = vsel %vm1254_vm1, %v1423_v46, 0.0  ;;  %v2964_v16 = vsub.f32 %v2739_v3, %v2877_v42 }
 0x299   : > { %v1453_v26 = vadd.f32 %v1452_v62, %v1451_v54  ;;  %v1426_v36 = vmul.f32 %v2950_v22, %v2950_v22  ;;  %v1464_v48 = vsel %vm1254_vm1, %v1424_v34, 0.0  ;;  %v2971_v12 = vsub.f32 %v2748_v25, %v2877_v42 }
 0x29a   : > { %v1427_v63 = vmul.f32 %v2957_v31, %v2957_v31  ;;  %v1466_v44 = vsel %vm1254_vm1, %v1425_v61, 0.0  ;;  %v2978_v3 = vsub.f32 %v2756_v39, %v2877_v42  ;;  %v1428_v60 = vmul.f32 %v2964_v16, %v2964_v16 }
 0x29b   : > { %v1455_v4 = vadd.f32 %v1454_v27, %v1453_v26  ;;  %v1468_v19 = vsel %vm1254_vm1, %v1426_v36, 0.0  ;;  %v2985_v25 = vsub.f32 %v2763_v9, %v2877_v42  ;;  %v1429_v50 = vmul.f32 %v2971_v12, %v2971_v12 }
 0x29c   : > { %v1470_v62 = vsel %vm1254_vm1, %v1427_v63, 0.0  ;;  %v2992_v39 = vsub.f32 %v2772_v38, %v2877_v42  ;;  %v1430_v51 = vmul.f32 %v2978_v3, %v2978_v3  ;;  %v1472_v27 = vsel %vm1254_vm1, %v1428_v60, 0.0 }
 0x29d   : > { %v1457_v41 = vadd.f32 %v1456_v8, %v1455_v4  ;;  %v2999_v9 = vsub.f32 %v2776_v15, %v2877_v42  ;;  %v1431_v49 = vmul.f32 %v2985_v25, %v2985_v25  ;;  %v1474_v8 = vsel %vm1254_vm1, %v1429_v50, 0.0 }
 0x29e   : > { %v3006_v38 = vsub.f32 %v2788_v29, %v2877_v42  ;;  %v1432_v55 = vmul.f32 %v2992_v39, %v2992_v39  ;;  %v1476_v46 = vsel %vm1254_vm1, %v1430_v51, 0.0  ;;  %v3013_v15 = vsub.f32 %v2794_v11, %v2877_v42 }
 0x29f   : > { %v1459_v24 = vadd.f32 %v1458_v30, %v1457_v41  ;;  %v1478_v34 = vsel %vm1254_vm1, %v1431_v49, 0.0  ;;  %v3020_v29 = vsub.f32 %v2799_v33, %v2877_v42  ;;  %v3027_v11 = vsub.f32 %v2804_v13, %v2877_v42 }
 0x2a0   : > { %v1480_v61 = vsel %vm1254_vm1, %v1432_v55, 0.0  ;;  %v3034_v33 = vsub.f32 %v2809_v1, %v2877_v42  ;;  %v3041_v13 = vsub.f32 %v2814_v56, %v2877_v42  ;;  %v3048_v1 = vsub.f32 %v2835_v58, %v2877_v42 }
 0x2a1   : > { %v1461_v35 = vadd.f32 %v1460_v37, %v1459_v24  ;;  %v1433_v24 = vmul.f32 %v2999_v9, %v2999_v9  ;;  %v3055_v56 = vsub.f32 %v2830_v59, %v2877_v42  ;;  %v3062_v58 = vsub.f32 %v2840_v32, %v2877_v42 }
 0x2a2   : > { %v3069_v59 = vsub.f32 %v2849_v21, %v2877_v42  ;;  %v3076_v32 = vsub.f32 %v2854_v40, %v2877_v42  ;;  %v3083_v21 = vsub.f32 %v2859_v20, %v2877_v42  ;;  %v3090_v40 = vsub.f32 %v2864_v28, %v2877_v42 }
 0x2a3   : > { %v1463_v7 = vadd.f32 %v1462_v0, %v1461_v35  ;;  %v1434_v35 = vmul.f32 %v3006_v38, %v3006_v38  ;;  %v1482_v36 = vsel %vm1254_vm1, %v1433_v24, 0.0 }
 0x2a4   : > { %v1445_v20 = vmul.f32 %v3083_v21, %v3083_v21 }
 0x2a5   : > { %v1465_v57 = vadd.f32 %v1464_v48, %v1463_v7  ;;  %v1435_v7 = vmul.f32 %v3013_v15, %v3013_v15  ;;  %v1484_v63 = vsel %vm1254_vm1, %v1434_v35, 0.0 }
 0x2a7   : > { %v1467_v45 = vadd.f32 %v1466_v44, %v1465_v57  ;;  %v1436_v57 = vmul.f32 %v3020_v29, %v3020_v29  ;;  %v1486_v60 = vsel %vm1254_vm1, %v1435_v7, 0.0 }
 0x2a9   : > { %v1469_v54 = vadd.f32 %v1468_v19, %v1467_v45  ;;  %v1437_v45 = vmul.f32 %v3027_v11, %v3027_v11  ;;  %v1488_v50 = vsel %vm1254_vm1, %v1436_v57, 0.0 }
 0x2ab   : > { %v1471_v26 = vadd.f32 %v1470_v62, %v1469_v54  ;;  %v1438_v54 = vmul.f32 %v3034_v33, %v3034_v33  ;;  %v1490_v51 = vsel %vm1254_vm1, %v1437_v45, 0.0 }
 0x2ad   : > { %v1473_v4 = vadd.f32 %v1472_v27, %v1471_v26  ;;  %v1439_v26 = vmul.f32 %v3041_v13, %v3041_v13  ;;  %v1492_v49 = vsel %vm1254_vm1, %v1438_v54, 0.0 }
 0x2af   : > { %v1475_v41 = vadd.f32 %v1474_v8, %v1473_v4  ;;  %v1440_v4 = vmul.f32 %v3048_v1, %v3048_v1  ;;  %v1494_v55 = vsel %vm1254_vm1, %v1439_v26, 0.0 }
 0x2b1   : > { %v1477_v30 = vadd.f32 %v1476_v46, %v1475_v41  ;;  %v1441_v41 = vmul.f32 %v3055_v56, %v3055_v56  ;;  %v1496_v24 = vsel %vm1254_vm1, %v1440_v4, 0.0 }
 0x2b3   : > { %v1479_v37 = vadd.f32 %v1478_v34, %v1477_v30  ;;  %v1442_v30 = vmul.f32 %v3062_v58, %v3062_v58  ;;  %v1498_v35 = vsel %vm1254_vm1, %v1441_v41, 0.0 }
 0x2b5   : > { %v1481_v0 = vadd.f32 %v1480_v61, %v1479_v37  ;;  %v1443_v37 = vmul.f32 %v3069_v59, %v3069_v59  ;;  %v1500_v7 = vsel %vm1254_vm1, %v1442_v30, 0.0 }
 0x2b7   : > { %v1483_v48 = vadd.f32 %v1482_v36, %v1481_v0  ;;  %v1444_v0 = vmul.f32 %v3076_v32, %v3076_v32 }
 0x2b9   : > { %v1485_v44 = vadd.f32 %v1484_v63, %v1483_v48  ;;  %v1502_v48 = vsel %vm1254_vm1, %v1443_v37, 0.0  ;;  %v1446_v63 = vmul.f32 %v3090_v40, %v3090_v40  ;;  %v1504_v28 = vsel %vm1254_vm1, %v1444_v0, 0.0 }
 0x2bb   : > { %v1487_v19 = vadd.f32 %v1486_v60, %v1485_v44  ;;  %v1506_v44 = vsel %vm1254_vm1, %v1445_v20, 0.0  ;;  %v1508_v60 = vsel %vm1254_vm1, %v1446_v63, 0.0 }
 0x2bd   : > { %v1489_v62 = vadd.f32 %v1488_v50, %v1487_v19 }
 0x2bf   : > { %v1491_v27 = vadd.f32 %v1490_v51, %v1489_v62 }
 0x2c1   : > { %v1493_v8 = vadd.f32 %v1492_v49, %v1491_v27 }
 0x2c3   : > { %v1495_v46 = vadd.f32 %v1494_v55, %v1493_v8 }
 0x2c5   : > { %v1497_v34 = vadd.f32 %v1496_v24, %v1495_v46 }
 0x2c7   : > { %v1499_v61 = vadd.f32 %v1498_v35, %v1497_v34 }
 0x2c9   : > { %v1501_v36 = vadd.f32 %v1500_v7, %v1499_v61 }
 0x2cb   : > { %v1503_v57 = vadd.f32 %v1502_v48, %v1501_v36 }
 0x2cd   : > { %v1505_v42 = vadd.f32 %v1504_v28, %v1503_v57 }
 0x2cf   : > { %v1507_v45 = vadd.f32 %v1506_v44, %v1505_v42 }
 0x2d1   : > { %v1509_v19 = vadd.f32 %v1508_v60, %v1507_v45 }
 0x2d3   : > { %v1510_v54 = vrot.slane %v1509_v19, 4 }
 0x2d5   : > { %v1511_v50 = vadd.f32 %v1510_v54, %v1509_v19 }
 0x2d7   : > { %v1512_v62 = vrot.slane %v1511_v50, 2 }
 0x2d9   : > { %v1513_v26 = vadd.f32 %v1512_v62, %v1511_v50 }
 0x2db   : > { %v1514_v51 = vrot.slane %v1513_v26, 1 }
 0x2dd   : > { %v1515_v27 = vadd.f32 %v1514_v51, %v1513_v26 }
 0x2df   : > { %2282 = vmatmul.msk.f32.vlgmr.msrb.gmra.mxu3 %vm1254_vm1, %v1515_v27 }
 0x362   : > { %v1536_v4 = vpop.f32.mrf.mxu3 }
 0x363   : > { %v1539_v49 = vmul.f32 %v1536_v4, %v2873_v5 }
 0x365   : > { %v1540_v8 = vadd.f32 1e-05, %v1539_v49 }
 0x367   : > { %2370 = vrsqrt.f32 %v1540_v8  ;;  %vm1547_vm5 = vweird.f32 %v1540_v8 }
 0x36d   : > { %v2371_v41 = vpop.eup %2370 }
 0x36e   : > { %v1542_v55 = vmul.f32 %v2371_v41, %v1540_v8  ;;  %vm1548_vm4 = vweird.f32 %v2371_v41 }
 0x36f   : > { %vm1549_vm6 = vmor %vm1547_vm5, %vm1548_vm4 }
 0x370   : > { %v1543_v46 = vmul.f32 %v2371_v41, %v1542_v55 }
 0x372   : > { %v1544_v30 = vmul.f32 0.5, %v1543_v46 }
 0x374   : > { %v1545_v24 = vsub.f32 1.5, %v1544_v30 }
 0x376   : > { %v1546_v34 = vmul.f32 %v2371_v41, %v1545_v24 }
 0x378   : > { %v1550_v37 = vsel %vm1549_vm6, %v2371_v41, %v1546_v34 }
 0x379   : > { %2283 = vmatmul.msk.f32.vlgmr.msra.gmra.mxu3 %vm1358_vm3, %v1550_v37 }
 0x3fc   : > { %v1571_v35 = vpop.f32.mrf.mxu3 }
 0x3fd   : > { %v1574_v61 = vperm.slane %v1571_v35, 0  ;;  %v3160_v35 = vld [vmem:[%s352_s24] ss:$0 sm:$0xff] }
 0x3ff   : > { %v1575_v0 = vmul.f32 %v1574_v61, %v2881_v17  ;;  %v1576_v5 = vmul.f32 %v1574_v61, %v2885_v47  ;;  %v1577_v7 = vmul.f32 %v1574_v61, %v2889_v10  ;;  %v1578_v36 = vmul.f32 %v1574_v61, %v2893_v14 }
 0x400   : > { %v1579_v20 = vmul.f32 %v1574_v61, %v2901_v52  ;;  %v1580_v48 = vmul.f32 %v1574_v61, %v2907_v53  ;;  %v1581_v57 = vmul.f32 %v1574_v61, %v2915_v43  ;;  %v1582_v63 = vmul.f32 %v1574_v61, %v2922_v2 }
 0x401   : > { %v1583_v28 = vmul.f32 %v1574_v61, %v2929_v6  ;;  %v1584_v42 = vmul.f32 %v1574_v61, %v2936_v23  ;;  %v1585_v17 = vmul.f32 %v1574_v61, %v2943_v18  ;;  %v1586_v47 = vmul.f32 %v1574_v61, %v2950_v22  ;;  %v2364_v18 = vld [vmem:[%s3406_s3] ss:$0 sm:$0xff] }
 0x402   : > { %v1587_v10 = vmul.f32 %v1574_v61, %v2957_v31  ;;  %v1588_v14 = vmul.f32 %v1574_v61, %v2964_v16  ;;  %v1589_v52 = vmul.f32 %v1574_v61, %v2971_v12  ;;  %v1590_v53 = vmul.f32 %v1574_v61, %v2978_v3 }
 0x403   : > { %v1591_v43 = vmul.f32 %v1574_v61, %v2985_v25  ;;  %v1592_v2 = vmul.f32 %v1574_v61, %v2992_v39  ;;  %v1593_v6 = vmul.f32 %v1574_v61, %v2999_v9  ;;  %v1594_v23 = vmul.f32 %v1574_v61, %v3006_v38 }
 0x404   : > { %v1595_v22 = vmul.f32 %v1574_v61, %v3013_v15  ;;  %v1596_v31 = vmul.f32 %v1574_v61, %v3020_v29  ;;  %v1597_v16 = vmul.f32 %v1574_v61, %v3027_v11  ;;  %v1598_v12 = vmul.f32 %v1574_v61, %v3034_v33 }
 0x405   : > { %v1599_v3 = vmul.f32 %v1574_v61, %v3041_v13  ;;  %v1600_v25 = vmul.f32 %v1574_v61, %v3048_v1  ;;  %v1601_v39 = vmul.f32 %v1574_v61, %v3055_v56  ;;  %v1602_v9 = vmul.f32 %v1574_v61, %v3062_v58 }
 0x406   : > { %v1603_v38 = vmul.f32 %v1574_v61, %v3069_v59  ;;  %v1604_v44 = vmul.f32 %v1574_v61, %v3076_v32  ;;  %v1605_v15 = vmul.f32 %v1574_v61, %v3083_v21  ;;  %v1606_v29 = vmul.f32 %v1574_v61, %v3090_v40  ;;  %v3152_v59 = vld [vmem:[%s3407_s4] ss:$0 sm:$0xff] }
 0x407   : > { %v1611_v45 = vmul.f32 %v2364_v18, %v1575_v0  ;;  %v1612_v11 = vmul.f32 %v2364_v18, %v1576_v5  ;;  %v1613_v60 = vmul.f32 %v2364_v18, %v1577_v7  ;;  %v1614_v33 = vmul.f32 %v2364_v18, %v1578_v36 }
 0x408   : > { %v1615_v19 = vmul.f32 %v2364_v18, %v1579_v20  ;;  %v1616_v13 = vmul.f32 %v2364_v18, %v1580_v48  ;;  %v1617_v54 = vmul.f32 %v2364_v18, %v1581_v57  ;;  %v1618_v1 = vmul.f32 %v2364_v18, %v1582_v63 }
 0x409   : > { %v1619_v50 = vmul.f32 %v2364_v18, %v1583_v28  ;;  %v1620_v56 = vmul.f32 %v2364_v18, %v1584_v42  ;;  %v1621_v62 = vmul.f32 %v2364_v18, %v1585_v17  ;;  %v1622_v58 = vmul.f32 %v2364_v18, %v1586_v47 }
 0x40a   : > { %v1623_v32 = vmul.f32 %v2364_v18, %v1587_v10  ;;  %v1624_v21 = vmul.f32 %v2364_v18, %v1588_v14  ;;  %v1625_v40 = vmul.f32 %v2364_v18, %v1589_v52  ;;  %v1626_v26 = vmul.f32 %v2364_v18, %v1590_v53  ;;  %v3178_v53 = vld [vmem:[%s355_s27] ss:$0 sm:$0xff] }
 0x40b   : > { %v1627_v51 = vmul.f32 %v2364_v18, %v1591_v43  ;;  %v1628_v27 = vmul.f32 %v2364_v18, %v1592_v2  ;;  %v1629_v4 = vmul.f32 %v2364_v18, %v1593_v6  ;;  %v1630_v49 = vmul.f32 %v2364_v18, %v1594_v23 }
 0x40c   : > { %v1631_v8 = vmul.f32 %v2364_v18, %v1595_v22  ;;  %v1632_v41 = vmul.f32 %v2364_v18, %v1596_v31  ;;  %v1633_v55 = vmul.f32 %v2364_v18, %v1597_v16  ;;  %v1634_v46 = vmul.f32 %v2364_v18, %v1598_v12 }
 0x40d   : > { %v1635_v30 = vmul.f32 %v2364_v18, %v1599_v3  ;;  %v1636_v24 = vmul.f32 %v2364_v18, %v1600_v25  ;;  %v1637_v34 = vmul.f32 %v2364_v18, %v1601_v39  ;;  %v1647_v37 = vadd.f32 %v3152_v59, %v1611_v45 }
 0x40e   : > { %v1638_v61 = vmul.f32 %v2364_v18, %v1602_v9  ;;  %v1639_v0 = vmul.f32 %v2364_v18, %v1603_v38  ;;  %v1640_v5 = vmul.f32 %v2364_v18, %v1604_v44  ;;  %v1648_v7 = vadd.f32 %v3152_v59, %v1612_v11 }
 0x40f   : > { %v1641_v36 = vmul.f32 %v2364_v18, %v1605_v15  ;;  %v1642_v20 = vmul.f32 %v2364_v18, %v1606_v29  ;;  %v1649_v48 = vadd.f32 %v3152_v59, %v1613_v60  ;;  %v1650_v57 = vadd.f32 %v3152_v59, %v1614_v33 }
 0x410   : > { %v1651_v63 = vadd.f32 %v3152_v59, %v1615_v19  ;;  %v1652_v28 = vadd.f32 %v3152_v59, %v1616_v13  ;;  %v1653_v42 = vadd.f32 %v3152_v59, %v1617_v54  ;;  %v1654_v17 = vadd.f32 %v3152_v59, %v1618_v1 }
 0x411   : > { %v1655_v47 = vadd.f32 %v3152_v59, %v1619_v50  ;;  %v1656_v10 = vadd.f32 %v3152_v59, %v1620_v56  ;;  %v1657_v14 = vadd.f32 %v3152_v59, %v1621_v62  ;;  %v1683_v52 = vmul.f32 %v3160_v35, %v1647_v37 }
 0x412   : > { %v1658_v43 = vadd.f32 %v3152_v59, %v1622_v58  ;;  %v1659_v2 = vadd.f32 %v3152_v59, %v1623_v32  ;;  %v1660_v6 = vadd.f32 %v3152_v59, %v1624_v21  ;;  %v1684_v23 = vmul.f32 %v3160_v35, %v1648_v7 }
 0x413   : > { %v1661_v18 = vadd.f32 %v3152_v59, %v1625_v40  ;;  %v1662_v22 = vadd.f32 %v3152_v59, %v1626_v26  ;;  %v1663_v31 = vadd.f32 %v3152_v59, %v1627_v51  ;;  %v1685_v16 = vmul.f32 %v3160_v35, %v1649_v48 }
 0x414   : > { %v1664_v12 = vadd.f32 %v3152_v59, %v1628_v27  ;;  %v3190_v3 = vadd.f32 %v3152_v59, %v1629_v4  ;;  %v3193_v25 = vadd.f32 %v3152_v59, %v1630_v49  ;;  %v1686_v39 = vmul.f32 %v3160_v35, %v1650_v57 }
 0x415   : > { %v3197_v9 = vadd.f32 %v3152_v59, %v1631_v8  ;;  %v3200_v38 = vadd.f32 %v3152_v59, %v1632_v41  ;;  %v1687_v44 = vmul.f32 %v3160_v35, %v1651_v63  ;;  %v1719_v15 = vadd.f32 %v3178_v53, %v1683_v52 }
 0x416   : > { %v3205_v29 = vadd.f32 %v3152_v59, %v1633_v55  ;;  %v3208_v45 = vadd.f32 %v3152_v59, %v1634_v46  ;;  %v1688_v11 = vmul.f32 %v3160_v35, %v1652_v28  ;;  %v1720_v60 = vadd.f32 %v3178_v53, %v1684_v23 }
 0x417   : > { %v3213_v33 = vadd.f32 %v3152_v59, %v1635_v30  ;;  %v3216_v19 = vadd.f32 %v3152_v59, %v1636_v24  ;;  %v1689_v13 = vmul.f32 %v3160_v35, %v1653_v42  ;;  %v1721_v54 = vadd.f32 %v3178_v53, %v1685_v16 }
 0x418   : > { %v3221_v1 = vadd.f32 %v3152_v59, %v1637_v34  ;;  %v3224_v50 = vadd.f32 %v3152_v59, %v1638_v61  ;;  %v1690_v56 = vmul.f32 %v3160_v35, %v1654_v17  ;;  %v1722_v62 = vadd.f32 %v3178_v53, %v1686_v39 }
 0x419   : > { %v3229_v58 = vadd.f32 %v3152_v59, %v1639_v0  ;;  %v1691_v32 = vmul.f32 %v3160_v35, %v1655_v47  ;;  %v1723_v21 = vadd.f32 %v3178_v53, %v1687_v44  ;;  %v1751_v40 = vmul.f32 0.2, %v1719_v15 }
 0x41a   : > { %v3234_v26 = vadd.f32 %v3152_v59, %v1640_v5  ;;  %v1692_v51 = vmul.f32 %v3160_v35, %v1656_v10  ;;  %v1724_v27 = vadd.f32 %v3178_v53, %v1688_v11  ;;  %v1752_v4 = vmul.f32 0.2, %v1720_v60 }
 0x41b   : > { %v3240_v49 = vadd.f32 %v3152_v59, %v1641_v36  ;;  %v1693_v8 = vmul.f32 %v3160_v35, %v1657_v14  ;;  %v1725_v41 = vadd.f32 %v3178_v53, %v1689_v13  ;;  %v1753_v55 = vmul.f32 0.2, %v1721_v54 }
 0x41c   : > { %v3245_v46 = vadd.f32 %v3152_v59, %v1642_v20  ;;  %v1694_v30 = vmul.f32 %v3160_v35, %v1658_v43  ;;  %v1726_v24 = vadd.f32 %v3178_v53, %v1690_v56  ;;  %v1754_v34 = vmul.f32 0.2, %v1722_v62 }
 0x41d   : > { %v1695_v37 = vmul.f32 %v3160_v35, %v1659_v2  ;;  %v1727_v61 = vadd.f32 %v3178_v53, %v1691_v32  ;;  %v1755_v0 = vmul.f32 0.2, %v1723_v21  ;;  %v1783_v5 = vmax.f32 %v1719_v15, %v1751_v40 }
 0x41e   : > { %v1696_v7 = vmul.f32 %v3160_v35, %v1660_v6  ;;  %v1728_v59 = vadd.f32 %v3178_v53, %v1692_v51  ;;  %v1756_v36 = vmul.f32 0.2, %v1724_v27  ;;  %v1784_v20 = vmax.f32 %v1720_v60, %v1752_v4 }
 0x41f   : > { %v1697_v48 = vmul.f32 %v3160_v35, %v1661_v18  ;;  %v1729_v57 = vadd.f32 %v3178_v53, %v1693_v8  ;;  %v1757_v63 = vmul.f32 0.2, %v1725_v41  ;;  %v1785_v28 = vmax.f32 %v1721_v54, %v1753_v55  ;;  %1815 = vst.msk [vmem:[%s3254_s19] sm:$0xff] %vm1254_vm1, %v1783_v5 }
 0x420   : > { %v1698_v42 = vmul.f32 %v3160_v35, %v1662_v22  ;;  %v3262_v17 = vadd.f32 %v3178_v53, %v1694_v30  ;;  %v1758_v47 = vmul.f32 0.2, %v1726_v24  ;;  %v1786_v10 = vmax.f32 %v1722_v62, %v1754_v34  ;;  %1816 = vst.msk [vmem:[%s3254_s19 + $0x8] sm:$0xff] %vm1254_vm1, %v1784_v20 }
 0x421   : > { %v1699_v14 = vmul.f32 %v3160_v35, %v1663_v31  ;;  %v3266_v52 = vadd.f32 %v3178_v53, %v1695_v37  ;;  %v1759_v43 = vmul.f32 0.2, %v1727_v61  ;;  %v1787_v2 = vmax.f32 %v1723_v21, %v1755_v0  ;;  %1817 = vst.msk [vmem:[%s3254_s19 + $0x10] sm:$0xff] %vm1254_vm1, %v1785_v28 }
 0x422   : > { %v1700_v6 = vmul.f32 %v3160_v35, %v1664_v12  ;;  %v3272_v23 = vadd.f32 %v3178_v53, %v1696_v7  ;;  %v1760_v18 = vmul.f32 0.2, %v1728_v59  ;;  %v1788_v22 = vmax.f32 %v1724_v27, %v1756_v36  ;;  %1818 = vst.msk [vmem:[%s3254_s19 + $0x18] sm:$0xff] %vm1254_vm1, %v1786_v10 }
 0x423   : > { %v1701_v31 = vmul.f32 %v3160_v35, %v3190_v3  ;;  %v3279_v16 = vadd.f32 %v3178_v53, %v1697_v48  ;;  %v1761_v39 = vmul.f32 0.2, %v1729_v57  ;;  %v1789_v44 = vmax.f32 %v1725_v41, %v1757_v63  ;;  %1819 = vst.msk [vmem:[%s3254_s19 + $0x20] sm:$0xff] %vm1254_vm1, %v1787_v2 }
 0x424   : > { %v1702_v12 = vmul.f32 %v3160_v35, %v3193_v25  ;;  %v3286_v15 = vadd.f32 %v3178_v53, %v1698_v42  ;;  %v1762_v11 = vmul.f32 0.2, %v3262_v17  ;;  %v1790_v60 = vmax.f32 %v1726_v24, %v1758_v47  ;;  %1820 = vst.msk [vmem:[%s3254_s19 + $0x28] sm:$0xff] %vm1254_vm1, %v1788_v22 }
 0x425   : > { %v1703_v3 = vmul.f32 %v3160_v35, %v3197_v9  ;;  %v3294_v13 = vadd.f32 %v3178_v53, %v1699_v14  ;;  %v1763_v54 = vmul.f32 0.2, %v3266_v52  ;;  %v1791_v56 = vmax.f32 %v1727_v61, %v1759_v43  ;;  %1821 = vst.msk [vmem:[%s3254_s19 + $0x30] sm:$0xff] %vm1254_vm1, %v1789_v44 }
 0x426   : > { %v1704_v25 = vmul.f32 %v3160_v35, %v3200_v38  ;;  %v1736_v62 = vadd.f32 %v3178_v53, %v1700_v6  ;;  %v1764_v32 = vmul.f32 0.2, %v3272_v23  ;;  %v1792_v21 = vmax.f32 %v1728_v59, %v1760_v18  ;;  %1822 = vst.msk [vmem:[%s3254_s19 + $0x38] sm:$0xff] %vm1254_vm1, %v1790_v60 }
 0x427   : > { %v1705_v9 = vmul.f32 %v3160_v35, %v3205_v29  ;;  %v1737_v40 = vadd.f32 %v3178_v53, %v1701_v31  ;;  %v1765_v51 = vmul.f32 0.2, %v3279_v16  ;;  %v1793_v27 = vmax.f32 %v1729_v57, %v1761_v39  ;;  %1823 = vst.msk [vmem:[%s3254_s19 + $0x40] sm:$0xff] %vm1254_vm1, %v1791_v56 }
 0x428   : > { %v1706_v38 = vmul.f32 %v3160_v35, %v3208_v45  ;;  %v1738_v4 = vadd.f32 %v3178_v53, %v1702_v12  ;;  %v1766_v8 = vmul.f32 0.2, %v3286_v15  ;;  %v1794_v41 = vmax.f32 %v3262_v17, %v1762_v11  ;;  %1824 = vst.msk [vmem:[%s3254_s19 + $0x48] sm:$0xff] %vm1254_vm1, %v1792_v21 }
 0x429   : > { %v1707_v29 = vmul.f32 %v3160_v35, %v3213_v33  ;;  %v1739_v55 = vadd.f32 %v3178_v53, %v1703_v3  ;;  %v1767_v30 = vmul.f32 0.2, %v3294_v13  ;;  %v1795_v24 = vmax.f32 %v3266_v52, %v1763_v54  ;;  %1825 = vst.msk [vmem:[%s3254_s19 + $0x50] sm:$0xff] %vm1254_vm1, %v1793_v27 }
 0x42a   : > { %v1708_v45 = vmul.f32 %v3160_v35, %v3216_v19  ;;  %v1740_v34 = vadd.f32 %v3178_v53, %v1704_v25  ;;  %v1768_v37 = vmul.f32 0.2, %v1736_v62  ;;  %v1796_v61 = vmax.f32 %v3272_v23, %v1764_v32  ;;  %1826 = vst.msk [vmem:[%s3254_s19 + $0x58] sm:$0xff] %vm1254_vm1, %v1794_v41 }
 0x42b   : > { %v1709_v33 = vmul.f32 %v3160_v35, %v3221_v1  ;;  %v1741_v0 = vadd.f32 %v3178_v53, %v1705_v9  ;;  %v1769_v5 = vmul.f32 0.2, %v1737_v40  ;;  %v1797_v7 = vmax.f32 %v3279_v16, %v1765_v51  ;;  %1827 = vst.msk [vmem:[%s3254_s19 + $0x60] sm:$0xff] %vm1254_vm1, %v1795_v24 }
 0x42c   : > { %v1710_v19 = vmul.f32 %v3160_v35, %v3224_v50  ;;  %v1742_v59 = vadd.f32 %v3178_v53, %v1706_v38  ;;  %v1770_v36 = vmul.f32 0.2, %v1738_v4  ;;  %v1798_v20 = vmax.f32 %v3286_v15, %v1766_v8  ;;  %1828 = vst.msk [vmem:[%s3254_s19 + $0x68] sm:$0xff] %vm1254_vm1, %v1796_v61 }
 0x42d   : > { %v1711_v1 = vmul.f32 %v3160_v35, %v3229_v58  ;;  %v1743_v48 = vadd.f32 %v3178_v53, %v1707_v29  ;;  %v1771_v57 = vmul.f32 0.2, %v1739_v55  ;;  %v1799_v63 = vmax.f32 %v3294_v13, %v1767_v30  ;;  %1829 = vst.msk [vmem:[%s3254_s19 + $0x70] sm:$0xff] %vm1254_vm1, %v1797_v7 }
 0x42e   : > { %v1712_v50 = vmul.f32 %v3160_v35, %v3234_v26  ;;  %v1744_v28 = vadd.f32 %v3178_v53, %v1708_v45  ;;  %v1772_v42 = vmul.f32 0.2, %v1740_v34  ;;  %v1800_v17 = vmax.f32 %v1736_v62, %v1768_v37  ;;  %1830 = vst.msk [vmem:[%s3254_s19 + $0x78] sm:$0xff] %vm1254_vm1, %v1798_v20 }
 0x42f   : > { %v1713_v58 = vmul.f32 %v3160_v35, %v3240_v49  ;;  %v1745_v47 = vadd.f32 %v3178_v53, %v1709_v33  ;;  %v1773_v10 = vmul.f32 0.2, %v1741_v0  ;;  %v1801_v14 = vmax.f32 %v1737_v40, %v1769_v5  ;;  %1831 = vst.msk [vmem:[%s3254_s19 + $0x80] sm:$0xff] %vm1254_vm1, %v1799_v63 }
 0x430   : > { %v1714_v26 = vmul.f32 %v3160_v35, %v3245_v46  ;;  %v1746_v52 = vadd.f32 %v3178_v53, %v1710_v19  ;;  %v1774_v43 = vmul.f32 0.2, %v1742_v59  ;;  %v1802_v2 = vmax.f32 %v1738_v4, %v1770_v36  ;;  %1832 = vst.msk [vmem:[%s3254_s19 + $0x88] sm:$0xff] %vm1254_vm1, %v1800_v17 }
 0x431   : > { %v1747_v49 = vadd.f32 %v3178_v53, %v1711_v1  ;;  %v1775_v6 = vmul.f32 0.2, %v1743_v48  ;;  %v1803_v23 = vmax.f32 %v1739_v55, %v1771_v57  ;;  %v1748_v18 = vadd.f32 %v3178_v53, %v1712_v50  ;;  %1833 = vst.msk [vmem:[%s3254_s19 + $0x90] sm:$0xff] %vm1254_vm1, %v1801_v14 }
 0x432   : > { %v1776_v22 = vmul.f32 0.2, %v1744_v28  ;;  %v1804_v35 = vmax.f32 %v1740_v34, %v1772_v42  ;;  %v1749_v46 = vadd.f32 %v3178_v53, %v1713_v58  ;;  %v1777_v31 = vmul.f32 0.2, %v1745_v47  ;;  %1834 = vst.msk [vmem:[%s3254_s19 + $0x98] sm:$0xff] %vm1254_vm1, %v1802_v2 }
 0x433   : > { %v1805_v16 = vmax.f32 %v1741_v0, %v1773_v10  ;;  %v1750_v39 = vadd.f32 %v3178_v53, %v1714_v26  ;;  %v1778_v44 = vmul.f32 0.2, %v1746_v52  ;;  %v1806_v12 = vmax.f32 %v1742_v59, %v1774_v43  ;;  %1835 = vst.msk [vmem:[%s3254_s19 + $0xa0] sm:$0xff] %vm1254_vm1, %v1803_v23 }
 0x434   : > { %v1779_v15 = vmul.f32 0.2, %v1747_v49  ;;  %v1807_v11 = vmax.f32 %v1743_v48, %v1775_v6  ;;  %v1780_v60 = vmul.f32 0.2, %v1748_v18  ;;  %v1808_v3 = vmax.f32 %v1744_v28, %v1776_v22  ;;  %1836 = vst.msk [vmem:[%s3254_s19 + $0xa8] sm:$0xff] %vm1254_vm1, %v1804_v35 }
 0x435   : > { %v1781_v13 = vmul.f32 0.2, %v1749_v46  ;;  %v1809_v53 = vmax.f32 %v1745_v47, %v1777_v31  ;;  %1837 = vst.msk [vmem:[%s3254_s19 + $0xb0] sm:$0xff] %vm1254_vm1, %v1805_v16  ;;  %v1782_v54 = vmul.f32 0.2, %v1750_v39  ;;  %v1810_v56 = vmax.f32 %v1746_v52, %v1778_v44 }
 0x436   : > { %1838 = vst.msk [vmem:[%s3254_s19 + $0xb8] sm:$0xff] %vm1254_vm1, %v1806_v12  ;;  %v1811_v25 = vmax.f32 %v1747_v49, %v1779_v15  ;;  %v1812_v62 = vmax.f32 %v1748_v18, %v1780_v60 }
 0x437   : > { %1839 = vst.msk [vmem:[%s3254_s19 + $0xc0] sm:$0xff] %vm1254_vm1, %v1807_v11  ;;  %v1813_v32 = vmax.f32 %v1749_v46, %v1781_v13  ;;  %v1814_v21 = vmax.f32 %v1750_v39, %v1782_v54 }
 0x438   : > { %1840 = vst.msk [vmem:[%s3254_s19 + $0xc8] sm:$0xff] %vm1254_vm1, %v1808_v3 }
 0x439   : > { %1841 = vst.msk [vmem:[%s3254_s19 + $0xd0] sm:$0xff] %vm1254_vm1, %v1809_v53 }
 0x43a   : > { %1842 = vst.msk [vmem:[%s3254_s19 + $0xd8] sm:$0xff] %vm1254_vm1, %v1810_v56 }
 0x43b   : > { %1843 = vst.msk [vmem:[%s3254_s19 + $0xe0] sm:$0xff] %vm1254_vm1, %v1811_v25 }
 0x43c   : > { %1844 = vst.msk [vmem:[%s3254_s19 + $0xe8] sm:$0xff] %vm1254_vm1, %v1812_v62 }
 0x43d   : > { %1845 = vst.msk [vmem:[%s3254_s19 + $0xf0] sm:$0xff] %vm1254_vm1, %v1813_v32 }
 0x43e   : > { %1846 = vst.msk [vmem:[%s3254_s19 + $0xf8] sm:$0xff] %vm1254_vm1, %v1814_v21 }
 0x43f PF: > { %s19_s30 = sadd.s32 1, %s2378_s30  }
 0x440   : > { %p16_p4 = scmp.ge.s32.totalorder %s19_s30, 4  }
 0x442   :  { %18 = sbr.rel (!%p16_p4) target bundleno = 1 (0x1), region = 96 }

// kernel: up_forward.3
= control target key start
LH: loop header
LB: loop body
LE: loop exit
PB: predicated region body
PF: predicated region fallthrough
CT: control target
= control target key end

     0   :  { %s2980_s21 = smov 0   ;;  %s4104_s0 = inlined_call_operand.vmem [shape: bf16[2,18,16,48], index: 0, kind: input, shape index: {}]   ;;  %s4105_s1 = inlined_call_operand.vmem [shape: bf16[3,48,16], index: 1, kind: input, shape index: {}]   ;;  %s4106_s2 = inlined_call_operand.vmem [shape: f32[1,16], index: 2, kind: input, shape index: {}]   ;;  %s4107_s3 = inlined_call_operand.vmem [shape: f32[1,16], index: 3, kind: input, shape index: {}]   ;;  %s4108_s4 = inlined_call_operand.vmem [shape: f32[1,16], index: 4, kind: input, shape index: {}]   ;;  %s4109_s5 = inlined_call_operand.vmem [shape: f32[16,8], index: 5, kind: input, shape index: {}]   ;;  %s4110_s6 = inlined_call_operand.vmem [shape: f32[8,16], index: 6, kind: input, shape index: {}]   ;;  %s4111_s7 = inlined_call_operand.vmem [shape: f32[2,1,16], index: 7, kind: input, shape index: {}]   ;;  %s4112_s8 = inlined_call_operand.vmem [shape: f32[2,1,16], index: 8, kind: input, shape index: {}]   ;;  %s4113_s9 = inlined_call_operand.vmem [shape: bf16[2,16,16,16], index: 9, kind: input, shape index: {}]   ;;  %s4114_s10 = inlined_call_operand.vmem [shape: bf16[16,16], index: 10, kind: input, shape index: {}]   ;;  %s4115_s11 = inlined_call_operand.vmem [shape: f32[1,16], index: 11, kind: input, shape index: {}]   ;;  %s4116_s12 = inlined_call_operand.vmem [shape: f32[2,16,16,16], index: 12, kind: output, shape index: {}]  }
   0x1 LB: > { %s2358_s22 = sadd.s32 4294967295, %s2912_s21   ;;  %p2362_p0 = scmp.ge.s32.totalorder %s2912_s21, 1  ;;  %s2912_s21 = sphi %s2980_s21, %s22_s21  }
   0x2   : > { %p388_p1 = scmp.lt.s32.totalorder %s2912_s21, 3 }
   0x4   : > { %p389_p2 = pnand %p2362_p0, %p388_p1 }
   0x5   : > { %p441_p3 = scmp.lt.s32.totalorder (!%p389_p2), %s2358_s22, 1 }
   0x6   : > { %392 = sbr.rel (%p389_p2) target bundleno = 1305 (0x519), region = 68 }
   0xb   : > { %v2849_v0 = vld [vmem:[%s4105_s1 + $0x28] sm:$0xff]  ;;  %v2830_v1 = vld [vmem:[%s4105_s1 + $0x10] sm:$0xff]  ;;  %v2868_v2 = vld [vmem:[%s4105_s1 + $0x40] sm:$0xff]  ;;  %s4118_s22 = smov (!%p441_p3, %s2358_s22), 1  ;;  %vm639_vm0 = vcmask 392192   ;;  %vm1355_vm1 = vcmask 130048  }
   0xc   : > { %693 = vmatpush.bf16.msra.mxu0 %v2849_v0  ;;  %928 = vmatpush.bf16.msra.mxu1 %v2830_v1  ;;  %v2848_v3 = vld [vmem:[%s4105_s1 + $0x20] sm:$0xff]  ;;  %v2829_v4 = vld [vmem:[%s4105_s1 + $0x8] sm:$0xff]  ;;  %v2867_v5 = vld [vmem:[%s4105_s1 + $0x38] sm:$0xff]  ;;  %s2886_s17 = smul.u32 144, %s4118_s22  ;;  %vm1459_vm3 = vcmask 64512   ;;  %s2810_s23 = sshll.u32 %s4118_s22, 7 }
   0xd   : > { %1203 = vmatpush.bf16.msra.mxu2 %v2868_v2  ;;  %v2847_v6 = vld [vmem:[%s4105_s1 + $0x18] sm:$0xff]  ;;  %v2828_v7 = vld [vmem:[%s4105_s1] sm:$0xff]  ;;  %v2866_v8 = vld [vmem:[%s4105_s1 + $0x30] sm:$0xff]  ;;  %s448_s29 = scalar_lea.vmem %s4111_s7, %s4118_s22  ;;  %s451_s14 = scalar_lea.vmem %s4112_s8, %s4118_s22 }
   0xe   : > { %s3018_s26 = scalar_lea.vmem %s4104_s0, %s2886_s17  ;;  %v1426_v33 = vld [vmem:[%s4109_s5 + $0x8] sm:$0xff]  ;;  %s2811_s19 = sshll.u32 %s4118_s22, 8 }
   0xf   : > { %v2831_v9 = vld [vmem:[%s3018_s26 + $0x8] sm:$0xff]  ;;  %v2812_v10 = vld [vmem:[%s3018_s26] sm:$0xff]  ;;  %v2850_v11 = vld [vmem:[%s3018_s26 + $0x10] sm:$0xff]  ;;  %1634 = vmatpush.msra.mxu3 %v1426_v33  ;;  %s3739_s25 = scalar_lea.vmem %s4116_s12, %s2811_s19 }
  0x10   : > { %694 = vmatpush.bf16.msra.mxu0 %v2848_v3  ;;  %929 = vmatpush.bf16.msra.mxu1 %v2829_v4  ;;  %v2832_v12 = vld [vmem:[%s3018_s26 + $0x10] sm:$0xff]  ;;  %v2813_v13 = vld [vmem:[%s3018_s26 + $0x8] sm:$0xff]  ;;  %v2851_v14 = vld [vmem:[%s3018_s26 + $0x18] sm:$0xff] }
  0x11   : > { %1204 = vmatpush.bf16.msra.mxu2 %v2867_v5  ;;  %v2833_v15 = vld [vmem:[%s3018_s26 + $0x18] sm:$0xff]  ;;  %v2814_v16 = vld [vmem:[%s3018_s26 + $0x10] sm:$0xff]  ;;  %v2852_v17 = vld [vmem:[%s3018_s26 + $0x20] sm:$0xff] }
  0x12   : > { %v2834_v18 = vld [vmem:[%s3018_s26 + $0x20] sm:$0xff]  ;;  %v2815_v19 = vld [vmem:[%s3018_s26 + $0x18] sm:$0xff]  ;;  %v2853_v20 = vld [vmem:[%s3018_s26 + $0x28] sm:$0xff] }
  0x13   : > { %v2835_v21 = vld [vmem:[%s3018_s26 + $0x28] sm:$0xff]  ;;  %v2816_v22 = vld [vmem:[%s3018_s26 + $0x20] sm:$0xff]  ;;  %v2854_v23 = vld [vmem:[%s3018_s26 + $0x30] sm:$0xff] }
  0x14   : > { %695 = vmatpush.bf16.msra.mxu0 %v2847_v6  ;;  %930 = vmatpush.bf16.msra.mxu1 %v2828_v7  ;;  %v2836_v24 = vld [vmem:[%s3018_s26 + $0x30] sm:$0xff]  ;;  %v2817_v25 = vld [vmem:[%s3018_s26 + $0x28] sm:$0xff]  ;;  %v2855_v26 = vld [vmem:[%s3018_s26 + $0x38] sm:$0xff] }
  0x15   : > { %1205 = vmatpush.bf16.msra.mxu2 %v2866_v8  ;;  %v2837_v27 = vld [vmem:[%s3018_s26 + $0x38] sm:$0xff]  ;;  %v2818_v28 = vld [vmem:[%s3018_s26 + $0x30] sm:$0xff]  ;;  %v2856_v29 = vld [vmem:[%s3018_s26 + $0x40] sm:$0xff] }
  0x16   : > { %v2838_v30 = vld [vmem:[%s3018_s26 + $0x40] sm:$0xff]  ;;  %v2819_v31 = vld [vmem:[%s3018_s26 + $0x38] sm:$0xff]  ;;  %v2857_v32 = vld [vmem:[%s3018_s26 + $0x48] sm:$0xff] }
  0x17   : > { %2482 = vmatmul.msk.bf16.vlgmr.msra.gmra.mxu0 %vm639_vm0, %v2831_v9  ;;  %2574 = vmatmul.msk.bf16.vlgmr.msra.gmra.mxu1 %vm639_vm0, %v2812_v10  ;;  %v2839_v34 = vld [vmem:[%s3018_s26 + $0x48] sm:$0xff]  ;;  %v2820_v35 = vld [vmem:[%s3018_s26 + $0x40] sm:$0xff]  ;;  %v2858_v38 = vld [vmem:[%s3018_s26 + $0x50] sm:$0xff] }
  0x18   : > { %2704 = vmatmul.msk.bf16.vlgmr.msra.gmra.mxu2 %vm639_vm0, %v2850_v11  ;;  %1444 = vmatpush.msrb.mxu0 %v1426_v33  ;;  %v2840_v46 = vld [vmem:[%s3018_s26 + $0x50] sm:$0xff]  ;;  %v2821_v47 = vld [vmem:[%s3018_s26 + $0x48] sm:$0xff]  ;;  %v2859_v51 = vld [vmem:[%s3018_s26 + $0x58] sm:$0xff] }
  0x19   : > { %v2841_v59 = vld [vmem:[%s3018_s26 + $0x58] sm:$0xff]  ;;  %v2822_v60 = vld [vmem:[%s3018_s26 + $0x50] sm:$0xff]  ;;  %v2860_v0 = vld [vmem:[%s3018_s26 + $0x60] sm:$0xff] }
  0x1a   : > { %v2842_v8 = vld [vmem:[%s3018_s26 + $0x60] sm:$0xff]  ;;  %v2823_v9 = vld [vmem:[%s3018_s26 + $0x58] sm:$0xff]  ;;  %v2825_v33 = vld [vmem:[%s3018_s26 + $0x68] sm:$0xff] }
  0x27   : > { %2483 = vmatmul.msk.bf16.gmra.mxu0 %vm639_vm0, %v2832_v12  ;;  %2575 = vmatmul.msk.bf16.gmra.mxu1 %vm639_vm0, %v2813_v13  ;;  %v2861_v13 = vld [vmem:[%s3018_s26 + $0x68] sm:$0xff] }
  0x28   : > { %2705 = vmatmul.msk.bf16.gmra.mxu2 %vm639_vm0, %v2851_v14 }
  0x37   : > { %2484 = vmatmul.msk.bf16.gmra.mxu0 %vm639_vm0, %v2833_v15  ;;  %2576 = vmatmul.msk.bf16.gmra.mxu1 %vm639_vm0, %v2814_v16 }
  0x38   : > { %2706 = vmatmul.msk.bf16.gmra.mxu2 %vm639_vm0, %v2852_v17 }
  0x47   : > { %2485 = vmatmul.msk.bf16.gmra.mxu0 %vm639_vm0, %v2834_v18  ;;  %2577 = vmatmul.msk.bf16.gmra.mxu1 %vm639_vm0, %v2815_v19 }
  0x48   : > { %2707 = vmatmul.msk.bf16.gmra.mxu2 %vm639_vm0, %v2853_v20 }
  0x57   : > { %2486 = vmatmul.msk.bf16.gmra.mxu0 %vm639_vm0, %v2835_v21  ;;  %2578 = vmatmul.msk.bf16.gmra.mxu1 %vm639_vm0, %v2816_v22  ;;  %v2843_v21 = vld [vmem:[%s3018_s26 + $0x68] sm:$0xff]  ;;  %v2824_v22 = vld [vmem:[%s3018_s26 + $0x60] sm:$0xff] }
  0x58   : > { %2708 = vmatmul.msk.bf16.gmra.mxu2 %vm639_vm0, %v2854_v23 }
  0x67   : > { %2487 = vmatmul.msk.bf16.gmra.mxu0 %vm639_vm0, %v2836_v24  ;;  %2579 = vmatmul.msk.bf16.gmra.mxu1 %vm639_vm0, %v2817_v25 }
  0x68   : > { %2709 = vmatmul.msk.bf16.gmra.mxu2 %vm639_vm0, %v2855_v26  ;;  %v2862_v26 = vld [vmem:[%s3018_s26 + $0x70] sm:$0xff] }
  0x77   : > { %2488 = vmatmul.msk.bf16.gmra.mxu0 %vm639_vm0, %v2837_v27  ;;  %2580 = vmatmul.msk.bf16.gmra.mxu1 %vm639_vm0, %v2818_v28 }
  0x78   : > { %2710 = vmatmul.msk.bf16.gmra.mxu2 %vm639_vm0, %v2856_v29 }
  0x87   : > { %2489 = vmatmul.msk.bf16.gmra.mxu0 %vm639_vm0, %v2838_v30  ;;  %2581 = vmatmul.msk.bf16.gmra.mxu1 %vm639_vm0, %v2819_v31 }
  0x88   : > { %2711 = vmatmul.msk.bf16.gmra.mxu2 %vm639_vm0, %v2857_v32  ;;  %v2844_v32 = vld [vmem:[%s3018_s26 + $0x70] sm:$0xff] }
  0x94   : > { %v697_v36 = vpop.f32.mrf.mxu0  ;;  %v932_v37 = vpop.f32.mrf.mxu1 }
  0x95   : > { %v933_v39 = vadd.f32 %v932_v37, %v697_v36  ;;  %v2863_v37 = vld [vmem:[%s3018_s26 + $0x78] sm:$0xff] }
  0x97   : > { %2490 = vmatmul.msk.bf16.gmra.mxu0 %vm639_vm0, %v2839_v34  ;;  %2582 = vmatmul.msk.bf16.gmra.mxu1 %vm639_vm0, %v2820_v35 }
  0x98   : > { %2712 = vmatmul.msk.bf16.gmra.mxu2 %vm639_vm0, %v2858_v38 }
  0x9b   : > { %v1207_v40 = vpop.f32.mrf.mxu2 }
  0x9c   : > { %v3080_v41 = vadd.f32 %v1207_v40, %v933_v39  ;;  %v699_v42 = vpop.f32.mrf.mxu0  ;;  %v934_v43 = vpop.f32.mrf.mxu1 }
  0x9d   : > { %v935_v44 = vadd.f32 %v934_v43, %v699_v42 }
  0xa3   : > { %v1209_v45 = vpop.f32.mrf.mxu2 }
  0xa4   : > { %v3084_v48 = vadd.f32 %v1209_v45, %v935_v44  ;;  %v702_v49 = vpop.f32.mrf.mxu0  ;;  %v937_v50 = vpop.f32.mrf.mxu1 }
  0xa5   : > { %v938_v52 = vadd.f32 %v937_v50, %v702_v49 }
  0xa7   : > { %2491 = vmatmul.msk.bf16.gmra.mxu0 %vm639_vm0, %v2840_v46  ;;  %2583 = vmatmul.msk.bf16.gmra.mxu1 %vm639_vm0, %v2821_v47  ;;  %v2845_v46 = vld [vmem:[%s3018_s26 + $0x78] sm:$0xff]  ;;  %v2826_v47 = vld [vmem:[%s3018_s26 + $0x70] sm:$0xff] }
  0xa8   : > { %2713 = vmatmul.msk.bf16.gmra.mxu2 %vm639_vm0, %v2859_v51 }
  0xab   : > { %v1212_v53 = vpop.f32.mrf.mxu2 }
  0xac   : > { %v3090_v54 = vadd.f32 %v1212_v53, %v938_v52  ;;  %v704_v55 = vpop.f32.mrf.mxu0  ;;  %v939_v56 = vpop.f32.mrf.mxu1  ;;  %v2864_v52 = vld [vmem:[%s3018_s26 + $0x80] sm:$0xff] }
  0xad   : > { %v940_v57 = vadd.f32 %v939_v56, %v704_v55 }
  0xb3   : > { %v1214_v58 = vpop.f32.mrf.mxu2 }
  0xb4   : > { %v3094_v61 = vadd.f32 %v1214_v58, %v940_v57  ;;  %v707_v62 = vpop.f32.mrf.mxu0  ;;  %v942_v63 = vpop.f32.mrf.mxu1 }
  0xb5   : > { %v943_v1 = vadd.f32 %v942_v63, %v707_v62  ;;  %v2846_v62 = vld [vmem:[%s3018_s26 + $0x80] sm:$0xff]  ;;  %v2827_v63 = vld [vmem:[%s3018_s26 + $0x78] sm:$0xff] }
  0xb7   : > { %2492 = vmatmul.msk.bf16.gmra.mxu0 %vm639_vm0, %v2841_v59  ;;  %2584 = vmatmul.msk.bf16.gmra.mxu1 %vm639_vm0, %v2822_v60 }
  0xb8   : > { %2714 = vmatmul.msk.bf16.gmra.mxu2 %vm639_vm0, %v2860_v0 }
  0xbb   : > { %v1217_v2 = vpop.f32.mrf.mxu2 }
  0xbc   : > { %v3100_v3 = vadd.f32 %v1217_v2, %v943_v1  ;;  %v709_v4 = vpop.f32.mrf.mxu0  ;;  %v944_v5 = vpop.f32.mrf.mxu1 }
  0xbd   : > { %v945_v6 = vadd.f32 %v944_v5, %v709_v4  ;;  %v2865_v4 = vld [vmem:[%s3018_s26 + $0x88] sm:$0xff]  ;;  %s3648_s26 = scalar_lea.vmem %s4113_s9, %s2810_s23 }
  0xc3   : > { %v1219_v7 = vpop.f32.mrf.mxu2 }
  0xc4   : > { %v3104_v10 = vadd.f32 %v1219_v7, %v945_v6  ;;  %v712_v11 = vpop.f32.mrf.mxu0  ;;  %v947_v12 = vpop.f32.mrf.mxu1  ;;  %v1425_v6 = vld [vmem:[%s4109_s5] sm:$0xff] }
  0xc5   : > { %v948_v14 = vadd.f32 %v947_v12, %v712_v11  ;;  %v1458_v7 = vld [vmem:[%s4110_s6] sm:$0xff]  ;;  %1445 = vmatpush.msrb.mxu0 %v1425_v6  ;;  %1635 = vmatpush.msra.mxu3 %v1425_v6 }
  0xc6   : > { %1478 = vmatpush.msrb.mxu1 %v1458_v7 }
  0xc7   : > { %2493 = vmatmul.msk.bf16.gmra.mxu0 %vm639_vm0, %v2842_v8  ;;  %2585 = vmatmul.msk.bf16.gmra.mxu1 %vm639_vm0, %v2823_v9 }
  0xc8   : > { %2715 = vmatmul.msk.bf16.gmra.mxu2 %vm639_vm0, %v2861_v13  ;;  %1670 = vmatpush.msrb.mxu3 %v1458_v7 }
  0xcb   : > { %v1222_v15 = vpop.f32.mrf.mxu2 }
  0xcc   : > { %v3110_v16 = vadd.f32 %v1222_v15, %v948_v14  ;;  %v714_v17 = vpop.f32.mrf.mxu0  ;;  %v949_v18 = vpop.f32.mrf.mxu1 }
  0xcd   : > { %v950_v19 = vadd.f32 %v949_v18, %v714_v17 }
  0xd3   : > { %v1224_v20 = vpop.f32.mrf.mxu2 }
  0xd4   : > { %v3114_v23 = vadd.f32 %v1224_v20, %v950_v19  ;;  %v3116_v24 = vpop.f32.mrf.mxu0  ;;  %v3118_v25 = vpop.f32.mrf.mxu1 }
  0xd7   : > { %2494 = vmatmul.msk.bf16.gmra.mxu0 %vm639_vm0, %v2843_v21  ;;  %2586 = vmatmul.msk.bf16.gmra.mxu1 %vm639_vm0, %v2824_v22 }
  0xd8   : > { %2716 = vmatmul.msk.bf16.gmra.mxu2 %vm639_vm0, %v2862_v26 }
  0xdb   : > { %v3124_v27 = vpop.f32.mrf.mxu2 }
  0xdc   : > { %v719_v28 = vpop.f32.mrf.mxu0  ;;  %v954_v29 = vpop.f32.mrf.mxu1 }
  0xdd   : > { %v955_v30 = vadd.f32 %v954_v29, %v719_v28 }
  0xe3   : > { %v1229_v31 = vpop.f32.mrf.mxu2 }
  0xe4   : > { %v3128_v34 = vadd.f32 %v1229_v31, %v955_v30  ;;  %v722_v35 = vpop.f32.mrf.mxu0  ;;  %v957_v36 = vpop.f32.mrf.mxu1 }
  0xe5   : > { %v958_v38 = vadd.f32 %v957_v36, %v722_v35 }
  0xe7   : > { %2495 = vmatmul.msk.bf16.gmra.mxu0 %vm639_vm0, %v2844_v32  ;;  %2587 = vmatmul.msk.bf16.gmra.mxu1 %vm639_vm0, %v2825_v33 }
  0xe8   : > { %2717 = vmatmul.msk.bf16.gmra.mxu2 %vm639_vm0, %v2863_v37 }
  0xeb   : > { %v1232_v39 = vpop.f32.mrf.mxu2 }
  0xec   : > { %v3134_v40 = vadd.f32 %v1232_v39, %v958_v38  ;;  %v724_v42 = vpop.f32.mrf.mxu0  ;;  %v959_v43 = vpop.f32.mrf.mxu1 }
  0xed   : > { %v960_v44 = vadd.f32 %v959_v43, %v724_v42 }
  0xf3   : > { %v1234_v45 = vpop.f32.mrf.mxu2 }
  0xf4   : > { %v3138_v49 = vadd.f32 %v1234_v45, %v960_v44  ;;  %v727_v50 = vpop.f32.mrf.mxu0  ;;  %v962_v51 = vpop.f32.mrf.mxu1 }
  0xf5   : > { %v963_v53 = vadd.f32 %v962_v51, %v727_v50 }
  0xf7   : > { %2496 = vmatmul.msk.bf16.gmra.mxu0 %vm639_vm0, %v2845_v46  ;;  %2588 = vmatmul.msk.bf16.gmra.mxu1 %vm639_vm0, %v2826_v47 }
  0xf8   : > { %2718 = vmatmul.msk.bf16.gmra.mxu2 %vm639_vm0, %v2864_v52 }
  0xfb   : > { %v1237_v55 = vpop.f32.mrf.mxu2 }
  0xfc   : > { %v3144_v56 = vadd.f32 %v1237_v55, %v963_v53  ;;  %v729_v57 = vpop.f32.mrf.mxu0  ;;  %v964_v58 = vpop.f32.mrf.mxu1 }
  0xfd   : > { %v965_v59 = vadd.f32 %v964_v58, %v729_v57 }
 0x103   : > { %v1239_v60 = vpop.f32.mrf.mxu2 }
 0x104   : > { %v3148_v0 = vadd.f32 %v1239_v60, %v965_v59  ;;  %v732_v1 = vpop.f32.mrf.mxu0  ;;  %v967_v2 = vpop.f32.mrf.mxu1 }
 0x105   : > { %v968_v5 = vadd.f32 %v967_v2, %v732_v1 }
 0x107   : > { %2497 = vmatmul.msk.bf16.gmra.mxu0 %vm639_vm0, %v2846_v62  ;;  %2589 = vmatmul.msk.bf16.gmra.mxu1 %vm639_vm0, %v2827_v63  ;;  %v3195_v63 = vld [vmem:[%s4106_s2] ss:$0 sm:$0xff] }
 0x108   : > { %2719 = vmatmul.msk.bf16.gmra.mxu2 %vm639_vm0, %v2865_v4  ;;  %v3203_v4 = vadd.f32 %v3195_v63, %v3084_v48  ;;  %v3211_v6 = vadd.f32 %v3195_v63, %v3090_v54  ;;  %v3227_v54 = vadd.f32 %v3195_v63, %v3100_v3 }
 0x10a   : > { %v1357_v7 = vsel %vm1355_vm1, %v3203_v4, 0.0  ;;  %v1363_v3 = vsel %vm1355_vm1, %v3227_v54, 0.0 }
 0x10b   : > { %v1242_v8 = vpop.f32.mrf.mxu2 }
 0x10c   : > { %v3160_v9 = vadd.f32 %v1242_v8, %v968_v5  ;;  %v734_v11 = vpop.f32.mrf.mxu0  ;;  %v969_v12 = vpop.f32.mrf.mxu1  ;;  %v3207_v5 = vadd.f32 %v3195_v63, %v3080_v41  ;;  %v3217_v8 = vadd.f32 %v3195_v63, %v3094_v61  ;;  %v1359_v41 = vsel %vm1355_vm1, %v3211_v6, 0.0 }
 0x10d   : > { %v970_v13 = vadd.f32 %v969_v12, %v734_v11  ;;  %v953_v12 = vadd.f32 %v3118_v25, %v3116_v24 }
 0x10e   : > { %v1356_v48 = vsel %vm1355_vm1, %v3207_v5, 0.0 }
 0x10f   : > { %v1358_v61 = vadd.f32 %v1357_v7, %v1356_v48  ;;  %v1295_v24 = vadd.f32 %v3124_v27, %v953_v12  ;;  %v3289_v12 = vadd.f32 %v3195_v63, %v3148_v0 }
 0x113   : > { %v1244_v14 = vpop.f32.mrf.mxu2 }
 0x114   : > { %v3162_v15 = vadd.f32 %v1244_v14, %v970_v13  ;;  %v737_v17 = vpop.f32.mrf.mxu0  ;;  %v972_v18 = vpop.f32.mrf.mxu1 }
 0x115   : > { %v973_v19 = vadd.f32 %v972_v18, %v737_v17  ;;  %v1361_v17 = vsel %vm1355_vm1, %v3217_v8, 0.0  ;;  %v3239_v18 = vadd.f32 %v3195_v63, %v3104_v10 }
 0x11b   : > { %v1247_v20 = vpop.f32.mrf.mxu2 }
 0x11c   : > { %v3164_v21 = vadd.f32 %v1247_v20, %v973_v19  ;;  %v739_v22 = vpop.f32.mrf.mxu0  ;;  %v974_v26 = vpop.f32.mrf.mxu1  ;;  %v1360_v19 = vadd.f32 %v1359_v41, %v1358_v61  ;;  %v3245_v20 = vadd.f32 %v3195_v63, %v3110_v16 }
 0x11d   : > { %v975_v28 = vadd.f32 %v974_v26, %v739_v22  ;;  %v1365_v22 = vsel %vm1355_vm1, %v3239_v18, 0.0  ;;  %v3252_v26 = vadd.f32 %v3195_v63, %v3114_v23 }
 0x11e   : > { %v1362_v25 = vadd.f32 %v1361_v17, %v1360_v19  ;;  %v3295_v17 = vadd.f32 %v3195_v63, %v3160_v9  ;;  %v1381_v19 = vsel %vm1355_vm1, %v3289_v12, 0.0 }
 0x120   : > { %v1364_v10 = vadd.f32 %v1363_v3, %v1362_v25  ;;  %v3301_v3 = vadd.f32 %v3195_v63, %v3162_v15  ;;  %v1383_v0 = vsel %vm1355_vm1, %v3295_v17, 0.0 }
 0x122   : > { %v1366_v27 = vadd.f32 %v1365_v22, %v1364_v10  ;;  %v3307_v22 = vadd.f32 %v3195_v63, %v3164_v21 }
 0x123   : > { %v1249_v29 = vpop.f32.mrf.mxu2 }
 0x124   : > { %v3166_v30 = vadd.f32 %v1249_v29, %v975_v28  ;;  %v742_v31 = vpop.f32.mrf.mxu0  ;;  %v977_v32 = vpop.f32.mrf.mxu1  ;;  %v1367_v29 = vsel %vm1355_vm1, %v3245_v20, 0.0 }
 0x125   : > { %v978_v33 = vadd.f32 %v977_v32, %v742_v31  ;;  %v3259_v31 = vadd.f32 %v3195_v63, %v1295_v24  ;;  %v1368_v23 = vadd.f32 %v1367_v29, %v1366_v27  ;;  %v1385_v27 = vsel %vm1355_vm1, %v3301_v3, 0.0 }
 0x12b   : > { %v1252_v35 = vpop.f32.mrf.mxu2 }
 0x12c   : > { %v3168_v36 = vadd.f32 %v1252_v35, %v978_v33  ;;  %v744_v37 = vpop.f32.mrf.mxu0  ;;  %v979_v38 = vpop.f32.mrf.mxu1  ;;  %v1369_v33 = vsel %vm1355_vm1, %v3252_v26, 0.0  ;;  %v3265_v35 = vadd.f32 %v3195_v63, %v3128_v34 }
 0x12d   : > { %v980_v39 = vadd.f32 %v979_v38, %v744_v37  ;;  %v1371_v37 = vsel %vm1355_vm1, %v3259_v31, 0.0  ;;  %v3271_v38 = vadd.f32 %v3195_v63, %v3134_v40 }
 0x12f   : > { %v1375_v34 = vsel %vm1355_vm1, %v3271_v38, 0.0 }
 0x133   : > { %v1254_v42 = vpop.f32.mrf.mxu2 }
 0x134   : > { %v3170_v43 = vadd.f32 %v1254_v42, %v980_v39  ;;  %v747_v44 = vpop.f32.mrf.mxu0  ;;  %v982_v45 = vpop.f32.mrf.mxu1  ;;  %v1370_v39 = vadd.f32 %v1369_v33, %v1368_v23  ;;  %v1373_v42 = vsel %vm1355_vm1, %v3265_v35, 0.0  ;;  %v3313_v33 = vadd.f32 %v3195_v63, %v3166_v30 }
 0x135   : > { %v983_v46 = vadd.f32 %v982_v45, %v747_v44  ;;  %v3277_v44 = vadd.f32 %v3195_v63, %v3138_v49  ;;  %v1387_v23 = vsel %vm1355_vm1, %v3307_v22, 0.0 }
 0x136   : > { %v1372_v45 = vadd.f32 %v1371_v37, %v1370_v39  ;;  %v3319_v37 = vadd.f32 %v3195_v63, %v3168_v36  ;;  %v3329_v30 = vadd.f32 %v3195_v63, %v3170_v43 }
 0x137   : > { %v1377_v41 = vsel %vm1355_vm1, %v3277_v44, 0.0 }
 0x138   : > { %v1374_v48 = vadd.f32 %v1373_v42, %v1372_v45  ;;  %v1389_v45 = vsel %vm1355_vm1, %v3313_v33, 0.0 }
 0x13a   : > { %v1376_v49 = vadd.f32 %v1375_v34, %v1374_v48 }
 0x13b   : > { %v1257_v47 = vpop.f32.mrf.mxu2 }
 0x13c   : > { %v3172_v50 = vadd.f32 %v1257_v47, %v983_v46  ;;  %v3174_v51 = vpop.f32.mrf.mxu0  ;;  %v3176_v52 = vpop.f32.mrf.mxu1  ;;  %v3283_v47 = vadd.f32 %v3195_v63, %v3144_v56  ;;  %v1378_v56 = vadd.f32 %v1377_v41, %v1376_v49 }
 0x13d   : > { %v985_v21 = vadd.f32 %v3176_v52, %v3174_v51  ;;  %v1391_v51 = vsel %vm1355_vm1, %v3319_v37, 0.0 }
 0x13e   : > { %v1379_v61 = vsel %vm1355_vm1, %v3283_v47, 0.0  ;;  %v3338_v52 = vadd.f32 %v3195_v63, %v3172_v50 }
 0x13f   : > { %v1380_v24 = vadd.f32 %v1379_v61, %v1378_v56  ;;  %v1393_v61 = vsel %vm1355_vm1, %v3329_v30, 0.0 }
 0x141   : > { %v1382_v29 = vadd.f32 %v1381_v19, %v1380_v24 }
 0x143   : > { %v3178_v53 = vpop.f32.mrf.mxu2  ;;  %v1384_v15 = vadd.f32 %v1383_v0, %v1382_v29 }
 0x144   : > { %v3180_v55 = vpop.f32.mrf.mxu0  ;;  %v3182_v57 = vpop.f32.mrf.mxu1  ;;  %v1308_v34 = vadd.f32 %v3178_v53, %v985_v21 }
 0x145   : > { %v988_v39 = vadd.f32 %v3182_v57, %v3180_v55  ;;  %v1386_v42 = vadd.f32 %v1385_v27, %v1384_v15 }
 0x147   : > { %v1388_v48 = vadd.f32 %v1387_v23, %v1386_v42 }
 0x149   : > { %v1390_v53 = vadd.f32 %v1389_v45, %v1388_v48 }
 0x14b   : > { %v3184_v58 = vpop.f32.mrf.mxu2  ;;  %v1392_v56 = vadd.f32 %v1391_v51, %v1390_v53 }
 0x14c   : > { %v3186_v59 = vpop.f32.mrf.mxu0  ;;  %v3188_v60 = vpop.f32.mrf.mxu1  ;;  %v1309_v55 = vadd.f32 %v3184_v58, %v988_v39  ;;  %v1395_v58 = vsel %vm1355_vm1, %v3338_v52, 0.0 }
 0x14d   : > { %v990_v43 = vadd.f32 %v3188_v60, %v3186_v59  ;;  %v1394_v24 = vadd.f32 %v1393_v61, %v1392_v56 }
 0x14e   : > { %v3353_v19 = vadd.f32 %v3195_v63, %v1309_v55 }
 0x150   : > { %v1399_v23 = vsel %vm1355_vm1, %v3353_v19, 0.0 }
 0x153   : > { %v3190_v62 = vpop.f32.mrf.mxu2 }
 0x154   : > { %v3197_v1 = vpop.f32.mrf.mxu0  ;;  %v3199_v2 = vpop.f32.mrf.mxu1 }
 0x155   : > { %v993_v36 = vadd.f32 %v3199_v2, %v3197_v1  ;;  %v3346_v1 = vadd.f32 %v3195_v63, %v1308_v34  ;;  %v1310_v2 = vadd.f32 %v3190_v62, %v990_v43 }
 0x157   : > { %v1397_v0 = vsel %vm1355_vm1, %v3346_v1, 0.0  ;;  %v3360_v29 = vadd.f32 %v3195_v63, %v1310_v2 }
 0x159   : > { %v1401_v42 = vsel %vm1355_vm1, %v3360_v29, 0.0 }
 0x15b   : > { %v3219_v11 = vpop.f32.mrf.mxu2 }
 0x15c   : > { %v3231_v13 = vpop.f32.mrf.mxu0  ;;  %v3233_v14 = vpop.f32.mrf.mxu1  ;;  %v1311_v50 = vadd.f32 %v3219_v11, %v993_v36  ;;  %v1396_v11 = vadd.f32 %v1395_v58, %v1394_v24 }
 0x15d   : > { %v995_v59 = vadd.f32 %v3233_v14, %v3231_v13 }
 0x15e   : > { %v3364_v27 = vadd.f32 %v3195_v63, %v1311_v50 }
 0x160   : > { %v1403_v48 = vsel %vm1355_vm1, %v3364_v27, 0.0 }
 0x163   : > { %v3254_v28 = vpop.f32.mrf.mxu2 }
 0x164   : > { %v762_v16 = vpop.f32.mrf.mxu0  ;;  %v997_v32 = vpop.f32.mrf.mxu1  ;;  %v1312_v62 = vadd.f32 %v3254_v28, %v995_v59 }
 0x165   : > { %v998_v60 = vadd.f32 %v997_v32, %v762_v16  ;;  %v1398_v16 = vadd.f32 %v1397_v0, %v1396_v11 }
 0x166   : > { %v3371_v45 = vadd.f32 %v3195_v63, %v1312_v62 }
 0x167   : > { %v1400_v34 = vadd.f32 %v1399_v23, %v1398_v16 }
 0x16b   : > { %v1272_v46 = vpop.f32.mrf.mxu2 }
 0x16c   : > { %v764_v7 = vpop.f32.mrf.mxu0  ;;  %v999_v40 = vpop.f32.mrf.mxu1  ;;  %v1313_v21 = vadd.f32 %v1272_v46, %v998_v60 }
 0x16d   : > { %v1000_v13 = vadd.f32 %v999_v40, %v764_v7 }
 0x16e   : > { %v3376_v36 = vadd.f32 %v3195_v63, %v1313_v21 }
 0x170   : > { %v1407_v53 = vsel %vm1355_vm1, %v3376_v36, 0.0 }
 0x173   : > { %v1274_v25 = vpop.f32.mrf.mxu2 }
 0x174   : > { %v767_v10 = vpop.f32.mrf.mxu0  ;;  %v1002_v9 = vpop.f32.mrf.mxu1  ;;  %v1314_v28 = vadd.f32 %v1274_v25, %v1000_v13 }
 0x175   : > { %v1003_v14 = vadd.f32 %v1002_v9, %v767_v10  ;;  %v1402_v10 = vadd.f32 %v1401_v42, %v1400_v34  ;;  %v1405_v9 = vsel %vm1355_vm1, %v3371_v45, 0.0 }
 0x176   : > { %v3381_v51 = vadd.f32 %v3195_v63, %v1314_v28 }
 0x177   : > { %v1404_v43 = vadd.f32 %v1403_v48, %v1402_v10 }
 0x17b   : > { %v1277_v41 = vpop.f32.mrf.mxu2 }
 0x17c   : > { %v769_v57 = vpop.f32.mrf.mxu0  ;;  %v1004_v49 = vpop.f32.mrf.mxu1  ;;  %v1315_v46 = vadd.f32 %v1277_v41, %v1003_v14  ;;  %v1406_v41 = vadd.f32 %v1405_v9, %v1404_v43 }
 0x17d   : > { %v1005_v7 = vadd.f32 %v1004_v49, %v769_v57  ;;  %v1409_v57 = vsel %vm1355_vm1, %v3381_v51, 0.0 }
 0x17e   : > { %v3386_v61 = vadd.f32 %v3195_v63, %v1315_v46  ;;  %v1408_v56 = vadd.f32 %v1407_v53, %v1406_v41 }
 0x180   : > { %v1411_v59 = vsel %vm1355_vm1, %v3386_v61, 0.0  ;;  %v1410_v24 = vadd.f32 %v1409_v57, %v1408_v56 }
 0x182   : > { %v1412_v11 = vadd.f32 %v1411_v59, %v1410_v24 }
 0x183   : > { %v1279_v15 = vpop.f32.mrf.mxu2 }
 0x184   : > { %v772_v32 = vpop.f32.mrf.mxu0  ;;  %v1007_v39 = vpop.f32.mrf.mxu1  ;;  %v1316_v55 = vadd.f32 %v1279_v15, %v1005_v7 }
 0x185   : > { %v1008_v40 = vadd.f32 %v1007_v39, %v772_v32 }
 0x186   : > { %v3391_v49 = vadd.f32 %v3195_v63, %v1316_v55 }
 0x188   : > { %v1413_v0 = vsel %vm1355_vm1, %v3391_v49, 0.0 }
 0x189   : > { %v1414_v13 = vadd.f32 %v1413_v0, %v1412_v11 }
 0x18b   : > { %v1282_v25 = vpop.f32.mrf.mxu2 }
 0x18c   : > { %v1317_v2 = vadd.f32 %v1282_v25, %v1008_v40  ;;  %v774_v50 = vpop.f32.mrf.mxu0  ;;  %v1009_v58 = vpop.f32.mrf.mxu1  ;;  %v2914_v40 = vmov 512.0  }
 0x18d   : > { %v1010_v62 = vadd.f32 %v1009_v58, %v774_v50  ;;  %2902 = vrcp.f32 %v2914_v40 }
 0x18e   : > { %v3396_v60 = vadd.f32 %v3195_v63, %v1317_v2 }
 0x190   : > { %v1415_v23 = vsel %vm1355_vm1, %v3396_v60, 0.0 }
 0x191   : > { %v1416_v16 = vadd.f32 %v1415_v23, %v1414_v13 }
 0x193   : > { %v1284_v15 = vpop.f32.mrf.mxu2  ;;  %v2903_v10 = vpop.eup %2902 }
 0x194   : > { %v1318_v21 = vadd.f32 %v1284_v15, %v1010_v62  ;;  %v1451_v9 = vmul.f32 512.0, %v2903_v10  ;;  %vm1455_vm2 = vweird.f32 %v2903_v10 }
 0x196   : > { %v3403_v14 = vadd.f32 %v3195_v63, %v1318_v21  ;;  %v1452_v55 = vsub.f32 1.0, %v1451_v9 }
 0x198   : > { %v1417_v32 = vsel %vm1355_vm1, %v3403_v14, 0.0  ;;  %v1453_v63 = vmul.f32 %v2903_v10, %v1452_v55 }
 0x199   : > { %v1418_v39 = vadd.f32 %v1417_v32, %v1416_v16 }
 0x19a   : > { %v1454_v43 = vadd.f32 %v2903_v10, %v1453_v63 }
 0x19b   : > { %v1419_v42 = vrot.slane %v1418_v39, 4 }
 0x19c   : > { %v3408_v25 = vsel %vm1455_vm2, %v2903_v10, %v1454_v43 }
 0x19d   : > { %v1420_v28 = vadd.f32 %v1419_v42, %v1418_v39 }
 0x19f   : > { %v1421_v34 = vrot.slane %v1420_v28, 2 }
 0x1a1   : > { %v1422_v48 = vadd.f32 %v1421_v34, %v1420_v28 }
 0x1a3   : > { %v1423_v46 = vrot.slane %v1422_v48, 1 }
 0x1a5   : > { %v1424_v7 = vadd.f32 %v1423_v46, %v1422_v48 }
 0x1a7   : > { %2720 = vmatmul.msk.f32.vlgmr.msrb.gmra.mxu0 %vm1355_vm1, %v1424_v7 }
 0x224   : > { %v1447_v53 = vpop.f32.mrf.mxu0 }
 0x225   : > { %v1457_v2 = vmul.f32 %v3408_v25, %v1447_v53 }
 0x227   : > { %2721 = vmatmul.msk.f32.vlgmr.msrb.gmra.mxu1 %vm1459_vm3, %v1457_v2 }
 0x2a4   : > { %v1480_v41 = vpop.f32.mrf.mxu1 }
 0x2a5   : > { %v3412_v57 = vperm.slane %v1480_v41, 0 }
 0x2a7   : > { %v3416_v56 = vsub.f32 %v3207_v5, %v3412_v57  ;;  %v3420_v50 = vsub.f32 %v3203_v4, %v3412_v57  ;;  %v3424_v58 = vsub.f32 %v3211_v6, %v3412_v57  ;;  %v3428_v59 = vsub.f32 %v3217_v8, %v3412_v57 }
 0x2a8   : > { %v3436_v5 = vsub.f32 %v3227_v54, %v3412_v57  ;;  %v3442_v6 = vsub.f32 %v3239_v18, %v3412_v57  ;;  %v3450_v23 = vsub.f32 %v3245_v20, %v3412_v57  ;;  %v3457_v18 = vsub.f32 %v3252_v26, %v3412_v57 }
 0x2a9   : > { %v1516_v24 = vmul.f32 %v3416_v56, %v3416_v56  ;;  %v1517_v0 = vmul.f32 %v3420_v50, %v3420_v50  ;;  %v1518_v4 = vmul.f32 %v3424_v58, %v3424_v58  ;;  %v1519_v8 = vmul.f32 %v3428_v59, %v3428_v59 }
 0x2aa   : > { %v1520_v54 = vmul.f32 %v3436_v5, %v3436_v5  ;;  %v1521_v16 = vmul.f32 %v3442_v6, %v3442_v6  ;;  %v3464_v20 = vsub.f32 %v3259_v31, %v3412_v57  ;;  %v1522_v42 = vmul.f32 %v3450_v23, %v3450_v23 }
 0x2ab   : > { %v1548_v62 = vsel %vm1355_vm1, %v1516_v24, 0.0  ;;  %v1549_v11 = vsel %vm1355_vm1, %v1517_v0, 0.0  ;;  %v1551_v21 = vsel %vm1355_vm1, %v1518_v4, 0.0  ;;  %v1553_v32 = vsel %vm1355_vm1, %v1519_v8, 0.0 }
 0x2ac   : > { %v1550_v15 = vadd.f32 %v1549_v11, %v1548_v62  ;;  %v1555_v28 = vsel %vm1355_vm1, %v1520_v54, 0.0  ;;  %v3471_v26 = vsub.f32 %v3265_v35, %v3412_v57  ;;  %v1523_v48 = vmul.f32 %v3457_v18, %v3457_v18 }
 0x2ad   : > { %v1557_v46 = vsel %vm1355_vm1, %v1521_v16, 0.0  ;;  %v3478_v31 = vsub.f32 %v3271_v38, %v3412_v57  ;;  %v1524_v40 = vmul.f32 %v3464_v20, %v3464_v20  ;;  %v1559_v10 = vsel %vm1355_vm1, %v1522_v42, 0.0 }
 0x2ae   : > { %v1552_v13 = vadd.f32 %v1551_v21, %v1550_v15  ;;  %v3485_v35 = vsub.f32 %v3277_v44, %v3412_v57  ;;  %v1525_v55 = vmul.f32 %v3471_v26, %v3471_v26  ;;  %v1561_v63 = vsel %vm1355_vm1, %v1523_v48, 0.0 }
 0x2af   : > { %v3492_v38 = vsub.f32 %v3283_v47, %v3412_v57  ;;  %v1526_v53 = vmul.f32 %v3478_v31, %v3478_v31  ;;  %v1563_v2 = vsel %vm1355_vm1, %v1524_v40, 0.0  ;;  %v3499_v44 = vsub.f32 %v3289_v12, %v3412_v57 }
 0x2b0   : > { %v1554_v39 = vadd.f32 %v1553_v32, %v1552_v13  ;;  %v1527_v24 = vmul.f32 %v3485_v35, %v3485_v35  ;;  %v1565_v0 = vsel %vm1355_vm1, %v1525_v55, 0.0  ;;  %v3506_v47 = vsub.f32 %v3295_v17, %v3412_v57 }
 0x2b1   : > { %v1528_v8 = vmul.f32 %v3492_v38, %v3492_v38  ;;  %v1567_v62 = vsel %vm1355_vm1, %v1526_v53, 0.0  ;;  %v3513_v12 = vsub.f32 %v3301_v3, %v3412_v57  ;;  %v1529_v15 = vmul.f32 %v3499_v44, %v3499_v44 }
 0x2b2   : > { %v1556_v34 = vadd.f32 %v1555_v28, %v1554_v39  ;;  %v1569_v54 = vsel %vm1355_vm1, %v1527_v24, 0.0  ;;  %v3520_v17 = vsub.f32 %v3307_v22, %v3412_v57  ;;  %v1530_v13 = vmul.f32 %v3506_v47, %v3506_v47 }
 0x2b3   : > { %v1571_v16 = vsel %vm1355_vm1, %v1528_v8, 0.0  ;;  %v3527_v3 = vsub.f32 %v3313_v33, %v3412_v57  ;;  %v1531_v39 = vmul.f32 %v3513_v12, %v3513_v12  ;;  %v1573_v42 = vsel %vm1355_vm1, %v1529_v15, 0.0 }
 0x2b4   : > { %v1558_v7 = vadd.f32 %v1557_v46, %v1556_v34  ;;  %v3534_v22 = vsub.f32 %v3319_v37, %v3412_v57  ;;  %v1532_v34 = vmul.f32 %v3520_v17, %v3520_v17  ;;  %v1575_v48 = vsel %vm1355_vm1, %v1530_v13, 0.0 }
 0x2b5   : > { %v3541_v33 = vsub.f32 %v3329_v30, %v3412_v57  ;;  %v1577_v40 = vsel %vm1355_vm1, %v1531_v39, 0.0  ;;  %v3548_v37 = vsub.f32 %v3338_v52, %v3412_v57  ;;  %v3555_v30 = vsub.f32 %v3346_v1, %v3412_v57 }
 0x2b6   : > { %v1560_v9 = vadd.f32 %v1559_v10, %v1558_v7  ;;  %v1533_v7 = vmul.f32 %v3527_v3, %v3527_v3  ;;  %v1579_v55 = vsel %vm1355_vm1, %v1532_v34, 0.0  ;;  %v3562_v52 = vsub.f32 %v3353_v19, %v3412_v57 }
 0x2b7   : > { %v3569_v1 = vsub.f32 %v3360_v29, %v3412_v57  ;;  %v3576_v19 = vsub.f32 %v3364_v27, %v3412_v57  ;;  %v3583_v29 = vsub.f32 %v3371_v45, %v3412_v57  ;;  %v3590_v27 = vsub.f32 %v3376_v36, %v3412_v57 }
 0x2b8   : > { %v1562_v43 = vadd.f32 %v1561_v63, %v1560_v9  ;;  %v1534_v9 = vmul.f32 %v3534_v22, %v3534_v22  ;;  %v1581_v53 = vsel %vm1355_vm1, %v1533_v7, 0.0  ;;  %v3597_v45 = vsub.f32 %v3381_v51, %v3412_v57 }
 0x2b9   : > { %v3604_v36 = vsub.f32 %v3386_v61, %v3412_v57  ;;  %v3611_v51 = vsub.f32 %v3391_v49, %v3412_v57  ;;  %v3618_v61 = vsub.f32 %v3396_v60, %v3412_v57  ;;  %v3625_v49 = vsub.f32 %v3403_v14, %v3412_v57 }
 0x2ba   : > { %v1564_v41 = vadd.f32 %v1563_v2, %v1562_v43  ;;  %v1535_v43 = vmul.f32 %v3541_v33, %v3541_v33  ;;  %v1583_v24 = vsel %vm1355_vm1, %v1534_v9, 0.0 }
 0x2bb   : > { %v1546_v60 = vmul.f32 %v3618_v61, %v3618_v61 }
 0x2bc   : > { %v1566_v4 = vadd.f32 %v1565_v0, %v1564_v41  ;;  %v1536_v41 = vmul.f32 %v3548_v37, %v3548_v37  ;;  %v1585_v8 = vsel %vm1355_vm1, %v1535_v43, 0.0 }
 0x2bd   : > { %v1607_v14 = vsel %vm1355_vm1, %v1546_v60, 0.0  ;;  %v2874_v60 = vld [vmem:[%s3648_s26 + $0x28] sm:$0xff] }
 0x2be   : > { %v1568_v11 = vadd.f32 %v1567_v62, %v1566_v4  ;;  %v1537_v4 = vmul.f32 %v3555_v30, %v3555_v30  ;;  %v1587_v15 = vsel %vm1355_vm1, %v1536_v41, 0.0 }
 0x2c0   : > { %v1570_v21 = vadd.f32 %v1569_v54, %v1568_v11  ;;  %v1538_v11 = vmul.f32 %v3562_v52, %v3562_v52  ;;  %v1589_v13 = vsel %vm1355_vm1, %v1537_v4, 0.0 }
 0x2c2   : > { %v1572_v32 = vadd.f32 %v1571_v16, %v1570_v21  ;;  %v1539_v21 = vmul.f32 %v3569_v1, %v3569_v1  ;;  %v1591_v39 = vsel %vm1355_vm1, %v1538_v11, 0.0 }
 0x2c4   : > { %v1574_v28 = vadd.f32 %v1573_v42, %v1572_v32  ;;  %v1540_v32 = vmul.f32 %v3576_v19, %v3576_v19  ;;  %v1593_v34 = vsel %vm1355_vm1, %v1539_v21, 0.0 }
 0x2c6   : > { %v1576_v46 = vadd.f32 %v1575_v48, %v1574_v28  ;;  %v1541_v28 = vmul.f32 %v3583_v29, %v3583_v29  ;;  %v1595_v7 = vsel %vm1355_vm1, %v1540_v32, 0.0 }
 0x2c8   : > { %v1578_v10 = vadd.f32 %v1577_v40, %v1576_v46  ;;  %v1542_v46 = vmul.f32 %v3590_v27, %v3590_v27  ;;  %v1597_v9 = vsel %vm1355_vm1, %v1541_v28, 0.0  ;;  %v2885_v28 = vld [vmem:[%s4114_s10] sm:$0xff] }
 0x2ca   : > { %v1580_v63 = vadd.f32 %v1579_v55, %v1578_v10  ;;  %v1543_v10 = vmul.f32 %v3597_v45, %v3597_v45  ;;  %v1599_v43 = vsel %vm1355_vm1, %v1542_v46, 0.0 }
 0x2cc   : > { %v1582_v2 = vadd.f32 %v1581_v53, %v1580_v63  ;;  %v1544_v63 = vmul.f32 %v3604_v36, %v3604_v36  ;;  %v1601_v41 = vsel %vm1355_vm1, %v1543_v10, 0.0 }
 0x2ce   : > { %v1584_v0 = vadd.f32 %v1583_v24, %v1582_v2  ;;  %v1545_v2 = vmul.f32 %v3611_v51, %v3611_v51 }
 0x2d0   : > { %v1586_v62 = vadd.f32 %v1585_v8, %v1584_v0  ;;  %v1603_v0 = vsel %vm1355_vm1, %v1544_v63, 0.0  ;;  %v1547_v8 = vmul.f32 %v3625_v49, %v3625_v49 }
 0x2d2   : > { %v1588_v54 = vadd.f32 %v1587_v15, %v1586_v62  ;;  %v1605_v62 = vsel %vm1355_vm1, %v1545_v2, 0.0  ;;  %v1609_v15 = vsel %vm1355_vm1, %v1547_v8, 0.0  ;;  %v2871_v2 = vld [vmem:[%s3648_s26 + $0x10] sm:$0xff] }
 0x2d4   : > { %v1590_v16 = vadd.f32 %v1589_v13, %v1588_v54 }
 0x2d6   : > { %v1592_v42 = vadd.f32 %v1591_v39, %v1590_v16 }
 0x2d8   : > { %v1594_v48 = vadd.f32 %v1593_v34, %v1592_v42 }
 0x2da   : > { %v1596_v40 = vadd.f32 %v1595_v7, %v1594_v48 }
 0x2dc   : > { %v1598_v55 = vadd.f32 %v1597_v9, %v1596_v40 }
 0x2de   : > { %v1600_v53 = vadd.f32 %v1599_v43, %v1598_v55 }
 0x2e0   : > { %v1602_v24 = vadd.f32 %v1601_v41, %v1600_v53  ;;  %v2870_v53 = vld [vmem:[%s3648_s26 + $0x8] sm:$0xff]  ;;  %v2872_v41 = vld [vmem:[%s3648_s26 + $0x18] sm:$0xff] }
 0x2e2   : > { %v1604_v4 = vadd.f32 %v1603_v0, %v1602_v24  ;;  %v2873_v24 = vld [vmem:[%s3648_s26 + $0x20] sm:$0xff]  ;;  %v2875_v0 = vld [vmem:[%s3648_s26 + $0x30] sm:$0xff] }
 0x2e4   : > { %v1606_v11 = vadd.f32 %v1605_v62, %v1604_v4  ;;  %v2876_v4 = vld [vmem:[%s3648_s26 + $0x38] sm:$0xff] }
 0x2e6   : > { %v1608_v57 = vadd.f32 %v1607_v14, %v1606_v11  ;;  %v2877_v11 = vld [vmem:[%s3648_s26 + $0x40] sm:$0xff] }
 0x2e7   : > { %v3680_v14 = vld [vmem:[%s4107_s3] ss:$0 sm:$0xff] }
 0x2e8   : > { %v1610_v54 = vadd.f32 %v1609_v15, %v1608_v57  ;;  %v3687_v15 = vld [vmem:[%s4108_s4] ss:$0 sm:$0xff] }
 0x2ea   : > { %v1611_v21 = vrot.slane %v1610_v54, 4 }
 0x2ec   : > { %v1612_v13 = vadd.f32 %v1611_v21, %v1610_v54 }
 0x2ee   : > { %v1613_v16 = vrot.slane %v1612_v13, 2 }
 0x2f0   : > { %v1614_v32 = vadd.f32 %v1613_v16, %v1612_v13  ;;  %v3695_v16 = vld [vmem:[%s448_s29] ss:$0 sm:$0xff] }
 0x2f2   : > { %v1615_v39 = vrot.slane %v1614_v32, 1 }
 0x2f4   : > { %v1616_v42 = vadd.f32 %v1615_v39, %v1614_v32 }
 0x2f6   : > { %2722 = vmatmul.msk.f32.vlgmr.msra.gmra.mxu3 %vm1355_vm1, %v1616_v42 }
 0x2f7   : > { %2091 = vmatpush.bf16.msra.mxu3 %v2885_v28  ;;  %v3702_v28 = vld [vmem:[%s451_s14] ss:$0 sm:$0xff] }
 0x379   : > { %v1637_v34 = vpop.f32.mrf.mxu3 }
 0x37a   : > { %v1640_v48 = vmul.f32 %v1637_v34, %v3408_v25  ;;  %v2869_v25 = vld [vmem:[%s3648_s26] sm:$0xff] }
 0x37c   : > { %v1641_v46 = vadd.f32 1e-05, %v1640_v48 }
 0x37e   : > { %2904 = vrsqrt.f32 %v1641_v46  ;;  %vm1648_vm5 = vweird.f32 %v1641_v46 }
 0x384   : > { %v2905_v7 = vpop.eup %2904 }
 0x385   : > { %v1643_v40 = vmul.f32 %v2905_v7, %v1641_v46  ;;  %vm1649_vm4 = vweird.f32 %v2905_v7 }
 0x386   : > { %vm1650_vm6 = vmor %vm1648_vm5, %vm1649_vm4 }
 0x387   : > { %v1644_v10 = vmul.f32 %v2905_v7, %v1643_v40 }
 0x389   : > { %v1645_v9 = vmul.f32 0.5, %v1644_v10 }
 0x38b   : > { %v1646_v55 = vsub.f32 1.5, %v1645_v9 }
 0x38d   : > { %v1647_v63 = vmul.f32 %v2905_v7, %v1646_v55 }
 0x38f   : > { %v1651_v43 = vsel %vm1650_vm6, %v2905_v7, %v1647_v63 }
 0x390   : > { %2723 = vmatmul.msk.f32.vlgmr.msrb.gmra.mxu3 %vm1459_vm3, %v1651_v43 }
 0x398   : > { %2792 = vmatmul.msk.bf16.vlgmr.msra.gmra.mxu3 %vm1355_vm1, %v2869_v25 }
 0x3a8   : > { %2793 = vmatmul.msk.bf16.gmra.mxu3 %vm1355_vm1, %v2870_v53 }
 0x3b8   : > { %2794 = vmatmul.msk.bf16.gmra.mxu3 %vm1355_vm1, %v2871_v2 }
 0x3c8   : > { %2795 = vmatmul.msk.bf16.gmra.mxu3 %vm1355_vm1, %v2872_v41 }
 0x3d8   : > { %2796 = vmatmul.msk.bf16.gmra.mxu3 %vm1355_vm1, %v2873_v24  ;;  %v3727_v24 = vld [vmem:[%s4115_s11] ss:$0 sm:$0xff] }
 0x3e8   : > { %2797 = vmatmul.msk.bf16.gmra.mxu3 %vm1355_vm1, %v2874_v60 }
 0x3f8   : > { %2798 = vmatmul.msk.bf16.gmra.mxu3 %vm1355_vm1, %v2875_v0 }
 0x408   : > { %2799 = vmatmul.msk.bf16.gmra.mxu3 %vm1355_vm1, %v2876_v4 }
 0x413   : > { %v1672_v8 = vpop.f32.mrf.mxu3 }
 0x414   : > { %v3674_v62 = vperm.slane %v1672_v8, 0 }
 0x416   : > { %v1676_v57 = vmul.f32 %v3674_v62, %v3416_v56  ;;  %v1677_v54 = vmul.f32 %v3674_v62, %v3420_v50  ;;  %v1678_v21 = vmul.f32 %v3674_v62, %v3424_v58  ;;  %v1679_v39 = vmul.f32 %v3674_v62, %v3428_v59 }
 0x417   : > { %v1680_v7 = vmul.f32 %v3674_v62, %v3436_v5  ;;  %v1681_v59 = vmul.f32 %v3674_v62, %v3442_v6  ;;  %v1682_v63 = vmul.f32 %v3674_v62, %v3450_v23  ;;  %v1685_v2 = vmul.f32 %v3674_v62, %v3471_v26 }
 0x418   : > { %2800 = vmatmul.msk.bf16.gmra.mxu3 %vm1355_vm1, %v2877_v11  ;;  %v1712_v13 = vmul.f32 %v3680_v14, %v1676_v57  ;;  %v1713_v32 = vmul.f32 %v3680_v14, %v1677_v54  ;;  %v1714_v56 = vmul.f32 %v3680_v14, %v1678_v21  ;;  %v1715_v40 = vmul.f32 %v3680_v14, %v1679_v39  ;;  %v2878_v54 = vld [vmem:[%s3648_s26 + $0x48] sm:$0xff] }
 0x419   : > { %v1716_v53 = vmul.f32 %v3680_v14, %v1680_v7  ;;  %v1717_v5 = vmul.f32 %v3680_v14, %v1681_v59  ;;  %v1718_v4 = vmul.f32 %v3680_v14, %v1682_v63  ;;  %v1683_v8 = vmul.f32 %v3674_v62, %v3457_v18 }
 0x41a   : > { %v1748_v42 = vadd.f32 %v3687_v15, %v1712_v13  ;;  %v1749_v50 = vadd.f32 %v3687_v15, %v1713_v32  ;;  %v1750_v58 = vadd.f32 %v3687_v15, %v1714_v56  ;;  %v1751_v6 = vadd.f32 %v3687_v15, %v1715_v40 }
 0x41b   : > { %v2093_v34 = vpop.f32.mrf.mxu3  ;;  %v1752_v26 = vadd.f32 %v3687_v15, %v1716_v53  ;;  %v1753_v21 = vadd.f32 %v3687_v15, %v1717_v5  ;;  %v1721_v32 = vmul.f32 %v3680_v14, %v1685_v2  ;;  %v1686_v18 = vmul.f32 %v3674_v62, %v3478_v31 }
 0x41c   : > { %v1784_v48 = vmul.f32 %v3695_v16, %v1748_v42  ;;  %v1785_v46 = vmul.f32 %v3695_v16, %v1749_v50  ;;  %v1786_v55 = vmul.f32 %v3695_v16, %v1750_v58  ;;  %v1787_v13 = vmul.f32 %v3695_v16, %v1751_v6 }
 0x41d   : > { %v1687_v56 = vmul.f32 %v3674_v62, %v3485_v35  ;;  %v1688_v58 = vmul.f32 %v3674_v62, %v3492_v38  ;;  %v1689_v31 = vmul.f32 %v3674_v62, %v3499_v44  ;;  %v1788_v35 = vmul.f32 %v3695_v16, %v1752_v26 }
 0x41e   : > { %v1820_v10 = vadd.f32 %v3702_v28, %v1784_v48  ;;  %v1821_v9 = vadd.f32 %v3702_v28, %v1785_v46  ;;  %v1822_v60 = vadd.f32 %v3702_v28, %v1786_v55  ;;  %v1722_v48 = vmul.f32 %v3680_v14, %v1686_v18 }
 0x41f   : > { %v1723_v46 = vmul.f32 %v3680_v14, %v1687_v56  ;;  %v1724_v7 = vmul.f32 %v3680_v14, %v1688_v58  ;;  %v1690_v38 = vmul.f32 %v3674_v62, %v3506_v47  ;;  %v1725_v44 = vmul.f32 %v3680_v14, %v1689_v31 }
 0x420   : > { %v1852_v43 = vmul.f32 0.2, %v1820_v10  ;;  %v1853_v25 = vmul.f32 0.2, %v1821_v9  ;;  %v1854_v50 = vmul.f32 0.2, %v1822_v60  ;;  %v1758_v40 = vadd.f32 %v3687_v15, %v1722_v48 }
 0x421   : > { %v1823_v55 = vadd.f32 %v3702_v28, %v1787_v13  ;;  %v1760_v63 = vadd.f32 %v3687_v15, %v1724_v7  ;;  %v1761_v6 = vadd.f32 %v3687_v15, %v1725_v44  ;;  %v1824_v56 = vadd.f32 %v3702_v28, %v1788_v35 }
 0x422   : > { %v1884_v41 = vmax.f32 %v1820_v10, %v1852_v43  ;;  %v1885_v23 = vmax.f32 %v1821_v9, %v1853_v25  ;;  %v1759_v10 = vadd.f32 %v3687_v15, %v1723_v46  ;;  %v1886_v9 = vmax.f32 %v1822_v60, %v1854_v50 }
 0x423   : > { %v2095_v0 = vpop.f32.mrf.mxu3  ;;  %v1726_v43 = vmul.f32 %v3680_v14, %v1690_v38  ;;  %v1794_v53 = vmul.f32 %v3695_v16, %v1758_v40  ;;  %v1691_v60 = vmul.f32 %v3674_v62, %v3513_v12  ;;  %v1855_v13 = vmul.f32 0.2, %v1823_v55 }
 0x424   : > { %v2173_v11 = vadd.f32 %v2093_v34, %v1884_v41  ;;  %v2174_v57 = vadd.f32 %v2095_v0, %v1885_v23  ;;  %v1757_v34 = vadd.f32 %v3687_v15, %v1721_v32  ;;  %v1795_v5 = vmul.f32 %v3695_v16, %v1759_v10 }
 0x425   : > { %v1796_v41 = vmul.f32 %v3695_v16, %v1760_v63  ;;  %v1762_v23 = vadd.f32 %v3687_v15, %v1726_v43  ;;  %v1754_v0 = vadd.f32 %v3687_v15, %v1718_v4  ;;  %v1789_v12 = vmul.f32 %v3695_v16, %v1753_v21 }
 0x426   : > { %v2209_v39 = vadd.f32 %v3727_v24, %v2173_v11  ;;  %v2210_v42 = vadd.f32 %v3727_v24, %v2174_v57  ;;  %v1793_v59 = vmul.f32 %v3695_v16, %v1757_v34  ;;  %v3784_v11 = vadd.f32 %v3702_v28, %v1794_v53 }
 0x427   : > { %v3787_v57 = vadd.f32 %v3702_v28, %v1795_v5  ;;  %v3792_v32 = vadd.f32 %v3702_v28, %v1796_v41  ;;  %v1798_v18 = vmul.f32 %v3695_v16, %v1762_v23  ;;  %v1692_v50 = vmul.f32 %v3674_v62, %v3520_v17 }
 0x428   : > { %2241 = vst.msk [vmem:[%s3739_s25] sm:$0xff] %vm1355_vm1, %v2209_v39  ;;  %2801 = vmatmul.msk.bf16.gmra.mxu3 %vm1355_vm1, %v2878_v54  ;;  %v3773_v47 = vadd.f32 %v3702_v28, %v1793_v59  ;;  %v1797_v54 = vmul.f32 %v3695_v16, %v1761_v6  ;;  %v1719_v58 = vmul.f32 %v3680_v14, %v1683_v8  ;;  %v2879_v59 = vld [vmem:[%s3648_s26 + $0x50] sm:$0xff]  ;;  %v1856_v40 = vmul.f32 0.2, %v1824_v56 }
 0x429   : > { %2242 = vst.msk [vmem:[%s3739_s25 + $0x8] sm:$0xff] %vm1355_vm1, %v2210_v42  ;;  %v3803_v39 = vadd.f32 %v3702_v28, %v1798_v18  ;;  %v1727_v42 = vmul.f32 %v3680_v14, %v1691_v60  ;;  %v1693_v21 = vmul.f32 %v3674_v62, %v3527_v3  ;;  %v1887_v34 = vmax.f32 %v1823_v55, %v1855_v13 }
 0x42a   : > { %v3797_v4 = vadd.f32 %v3702_v28, %v1797_v54  ;;  %v1790_v48 = vmul.f32 %v3695_v16, %v1754_v0  ;;  %v1728_v31 = vmul.f32 %v3680_v14, %v1692_v50  ;;  %v3815_v7 = vadd.f32 %v3702_v28, %v1789_v12 }
 0x42b   : > { %v2098_v25 = vpop.f32.mrf.mxu3  ;;  %v1763_v46 = vadd.f32 %v3687_v15, %v1727_v42  ;;  %v1729_v38 = vmul.f32 %v3680_v14, %v1693_v21  ;;  %v1694_v17 = vmul.f32 %v3674_v62, %v3534_v22  ;;  %v1695_v8 = vmul.f32 %v3674_v62, %v3541_v33 }
 0x42c   : > { %v2175_v2 = vadd.f32 %v2098_v25, %v1886_v9  ;;  %v1764_v44 = vadd.f32 %v3687_v15, %v1728_v31  ;;  %v1696_v22 = vmul.f32 %v3674_v62, %v3548_v37  ;;  %v1697_v53 = vmul.f32 %v3674_v62, %v3555_v30 }
 0x42d   : > { %v1799_v10 = vmul.f32 %v3695_v16, %v1763_v46  ;;  %v1765_v9 = vadd.f32 %v3687_v15, %v1729_v38  ;;  %v1730_v55 = vmul.f32 %v3680_v14, %v1694_v17  ;;  %v1731_v63 = vmul.f32 %v3680_v14, %v1695_v8 }
 0x42e   : > { %v2211_v26 = vadd.f32 %v3727_v24, %v2175_v2  ;;  %v1800_v25 = vmul.f32 %v3695_v16, %v1764_v44  ;;  %v1732_v41 = vmul.f32 %v3680_v14, %v1696_v22  ;;  %v1733_v23 = vmul.f32 %v3680_v14, %v1697_v53 }
 0x42f   : > { %v3832_v33 = vadd.f32 %v3702_v28, %v1799_v10  ;;  %v1801_v5 = vmul.f32 %v3695_v16, %v1765_v9  ;;  %v1766_v6 = vadd.f32 %v3687_v15, %v1730_v55  ;;  %v1767_v2 = vadd.f32 %v3687_v15, %v1731_v63 }
 0x430   : > { %2243 = vst.msk [vmem:[%s3739_s25 + $0x10] sm:$0xff] %vm1355_vm1, %v2211_v26  ;;  %v3845_v37 = vadd.f32 %v3702_v28, %v1800_v25  ;;  %v1698_v30 = vmul.f32 %v3674_v62, %v3562_v52  ;;  %v1768_v26 = vadd.f32 %v3687_v15, %v1732_v41  ;;  %v1888_v13 = vmax.f32 %v1824_v56, %v1856_v40  ;;  %v2880_v41 = vld [vmem:[%s3648_s26 + $0x58] sm:$0xff] }
 0x431   : > { %v3851_v60 = vadd.f32 %v3702_v28, %v1801_v5  ;;  %v1802_v0 = vmul.f32 %v3695_v16, %v1766_v6  ;;  %v1803_v54 = vmul.f32 %v3695_v16, %v1767_v2  ;;  %v1769_v18 = vadd.f32 %v3687_v15, %v1733_v23 }
 0x432   : > { %v1734_v12 = vmul.f32 %v3680_v14, %v1698_v30  ;;  %v1804_v21 = vmul.f32 %v3695_v16, %v1768_v26  ;;  %v1857_v56 = vmul.f32 0.2, %v3815_v7  ;;  %v1755_v38 = vadd.f32 %v3687_v15, %v1719_v58 }
 0x433   : > { %v2100_v35 = vpop.f32.mrf.mxu3  ;;  %v3859_v50 = vadd.f32 %v3702_v28, %v1802_v0  ;;  %v3862_v52 = vadd.f32 %v3702_v28, %v1803_v54  ;;  %v1805_v46 = vmul.f32 %v3695_v16, %v1769_v18  ;;  %v1699_v40 = vmul.f32 %v3674_v62, %v3569_v1 }
 0x434   : > { %v2176_v3 = vadd.f32 %v2100_v35, %v1887_v34  ;;  %v1770_v31 = vadd.f32 %v3687_v15, %v1734_v12  ;;  %v1826_v35 = vadd.f32 %v3702_v28, %v1790_v48  ;;  %v3871_v17 = vadd.f32 %v3702_v28, %v1804_v21 }
 0x435   : > { %v1700_v10 = vmul.f32 %v3674_v62, %v3576_v19  ;;  %v1684_v58 = vmul.f32 %v3674_v62, %v3464_v20  ;;  %v1735_v44 = vmul.f32 %v3680_v14, %v1699_v40  ;;  %v1701_v9 = vmul.f32 %v3674_v62, %v3583_v29 }
 0x436   : > { %v2212_v43 = vadd.f32 %v3727_v24, %v2176_v3  ;;  %v3875_v3 = vadd.f32 %v3702_v28, %v1805_v46  ;;  %v1791_v55 = vmul.f32 %v3695_v16, %v1755_v38  ;;  %v1702_v19 = vmul.f32 %v3674_v62, %v3590_v27 }
 0x437   : > { %v1736_v1 = vmul.f32 %v3680_v14, %v1700_v10  ;;  %v1703_v63 = vmul.f32 %v3674_v62, %v3597_v45  ;;  %v1889_v20 = vmax.f32 %v3815_v7, %v1857_v56  ;;  %v1858_v22 = vmul.f32 0.2, %v1826_v35 }
 0x438   : > { %2244 = vst.msk [vmem:[%s3739_s25 + $0x18] sm:$0xff] %vm1355_vm1, %v2212_v43  ;;  %2802 = vmatmul.msk.bf16.gmra.mxu3 %vm1355_vm1, %v2879_v59  ;;  %v1806_v59 = vmul.f32 %v3695_v16, %v1770_v31  ;;  %v1771_v43 = vadd.f32 %v3687_v15, %v1735_v44  ;;  %v1737_v25 = vmul.f32 %v3680_v14, %v1701_v9 }
 0x439   : > { %v1772_v29 = vadd.f32 %v3687_v15, %v1736_v1  ;;  %v1738_v5 = vmul.f32 %v3680_v14, %v1702_v19  ;;  %v1739_v6 = vmul.f32 %v3680_v14, %v1703_v63  ;;  %v1704_v27 = vmul.f32 %v3674_v62, %v3604_v36 }
 0x43a   : > { %v3887_v48 = vadd.f32 %v3702_v28, %v1806_v59  ;;  %v1720_v45 = vmul.f32 %v3680_v14, %v1684_v58  ;;  %v1807_v7 = vmul.f32 %v3695_v16, %v1771_v43  ;;  %v1773_v23 = vadd.f32 %v3687_v15, %v1737_v25 }
 0x43b   : > { %v2103_v42 = vpop.f32.mrf.mxu3  ;;  %v1808_v30 = vmul.f32 %v3695_v16, %v1772_v29  ;;  %v1774_v0 = vadd.f32 %v3687_v15, %v1738_v5  ;;  %v1775_v54 = vadd.f32 %v3687_v15, %v1739_v6  ;;  %v1740_v26 = vmul.f32 %v3680_v14, %v1704_v27 }
 0x43c   : > { %v2177_v34 = vadd.f32 %v2103_v42, %v1888_v13  ;;  %v3916_v36 = vadd.f32 %v3702_v28, %v1807_v7  ;;  %v1809_v18 = vmul.f32 %v3695_v16, %v1773_v23  ;;  %v1705_v12 = vmul.f32 %v3674_v62, %v3611_v51 }
 0x43d   : > { %v3922_v42 = vadd.f32 %v3702_v28, %v1808_v30  ;;  %v1810_v21 = vmul.f32 %v3695_v16, %v1774_v0  ;;  %v1776_v46 = vadd.f32 %v3687_v15, %v1740_v26  ;;  %v1706_v51 = vmul.f32 %v3674_v62, %v3618_v61 }
 0x43e   : > { %v2213_v8 = vadd.f32 %v3727_v24, %v2177_v34  ;;  %v1811_v34 = vmul.f32 %v3695_v16, %v1775_v54  ;;  %v3931_v31 = vadd.f32 %v3702_v28, %v1809_v18  ;;  %v1741_v56 = vmul.f32 %v3680_v14, %v1705_v12  ;;  %v2882_v18 = vld [vmem:[%s3648_s26 + $0x68] sm:$0xff] }
 0x43f   : > { %v1827_v38 = vadd.f32 %v3702_v28, %v1791_v55  ;;  %v1812_v40 = vmul.f32 %v3695_v16, %v1776_v46  ;;  %v1890_v10 = vmax.f32 %v1826_v35, %v1858_v22  ;;  %v1756_v58 = vadd.f32 %v3687_v15, %v1720_v45  ;;  %v2881_v45 = vld [vmem:[%s3648_s26 + $0x60] sm:$0xff] }
 0x440   : > { %2245 = vst.msk [vmem:[%s3739_s25 + $0x20] sm:$0xff] %vm1355_vm1, %v2213_v8  ;;  %v3938_v8 = vadd.f32 %v3702_v28, %v1810_v21  ;;  %v3941_v59 = vadd.f32 %v3702_v28, %v1811_v34  ;;  %v1777_v44 = vadd.f32 %v3687_v15, %v1741_v56  ;;  %v1742_v9 = vmul.f32 %v3680_v14, %v1706_v51 }
 0x441   : > { %v3948_v61 = vadd.f32 %v3702_v28, %v1812_v40  ;;  %v1707_v35 = vmul.f32 %v3674_v62, %v3625_v49  ;;  %v1792_v43 = vmul.f32 %v3695_v16, %v1756_v58  ;;  %v1862_v21 = vmul.f32 0.2, %v3784_v11  ;;  %v2883_v58 = vld [vmem:[%s3648_s26 + $0x70] sm:$0xff] }
 0x442   : > { %v1813_v19 = vmul.f32 %v3695_v16, %v1777_v44  ;;  %v1778_v63 = vadd.f32 %v3687_v15, %v1742_v9 }
 0x443   : > { %v2105_v53 = vpop.f32.mrf.mxu3  ;;  %v1743_v29 = vmul.f32 %v3680_v14, %v1707_v35  ;;  %v1828_v62 = vadd.f32 %v3702_v28, %v1792_v43  ;;  %v1894_v34 = vmax.f32 %v3784_v11, %v1862_v21  ;;  %v1864_v11 = vmul.f32 0.2, %v3792_v32 }
 0x444   : > { %v2178_v2 = vadd.f32 %v2105_v53, %v1889_v20  ;;  %v1859_v20 = vmul.f32 0.2, %v1827_v38  ;;  %v3957_v25 = vadd.f32 %v3702_v28, %v1813_v19  ;;  %v1814_v53 = vmul.f32 %v3695_v16, %v1778_v63 }
 0x445   : > { %v1779_v6 = vadd.f32 %v3687_v15, %v1743_v29  ;;  %v1860_v23 = vmul.f32 0.2, %v1828_v62  ;;  %v1896_v9 = vmax.f32 %v3792_v32, %v1864_v11  ;;  %v1874_v11 = vmul.f32 0.2, %v3887_v48 }
 0x446   : > { %v2214_v13 = vadd.f32 %v3727_v24, %v2178_v2  ;;  %v3964_v5 = vadd.f32 %v3702_v28, %v1814_v53  ;;  %v1891_v49 = vmax.f32 %v1827_v38, %v1859_v20  ;;  %v1866_v53 = vmul.f32 0.2, %v3803_v39 }
 0x447   : > { %v1815_v2 = vmul.f32 %v3695_v16, %v1779_v6  ;;  %v1892_v15 = vmax.f32 %v1828_v62, %v1860_v23  ;;  %v1861_v16 = vmul.f32 0.2, %v3773_v47 }
 0x448   : > { %2246 = vst.msk [vmem:[%s3739_s25 + $0x28] sm:$0xff] %vm1355_vm1, %v2214_v13  ;;  %2803 = vmatmul.msk.bf16.gmra.mxu3 %vm1355_vm1, %v2880_v41  ;;  %v1898_v32 = vmax.f32 %v3803_v39, %v1866_v53 }
 0x449   : > { %v3971_v7 = vadd.f32 %v3702_v28, %v1815_v2  ;;  %v1893_v28 = vmax.f32 %v3773_v47, %v1861_v16  ;;  %v1863_v47 = vmul.f32 0.2, %v3787_v57 }
 0x44b   : > { %v2108_v1 = vpop.f32.mrf.mxu3  ;;  %v1895_v38 = vmax.f32 %v3787_v57, %v1863_v47  ;;  %v1865_v57 = vmul.f32 0.2, %v3797_v4 }
 0x44c   : > { %v2179_v55 = vadd.f32 %v2108_v1, %v1890_v10 }
 0x44d   : > { %v1897_v63 = vmax.f32 %v3797_v4, %v1865_v57  ;;  %v1867_v4 = vmul.f32 0.2, %v3832_v33 }
 0x44e   : > { %v2215_v22 = vadd.f32 %v3727_v24, %v2179_v55 }
 0x44f   : > { %v1899_v62 = vmax.f32 %v3832_v33, %v1867_v4  ;;  %v1878_v4 = vmul.f32 0.2, %v3938_v8 }
 0x450   : > { %2247 = vst.msk [vmem:[%s3739_s25 + $0x30] sm:$0xff] %vm1355_vm1, %v2215_v22  ;;  %v2884_v22 = vld [vmem:[%s3648_s26 + $0x78] sm:$0xff] }
 0x453   : > { %v2110_v27 = vpop.f32.mrf.mxu3 }
 0x454   : > { %v2180_v41 = vadd.f32 %v2110_v27, %v1891_v49 }
 0x456   : > { %v2216_v14 = vadd.f32 %v3727_v24, %v2180_v41 }
 0x458   : > { %2248 = vst.msk [vmem:[%s3739_s25 + $0x38] sm:$0xff] %vm1355_vm1, %v2216_v14  ;;  %2804 = vmatmul.msk.bf16.gmra.mxu3 %vm1355_vm1, %v2881_v45  ;;  %v1868_v45 = vmul.f32 0.2, %v3845_v37 }
 0x45a   : > { %v1900_v39 = vmax.f32 %v3845_v37, %v1868_v45 }
 0x45b   : > { %v2113_v30 = vpop.f32.mrf.mxu3 }
 0x45c   : > { %v2181_v0 = vadd.f32 %v2113_v30, %v1892_v15  ;;  %v1869_v30 = vmul.f32 0.2, %v3851_v60 }
 0x45e   : > { %v2217_v54 = vadd.f32 %v3727_v24, %v2181_v0  ;;  %v1901_v33 = vmax.f32 %v3851_v60, %v1869_v30 }
 0x460   : > { %2249 = vst.msk [vmem:[%s3739_s25 + $0x40] sm:$0xff] %vm1355_vm1, %v2217_v54 }
 0x463   : > { %v2115_v26 = vpop.f32.mrf.mxu3 }
 0x464   : > { %v2182_v13 = vadd.f32 %v2115_v26, %v1893_v28  ;;  %v1870_v28 = vmul.f32 0.2, %v3859_v50 }
 0x466   : > { %v2218_v12 = vadd.f32 %v3727_v24, %v2182_v13  ;;  %v1902_v37 = vmax.f32 %v3859_v50, %v1870_v28 }
 0x468   : > { %2250 = vst.msk [vmem:[%s3739_s25 + $0x48] sm:$0xff] %vm1355_vm1, %v2218_v12  ;;  %2805 = vmatmul.msk.bf16.gmra.mxu3 %vm1355_vm1, %v2882_v18  ;;  %v1871_v12 = vmul.f32 0.2, %v3862_v52 }
 0x46a   : > { %v1903_v60 = vmax.f32 %v3862_v52, %v1871_v12  ;;  %v1883_v12 = vmul.f32 0.2, %v3971_v7 }
 0x46b   : > { %v2118_v46 = vpop.f32.mrf.mxu3 }
 0x46c   : > { %v2183_v56 = vadd.f32 %v2118_v46, %v1894_v34 }
 0x46e   : > { %v2219_v51 = vadd.f32 %v3727_v24, %v2183_v56  ;;  %v1872_v56 = vmul.f32 0.2, %v3871_v17 }
 0x470   : > { %2251 = vst.msk [vmem:[%s3739_s25 + $0x50] sm:$0xff] %vm1355_vm1, %v2219_v51  ;;  %v1904_v50 = vmax.f32 %v3871_v17, %v1872_v56  ;;  %v1906_v17 = vmax.f32 %v3887_v48, %v1874_v11 }
 0x473   : > { %v2120_v40 = vpop.f32.mrf.mxu3 }
 0x474   : > { %v2184_v10 = vadd.f32 %v2120_v40, %v1895_v38  ;;  %v1873_v40 = vmul.f32 0.2, %v3875_v3 }
 0x476   : > { %v2220_v44 = vadd.f32 %v3727_v24, %v2184_v10  ;;  %v1905_v52 = vmax.f32 %v3875_v3, %v1873_v40 }
 0x478   : > { %2252 = vst.msk [vmem:[%s3739_s25 + $0x58] sm:$0xff] %vm1355_vm1, %v2220_v44  ;;  %2806 = vmatmul.msk.bf16.gmra.mxu3 %vm1355_vm1, %v2883_v58 }
 0x47b   : > { %v2123_v1 = vpop.f32.mrf.mxu3 }
 0x47c   : > { %v2185_v55 = vadd.f32 %v2123_v1, %v1896_v9 }
 0x47e   : > { %v2221_v19 = vadd.f32 %v3727_v24, %v2185_v55 }
 0x480   : > { %2253 = vst.msk [vmem:[%s3739_s25 + $0x60] sm:$0xff] %vm1355_vm1, %v2221_v19  ;;  %v1875_v19 = vmul.f32 0.2, %v3916_v36 }
 0x482   : > { %v1907_v3 = vmax.f32 %v3916_v36, %v1875_v19 }
 0x483   : > { %v2125_v20 = vpop.f32.mrf.mxu3 }
 0x484   : > { %v2186_v35 = vadd.f32 %v2125_v20, %v1897_v63 }
 0x486   : > { %v2222_v43 = vadd.f32 %v3727_v24, %v2186_v35  ;;  %v1876_v35 = vmul.f32 0.2, %v3922_v42 }
 0x488   : > { %2254 = vst.msk [vmem:[%s3739_s25 + $0x68] sm:$0xff] %vm1355_vm1, %v2222_v43  ;;  %2807 = vmatmul.msk.bf16.gmra.mxu3 %vm1355_vm1, %v2884_v22  ;;  %v1908_v48 = vmax.f32 %v3922_v42, %v1876_v35  ;;  %v1910_v42 = vmax.f32 %v3938_v8, %v1878_v4 }
 0x48b   : > { %v2128_v29 = vpop.f32.mrf.mxu3 }
 0x48c   : > { %v2187_v6 = vadd.f32 %v2128_v29, %v1898_v32  ;;  %v1877_v32 = vmul.f32 0.2, %v3931_v31 }
 0x48e   : > { %v2223_v49 = vadd.f32 %v3727_v24, %v2187_v6  ;;  %v1909_v36 = vmax.f32 %v3931_v31, %v1877_v32 }
 0x490   : > { %2255 = vst.msk [vmem:[%s3739_s25 + $0x70] sm:$0xff] %vm1355_vm1, %v2223_v49 }
 0x493   : > { %v2130_v27 = vpop.f32.mrf.mxu3 }
 0x494   : > { %v2188_v2 = vadd.f32 %v2130_v27, %v1899_v62 }
 0x496   : > { %v2224_v41 = vadd.f32 %v3727_v24, %v2188_v2 }
 0x498   : > { %2256 = vst.msk [vmem:[%s3739_s25 + $0x78] sm:$0xff] %vm1355_vm1, %v2224_v41  ;;  %v1879_v41 = vmul.f32 0.2, %v3941_v59 }
 0x49a   : > { %v1911_v31 = vmax.f32 %v3941_v59, %v1879_v41 }
 0x49b   : > { %v2133_v14 = vpop.f32.mrf.mxu3 }
 0x49c   : > { %v2189_v23 = vadd.f32 %v2133_v14, %v1900_v39 }
 0x49e   : > { %v2225_v15 = vadd.f32 %v3727_v24, %v2189_v23  ;;  %v1880_v23 = vmul.f32 0.2, %v3948_v61 }
 0x4a0   : > { %2257 = vst.msk [vmem:[%s3739_s25 + $0x80] sm:$0xff] %vm1355_vm1, %v2225_v15  ;;  %v1912_v8 = vmax.f32 %v3948_v61, %v1880_v23 }
 0x4a3   : > { %v2135_v0 = vpop.f32.mrf.mxu3 }
 0x4a4   : > { %v2190_v54 = vadd.f32 %v2135_v0, %v1901_v33  ;;  %v1881_v0 = vmul.f32 0.2, %v3957_v25 }
 0x4a6   : > { %v2226_v16 = vadd.f32 %v3727_v24, %v2190_v54  ;;  %v1913_v59 = vmax.f32 %v3957_v25, %v1881_v0  ;;  %v1915_v25 = vmax.f32 %v3971_v7, %v1883_v12 }
 0x4a8   : > { %2258 = vst.msk [vmem:[%s3739_s25 + $0x88] sm:$0xff] %vm1355_vm1, %v2226_v16 }
 0x4ab   : > { %v2138_v26 = vpop.f32.mrf.mxu3 }
 0x4ac   : > { %v2191_v13 = vadd.f32 %v2138_v26, %v1902_v37  ;;  %v1882_v37 = vmul.f32 0.2, %v3964_v5 }
 0x4ae   : > { %v2227_v18 = vadd.f32 %v3727_v24, %v2191_v13  ;;  %v1914_v61 = vmax.f32 %v3964_v5, %v1882_v37 }
 0x4b0   : > { %2259 = vst.msk [vmem:[%s3739_s25 + $0x90] sm:$0xff] %vm1355_vm1, %v2227_v18 }
 0x4b3   : > { %v2140_v21 = vpop.f32.mrf.mxu3 }
 0x4b4   : > { %v2192_v34 = vadd.f32 %v2140_v21, %v1903_v60 }
 0x4b6   : > { %v2228_v46 = vadd.f32 %v3727_v24, %v2192_v34 }
 0x4b8   : > { %2260 = vst.msk [vmem:[%s3739_s25 + $0x98] sm:$0xff] %vm1355_vm1, %v2228_v46 }
 0x4bb   : > { %v2143_v51 = vpop.f32.mrf.mxu3 }
 0x4bc   : > { %v2193_v47 = vadd.f32 %v2143_v51, %v1904_v50 }
 0x4be   : > { %v2229_v38 = vadd.f32 %v3727_v24, %v2193_v47 }
 0x4c0   : > { %2261 = vst.msk [vmem:[%s3739_s25 + $0xa0] sm:$0xff] %vm1355_vm1, %v2229_v38 }
 0x4c3   : > { %v2145_v10 = vpop.f32.mrf.mxu3 }
 0x4c4   : > { %v2194_v58 = vadd.f32 %v2145_v10, %v1905_v52 }
 0x4c6   : > { %v2230_v44 = vadd.f32 %v3727_v24, %v2194_v58 }
 0x4c8   : > { %2262 = vst.msk [vmem:[%s3739_s25 + $0xa8] sm:$0xff] %vm1355_vm1, %v2230_v44 }
 0x4cb   : > { %v2148_v9 = vpop.f32.mrf.mxu3 }
 0x4cc   : > { %v2195_v1 = vadd.f32 %v2148_v9, %v1906_v17 }
 0x4ce   : > { %v2231_v55 = vadd.f32 %v3727_v24, %v2195_v1 }
 0x4d0   : > { %2263 = vst.msk [vmem:[%s3739_s25 + $0xb0] sm:$0xff] %vm1355_vm1, %v2231_v55 }
 0x4d3   : > { %v2150_v57 = vpop.f32.mrf.mxu3 }
 0x4d4   : > { %v2196_v63 = vadd.f32 %v2150_v57, %v1907_v3 }
 0x4d6   : > { %v2232_v20 = vadd.f32 %v3727_v24, %v2196_v63 }
 0x4d8   : > { %2264 = vst.msk [vmem:[%s3739_s25 + $0xb8] sm:$0xff] %vm1355_vm1, %v2232_v20 }
 0x4db   : > { %v2153_v22 = vpop.f32.mrf.mxu3 }
 0x4dc   : > { %v2197_v43 = vadd.f32 %v2153_v22, %v1908_v48 }
 0x4de   : > { %v2233_v53 = vadd.f32 %v3727_v24, %v2197_v43 }
 0x4e0   : > { %2265 = vst.msk [vmem:[%s3739_s25 + $0xc0] sm:$0xff] %vm1355_vm1, %v2233_v53 }
 0x4e3   : > { %v2155_v29 = vpop.f32.mrf.mxu3 }
 0x4e4   : > { %v2198_v6 = vadd.f32 %v2155_v29, %v1909_v36 }
 0x4e6   : > { %v2234_v49 = vadd.f32 %v3727_v24, %v2198_v6 }
 0x4e8   : > { %2266 = vst.msk [vmem:[%s3739_s25 + $0xc8] sm:$0xff] %vm1355_vm1, %v2234_v49 }
 0x4eb   : > { %v2158_v62 = vpop.f32.mrf.mxu3 }
 0x4ec   : > { %v2199_v27 = vadd.f32 %v2158_v62, %v1910_v42 }
 0x4ee   : > { %v2235_v2 = vadd.f32 %v3727_v24, %v2199_v27 }
 0x4f0   : > { %2267 = vst.msk [vmem:[%s3739_s25 + $0xd0] sm:$0xff] %vm1355_vm1, %v2235_v2 }
 0x4f3   : > { %v2160_v45 = vpop.f32.mrf.mxu3 }
 0x4f4   : > { %v2200_v39 = vadd.f32 %v2160_v45, %v1911_v31 }
 0x4f6   : > { %v2236_v14 = vadd.f32 %v3727_v24, %v2200_v39 }
 0x4f8   : > { %2268 = vst.msk [vmem:[%s3739_s25 + $0xd8] sm:$0xff] %vm1355_vm1, %v2236_v14 }
 0x4fb   : > { %v2163_v15 = vpop.f32.mrf.mxu3 }
 0x4fc   : > { %v2201_v30 = vadd.f32 %v2163_v15, %v1912_v8 }
 0x4fe   : > { %v2237_v33 = vadd.f32 %v3727_v24, %v2201_v30 }
 0x500   : > { %2269 = vst.msk [vmem:[%s3739_s25 + $0xe0] sm:$0xff] %vm1355_vm1, %v2237_v33 }
 0x503   : > { %v2165_v54 = vpop.f32.mrf.mxu3 }
 0x504   : > { %v2202_v16 = vadd.f32 %v2165_v54, %v1913_v59 }
 0x506   : > { %v2238_v28 = vadd.f32 %v3727_v24, %v2202_v16 }
 0x508   : > { %2270 = vst.msk [vmem:[%s3739_s25 + $0xe8] sm:$0xff] %vm1355_vm1, %v2238_v28 }
 0x50b   : > { %v2168_v26 = vpop.f32.mrf.mxu3 }
 0x50c   : > { %v2203_v13 = vadd.f32 %v2168_v26, %v1914_v61 }
 0x50e   : > { %v2239_v18 = vadd.f32 %v3727_v24, %v2203_v13 }
 0x510   : > { %2271 = vst.msk [vmem:[%s3739_s25 + $0xf0] sm:$0xff] %vm1355_vm1, %v2239_v18 }
 0x513   : > { %v2170_v60 = vpop.f32.mrf.mxu3 }
 0x514   : > { %v2204_v21 = vadd.f32 %v2170_v60, %v1915_v25 }
 0x516   : > { %v2240_v34 = vadd.f32 %v3727_v24, %v2204_v21 }
 0x518   : > { %2272 = vst.msk [vmem:[%s3739_s25 + $0xf8] sm:$0xff] %vm1355_vm1, %v2240_v34 }
 0x519 PF: > { %s22_s21 = sadd.s32 1, %s2912_s21  }
 0x51a   : > { %p19_p4 = scmp.ge.s32.totalorder %s22_s21, 4  }
 0x51c   :  { %21 = sbr.rel (!%p19_p4) target bundleno = 1 (0x1), region = 111 }

</bundles_post_ra>
